<compile_context>
chip_gen: v7x
topology: tpu7x:2x2x1
jax: 0.10.0
libtpu: 0.0.40
codegen_flags: <defaults>
</compile_context>

<pallas_src>
import functools
import math

import jax
import jax.numpy as jnp
from jax.experimental import pallas as pl
from jax.experimental.pallas import tpu as pltpu

MASK_VALUE = -1e30          # finite large-negative: avoids inf-inf -> NaN paths
LOG2_E = 1.4426950408889634


# ---------------------------------------------------------------------------
# Fused kernel: per batch element, QKV projection + causal softmax attention.
# ---------------------------------------------------------------------------
def fused_head_kernel(x_ref, wq_ref, wk_ref, wv_ref, o_ref, *, scale):
    # x_ref: (1, T, C)   wq/wk/wv_ref: (C, H)   o_ref: (1, T, H)
    T = x_ref.shape[1]

    x = x_ref[0].astype(jnp.bfloat16)                      # (T, C)
    wq = wq_ref[...].astype(jnp.bfloat16)                  # (C, H)
    wk = wk_ref[...].astype(jnp.bfloat16)
    wv = wv_ref[...].astype(jnp.bfloat16)

    # QKV projection on the MXU with f32 accumulation. The attention scale
    # (C**-0.5) and log2(e) are folded into q: T*H muls instead of T*T later,
    # and the softmax below runs directly in the exp2 domain.
    q = (jnp.dot(x, wq, preferred_element_type=jnp.float32) * scale).astype(jnp.bfloat16)
    k = jnp.dot(x, wk, preferred_element_type=jnp.float32).astype(jnp.bfloat16)
    v = jnp.dot(x, wv, preferred_element_type=jnp.float32).astype(jnp.bfloat16)

    # Scores: contract the H axis of q and k directly (no materialized k.T).
    s = jax.lax.dot_general(
        q, k, (((1,), (1,)), ((), ())),
        preferred_element_type=jnp.float32)                # (T, T) f32

    # Causal mask — the whole sequence is one block, so a single application.
    row = jax.lax.broadcasted_iota(jnp.int32, (T, T), 0)
    col = jax.lax.broadcasted_iota(jnp.int32, (T, T), 1)
    s = jnp.where(row >= col, s, MASK_VALUE)

    # Full softmax in the base-2 domain (scale already carries log2(e)); f32 math.
    m = jnp.max(s, axis=-1, keepdims=True)                 # (T, 1)
    p = jnp.exp2(s - m)                                    # (T, T)
    l = jnp.sum(p, axis=-1, keepdims=True)                 # (T, 1)

    out = jnp.dot(p.astype(jnp.bfloat16), v, preferred_element_type=jnp.float32)
    inv_l = pl.reciprocal(l, approx=False)                 # 256 reciprocals: exact is free
    o_ref[0] = (out * inv_l).astype(o_ref.dtype)

    # TODO(synk): dropout(p=0.2) on the attention weights is identity in eval mode;
    # training-mode dropout (pltpu.prng_seed + prng_random_bits mask) not implemented.


# ---------------------------------------------------------------------------
# Wrapper: equivalent of Head.forward (eval mode)
# ---------------------------------------------------------------------------
def head_forward(x, wk, wq, wv):
    """x: (B, T, C) f32; wk/wq/wv: (C, H) f32 (stored as W.T of the Linear) -> (B, T, H)."""
    B, T, C = x.shape
    H = wq.shape[1]
    assert T % 8 == 0 and C % 128 == 0, "T must be a multiple of 8 and C of 128"
    scale = float(C) ** -0.5 * LOG2_E      # module scales scores by n_embd ** -0.5

    kern = functools.partial(fused_head_kernel, scale=scale)
    return pl.pallas_call(
        kern,
        out_shape=jax.ShapeDtypeStruct((B, T, H), x.dtype),
        grid_spec=pltpu.PrefetchScalarGridSpec(
            num_scalar_prefetch=0,
            grid=(B,),
            in_specs=[
                pl.BlockSpec((1, T, C), lambda b: (b, 0, 0)),
                pl.BlockSpec((C, H), lambda b: (0, 0)),     # weights stay resident
                pl.BlockSpec((C, H), lambda b: (0, 0)),
                pl.BlockSpec((C, H), lambda b: (0, 0)),
            ],
            out_specs=pl.BlockSpec((1, T, H), lambda b: (b, 0, 0)),
        ),
        compiler_params=pltpu.CompilerParams(
            dimension_semantics=("parallel",)),             # one batch per TC on v7x
    )(x, wq, wk, wv)


def reference_head(x, wk, wq, wv):
    B, T, C = x.shape
    k = x @ wk
    q = x @ wq
    v = x @ wv
    wei = (q @ jnp.swapaxes(k, -2, -1)) * (C ** -0.5)
    row = jnp.arange(T)[:, None]
    col = jnp.arange(T)[None, :]
    wei = jnp.where(row >= col, wei, -jnp.inf)
    wei = jax.nn.softmax(wei, axis=-1)
    return wei @ v


if __name__ == "__main__":
    # Shapes from the module: T = block_size = 256, C = n_embd = 384, head_size = 384/6 = 64.
    B, T, C, H = 2, 256, 384, 64

    key = jax.random.PRNGKey(0)
    kx, kk, kq, kv = jax.random.split(key, 4)

    x = jax.random.normal(kx, (B, T, C), dtype=jnp.float32)
    bound = 1.0 / math.sqrt(C)   # deterministic "Linear(no bias)" style init, stored as (C, H) = W.T
    wk = jax.random.uniform(kk, (C, H), minval=-bound, maxval=bound, dtype=jnp.float32)
    wq = jax.random.uniform(kq, (C, H), minval=-bound, maxval=bound, dtype=jnp.float32)
    wv = jax.random.uniform(kv, (C, H), minval=-bound, maxval=bound, dtype=jnp.float32)

    out = jax.block_until_ready(jax.jit(head_forward)(x, wk, wq, wv))
    ref = reference_head(x, wk, wq, wv)

    assert out.shape == (B, T, H)
    # bf16 MXU operands with f32 accumulation -> compare to the f32 reference at bf16 tolerance.
    max_err = float(jnp.max(jnp.abs(out - ref)))
    assert jnp.allclose(out, ref, atol=2e-2, rtol=2e-2), f"mismatch vs reference (max abs err {max_err})"

    print("KERNEL_OK")
</pallas_src>

<mosaic_0001>
module attributes {stable_mosaic.version = 11 : i64} {
  func.func @fused_head_kernel(%arg0: i32, %arg1: memref<1x256x384xf32, #tpu.memory_space<vmem>>, %arg2: memref<384x64xf32, #tpu.memory_space<vmem>>, %arg3: memref<384x64xf32, #tpu.memory_space<vmem>>, %arg4: memref<384x64xf32, #tpu.memory_space<vmem>>, %arg5: memref<1x256x64xf32, #tpu.memory_space<vmem>>) attributes {dimension_semantics = [#tpu.dimension_semantics<parallel>], iteration_bounds = array<i64: 2>, scalar_prefetch = 0 : i64, scratch_operands = 0 : i64, tpu.core_type = #tpu.core_type<tc>, window_params = [{transform_indices = @transform_0, window_bounds = array<i64: 1, 256, 384>}, {pipeline_mode = #tpu.pipeline_mode<synchronous>, transform_indices = @transform_1, window_bounds = array<i64: 384, 64>}, {pipeline_mode = #tpu.pipeline_mode<synchronous>, transform_indices = @transform_2, window_bounds = array<i64: 384, 64>}, {pipeline_mode = #tpu.pipeline_mode<synchronous>, transform_indices = @transform_3, window_bounds = array<i64: 384, 64>}, {transform_indices = @transform_4, window_bounds = array<i64: 1, 256, 64>}]} {
    %c0 = arith.constant 0 : index
    %c0_0 = arith.constant 0 : index
    %c0_1 = arith.constant 0 : index
    %0 = vector.load %arg1[%c0, %c0_0, %c0_1] : memref<1x256x384xf32, #tpu.memory_space<vmem>>, vector<1x256x384xf32>
    %1 = vector.shape_cast %0 : vector<1x256x384xf32> to vector<256x384xf32>
    %2 = arith.truncf %1 : vector<256x384xf32> to vector<256x384xbf16>
    %c0_2 = arith.constant 0 : index
    %c0_3 = arith.constant 0 : index
    %3 = vector.load %arg2[%c0_2, %c0_3] : memref<384x64xf32, #tpu.memory_space<vmem>>, vector<384x64xf32>
    %4 = arith.truncf %3 : vector<384x64xf32> to vector<384x64xbf16>
    %c0_4 = arith.constant 0 : index
    %c0_5 = arith.constant 0 : index
    %5 = vector.load %arg3[%c0_4, %c0_5] : memref<384x64xf32, #tpu.memory_space<vmem>>, vector<384x64xf32>
    %6 = arith.truncf %5 : vector<384x64xf32> to vector<384x64xbf16>
    %c0_6 = arith.constant 0 : index
    %c0_7 = arith.constant 0 : index
    %7 = vector.load %arg4[%c0_6, %c0_7] : memref<384x64xf32, #tpu.memory_space<vmem>>, vector<384x64xf32>
    %8 = arith.truncf %7 : vector<384x64xf32> to vector<384x64xbf16>
    %cst = arith.constant dense<0.000000e+00> : vector<256x64xf32>
    %9 = tpu.matmul %2, %4, %cst {dimension_numbers = #tpu.dot_dimension_numbers<[1], [0], [0], [1], [0, 0, 1, 1], [], []>} : vector<256x384xbf16>, vector<384x64xbf16>, vector<256x64xf32> -> vector<256x64xf32>
    %cst_8 = arith.constant 0.0736222267 : f32
    %10 = vector.broadcast %cst_8 : f32 to vector<256x64xf32>
    %11 = arith.mulf %9, %10 : vector<256x64xf32>
    %12 = arith.truncf %11 : vector<256x64xf32> to vector<256x64xbf16>
    %cst_9 = arith.constant dense<0.000000e+00> : vector<256x64xf32>
    %13 = tpu.matmul %2, %6, %cst_9 {dimension_numbers = #tpu.dot_dimension_numbers<[1], [0], [0], [1], [0, 0, 1, 1], [], []>} : vector<256x384xbf16>, vector<384x64xbf16>, vector<256x64xf32> -> vector<256x64xf32>
    %14 = arith.truncf %13 : vector<256x64xf32> to vector<256x64xbf16>
    %cst_10 = arith.constant dense<0.000000e+00> : vector<256x64xf32>
    %15 = tpu.matmul %2, %8, %cst_10 {dimension_numbers = #tpu.dot_dimension_numbers<[1], [0], [0], [1], [0, 0, 1, 1], [], []>} : vector<256x384xbf16>, vector<384x64xbf16>, vector<256x64xf32> -> vector<256x64xf32>
    %16 = arith.truncf %15 : vector<256x64xf32> to vector<256x64xbf16>
    %cst_11 = arith.constant dense<0.000000e+00> : vector<256x256xf32>
    %17 = tpu.matmul %12, %14, %cst_11 {dimension_numbers = #tpu.dot_dimension_numbers<[1], [1], [0], [0], [0, 0, 1, 0], [], []>} : vector<256x64xbf16>, vector<256x64xbf16>, vector<256x256xf32> -> vector<256x256xf32>
    %18 = tpu.iota {dimensions = array<i32: 0>} : vector<256x256xi32>
    %19 = tpu.iota {dimensions = array<i32: 1>} : vector<256x256xi32>
    %20 = arith.cmpi sge, %18, %19 : vector<256x256xi32>
    %cst_12 = arith.constant -1.000000e+30 : f32
    %21 = vector.broadcast %cst_12 : f32 to vector<256x256xf32>
    %22 = arith.select %20, %17, %21 : vector<256x256xi1>, vector<256x256xf32>
    %cst_13 = arith.constant dense<0xFF800000> : vector<256xf32>
    %23 = vector.multi_reduction <maximumf>, %22, %cst_13 [1] : vector<256x256xf32> to vector<256xf32>
    %24 = vector.shape_cast %23 : vector<256xf32> to vector<256x1xf32>
    %25 = vector.broadcast %24 : vector<256x1xf32> to vector<256x256xf32>
    %26 = arith.subf %22, %25 : vector<256x256xf32>
    %27 = math.exp2 %26 : vector<256x256xf32>
    %cst_14 = arith.constant dense<0.000000e+00> : vector<256xf32>
    %28 = vector.multi_reduction <add>, %27, %cst_14 [1] : vector<256x256xf32> to vector<256xf32>
    %29 = vector.shape_cast %28 : vector<256xf32> to vector<256x1xf32>
    %30 = arith.truncf %27 : vector<256x256xf32> to vector<256x256xbf16>
    %cst_15 = arith.constant dense<0.000000e+00> : vector<256x64xf32>
    %31 = tpu.matmul %30, %16, %cst_15 {dimension_numbers = #tpu.dot_dimension_numbers<[1], [0], [0], [1], [0, 0, 1, 1], [], []>} : vector<256x256xbf16>, vector<256x64xbf16>, vector<256x64xf32> -> vector<256x64xf32>
    %32 = tpu.reciprocal %29 : vector<256x1xf32> -> vector<256x1xf32>
    %33 = vector.broadcast %32 : vector<256x1xf32> to vector<256x64xf32>
    %34 = arith.mulf %31, %33 : vector<256x64xf32>
    %c0_16 = arith.constant 0 : index
    %c0_17 = arith.constant 0 : index
    %c0_18 = arith.constant 0 : index
    %35 = vector.load %arg5[%c0_16, %c0_17, %c0_18] : memref<1x256x64xf32, #tpu.memory_space<vmem>>, vector<1x256x64xf32>
    %36 = vector.shape_cast %35 : vector<1x256x64xf32> to vector<256x64xf32>
    %37 = vector.shape_cast %34 : vector<256x64xf32> to vector<1x256x64xf32>
    tpu.vector_store %arg5[%c0_16, %c0_17, %c0_18], %37 {strides = array<i32>} : memref<1x256x64xf32, #tpu.memory_space<vmem>>, vector<1x256x64xf32>,
    return
  }
  func.func @transform_0(%arg0: i32) -> (i32, i32, i32) {
    %c0_i32 = arith.constant 0 : i32
    %c0_i32_0 = arith.constant 0 : i32
    %c0_i32_1 = arith.constant 0 : i32
    return %arg0, %c0_i32, %c0_i32_0 : i32, i32, i32
  }
  func.func @transform_1(%arg0: i32) -> (i32, i32) {
    %c0_i32 = arith.constant 0 : i32
    %c0_i32_0 = arith.constant 0 : i32
    %c0_i32_1 = arith.constant 0 : i32
    return %c0_i32, %c0_i32_0 : i32, i32
  }
  func.func @transform_2(%arg0: i32) -> (i32, i32) {
    %c0_i32 = arith.constant 0 : i32
    %c0_i32_0 = arith.constant 0 : i32
    %c0_i32_1 = arith.constant 0 : i32
    return %c0_i32, %c0_i32_0 : i32, i32
  }
  func.func @transform_3(%arg0: i32) -> (i32, i32) {
    %c0_i32 = arith.constant 0 : i32
    %c0_i32_0 = arith.constant 0 : i32
    %c0_i32_1 = arith.constant 0 : i32
    return %c0_i32, %c0_i32_0 : i32, i32
  }
  func.func @transform_4(%arg0: i32) -> (i32, i32, i32) {
    %c0_i32 = arith.constant 0 : i32
    %c0_i32_0 = arith.constant 0 : i32
    %c0_i32_1 = arith.constant 0 : i32
    return %arg0, %c0_i32, %c0_i32_0 : i32, i32, i32
  }
}

</mosaic_0001>

<bundles_post_ra>
// kernel: head_forward.1
= control target key start
LH: loop header
LB: loop body
LE: loop exit
PB: predicated region body
PF: predicated region fallthrough
CT: control target
= control target key end

     0   :  { %s3720_s15 = smov 0   ;;  %s5165_s0 = inlined_call_operand.vmem [shape: f32[2,256,384], index: 0, kind: input, shape index: {}]   ;;  %s5166_s1 = inlined_call_operand.vmem [shape: f32[384,64], index: 1, kind: input, shape index: {}]   ;;  %s5167_s2 = inlined_call_operand.vmem [shape: f32[384,64], index: 2, kind: input, shape index: {}]   ;;  %s5168_s3 = inlined_call_operand.vmem [shape: f32[384,64], index: 3, kind: input, shape index: {}]   ;;  %s5169_s4 = inlined_call_operand.vmem [shape: f32[2,256,64], index: 4, kind: output, shape index: {}]  }
   0x1 LB: > { %s2723_s16 = sadd.s32 4294967295, %s3693_s15   ;;  %p2727_p0 = scmp.ge.s32.totalorder %s3693_s15, 1  ;;  %s3693_s15 = sphi %s3720_s15, %s14_s15  }
   0x2   : > { %p162_p1 = scmp.lt.s32.totalorder %s3693_s15, 3 }
   0x4   : > { %p163_p2 = pnand %p2727_p0, %p162_p1 }
   0x6   : > { %166 = sbr.rel (%p163_p2) target bundleno = 1211 (0x4bb), region = 36 }
   0xd   : > { %v359_v0 = vld [vmem:[%s5166_s1 + $0x80] sm:$0xff]  ;;  %v360_v1 = vld [vmem:[%s5166_s1 + $0x88] sm:$0xff]  ;;  %p188_p3 = scmp.lt.s32.totalorder %s2723_s16, 1  ;;  %v361_v5 = vld [vmem:[%s5166_s1 + $0x90] sm:$0xff]  ;;  %vm1605_vm0 = vcmask 523264  }
   0xe   : > { %v343_v2 = vld [vmem:[%s5166_s1] sm:$0xff]  ;;  %v399_v3 = vpack.c.bf16 %v360_v1, %v359_v0  ;;  %v344_v4 = vld [vmem:[%s5166_s1 + $0x8] sm:$0xff]  ;;  %v362_v6 = vld [vmem:[%s5166_s1 + $0x98] sm:$0xff] }
   0xf   : > { %v391_v7 = vpack.c.bf16 %v344_v4, %v343_v2  ;;  %v400_v8 = vpack.c.bf16 %v362_v6, %v361_v5  ;;  %v345_v9 = vld [vmem:[%s5166_s1 + $0x10] sm:$0xff]  ;;  %v346_v10 = vld [vmem:[%s5166_s1 + $0x18] sm:$0xff]  ;;  %v363_v11 = vld [vmem:[%s5166_s1 + $0xa0] sm:$0xff]  ;;  %s5187_s16 = smov (!%p188_p3, %s2723_s16), 1 }
  0x10   : > { %2750 = vmatprep.subr.bf16.mxu0 %v399_v3  ;;  %3462 = vmatprep.subr.bf16.mxu1 %v399_v3  ;;  %v364_v12 = vld [vmem:[%s5166_s1 + $0xa8] sm:$0xff]  ;;  %v392_v13 = vpack.c.bf16 %v346_v10, %v345_v9  ;;  %s3486_s11 = smul.u32 768, %s5187_s16  ;;  %v347_v15 = vld [vmem:[%s5166_s1 + $0x20] sm:$0xff]  ;;  %v365_v17 = vld [vmem:[%s5166_s1 + $0xb0] sm:$0xff]  ;;  %s2749_s28 = sshll.u32 %s5187_s16, 8 }
  0x11   : > { %2751 = vmatpush3.bf16.msra.mxu0 %v391_v7  ;;  %3470 = vmatpush3.bf16.msra.mxu1 %v391_v7  ;;  %v401_v14 = vpack.c.bf16 %v364_v12, %v363_v11  ;;  %v348_v16 = vld [vmem:[%s5166_s1 + $0x28] sm:$0xff]  ;;  %v366_v18 = vld [vmem:[%s5166_s1 + $0xb8] sm:$0xff]  ;;  %v349_v21 = vld [vmem:[%s5166_s1 + $0x30] sm:$0xff]  ;;  %s5096_s5 = scalar_lea.vmem %s5169_s4, %s2749_s28 }
  0x12   : > { %2752 = vmatprep.subr.bf16.mxu0 %v400_v8  ;;  %3463 = vmatprep.subr.bf16.mxu1 %v400_v8  ;;  %s3776_s24 = scalar_lea.vmem %s5165_s0, %s3486_s11  ;;  %v393_v19 = vpack.c.bf16 %v348_v16, %v347_v15  ;;  %v402_v20 = vpack.c.bf16 %v366_v18, %v365_v17  ;;  %v350_v22 = vld [vmem:[%s5166_s1 + $0x38] sm:$0xff]  ;;  %v367_v23 = vld [vmem:[%s5166_s1 + $0xc0] sm:$0xff]  ;;  %v368_v24 = vld [vmem:[%s5166_s1 + $0xc8] sm:$0xff] }
  0x13   : > { %v200_v25 = vld [vmem:[%s3776_s24 + $0x8] sm:$0xff]  ;;  %v203_v26 = vld [vmem:[%s3776_s24 + $0x20] sm:$0xff]  ;;  %v394_v29 = vpack.c.bf16 %v350_v22, %v349_v21  ;;  %v403_v32 = vpack.c.bf16 %v368_v24, %v367_v23  ;;  %v369_v35 = vld [vmem:[%s5166_s1 + $0xd0] sm:$0xff] }
  0x14   : > { %v272_v27 = vld [vmem:[%s3776_s24 + $0x248] sm:$0xff]  ;;  %v275_v28 = vld [vmem:[%s3776_s24 + $0x260] sm:$0xff]  ;;  %v3794_v30 = vpack.c.bf16 %v203_v26, %v200_v25  ;;  %v370_v36 = vld [vmem:[%s5166_s1 + $0xd8] sm:$0xff] }
  0x15   : > { %2753 = vmatpush3.bf16.msra.mxu0 %v392_v13  ;;  %3471 = vmatpush3.bf16.msra.mxu1 %v392_v13  ;;  %v3796_v31 = vpack.c.bf16 %v275_v28, %v272_v27  ;;  %v351_v33 = vld [vmem:[%s5166_s1 + $0x40] sm:$0xff]  ;;  %v352_v34 = vld [vmem:[%s5166_s1 + $0x48] sm:$0xff]  ;;  %v404_v38 = vpack.c.bf16 %v370_v36, %v369_v35  ;;  %v353_v39 = vld [vmem:[%s5166_s1 + $0x50] sm:$0xff] }
  0x16   : > { %2754 = vmatprep.subr.bf16.mxu0 %v401_v14  ;;  %3464 = vmatprep.subr.bf16.mxu1 %v401_v14  ;;  %v395_v37 = vpack.c.bf16 %v352_v34, %v351_v33  ;;  %v354_v40 = vld [vmem:[%s5166_s1 + $0x58] sm:$0xff]  ;;  %v371_v41 = vld [vmem:[%s5166_s1 + $0xe0] sm:$0xff]  ;;  %v372_v42 = vld [vmem:[%s5166_s1 + $0xe8] sm:$0xff] }
  0x17   : > { %591 = vmatprep.mubr.bf16.mxu0 %v3794_v30  ;;  %687 = vmatprep.mubr.bf16.mxu1 %v3796_v31  ;;  %v396_v43 = vpack.c.bf16 %v354_v40, %v353_v39  ;;  %v405_v44 = vpack.c.bf16 %v372_v42, %v371_v41  ;;  %v355_v45 = vld [vmem:[%s5166_s1 + $0x60] sm:$0xff]  ;;  %v356_v46 = vld [vmem:[%s5166_s1 + $0x68] sm:$0xff]  ;;  %v373_v47 = vld [vmem:[%s5166_s1 + $0xf0] sm:$0xff] }
  0x18   : > { %v374_v48 = vld [vmem:[%s5166_s1 + $0xf8] sm:$0xff]  ;;  %v397_v49 = vpack.c.bf16 %v356_v46, %v355_v45  ;;  %v357_v51 = vld [vmem:[%s5166_s1 + $0x70] sm:$0xff]  ;;  %v375_v53 = vld [vmem:[%s5166_s1 + $0x100] sm:$0xff] }
  0x19   : > { %2755 = vmatpush3.bf16.msra.mxu0 %v393_v19  ;;  %3472 = vmatpush3.bf16.msra.mxu1 %v393_v19  ;;  %v406_v50 = vpack.c.bf16 %v374_v48, %v373_v47  ;;  %v358_v52 = vld [vmem:[%s5166_s1 + $0x78] sm:$0xff]  ;;  %v376_v54 = vld [vmem:[%s5166_s1 + $0x108] sm:$0xff]  ;;  %v199_v55 = vld [vmem:[%s3776_s24] sm:$0xff] }
  0x1a   : > { %2756 = vmatprep.subr.bf16.mxu0 %v402_v20  ;;  %3465 = vmatprep.subr.bf16.mxu1 %v402_v20  ;;  %v202_v56 = vld [vmem:[%s3776_s24 + $0x18] sm:$0xff]  ;;  %v398_v57 = vpack.c.bf16 %v358_v52, %v357_v51  ;;  %v271_v58 = vld [vmem:[%s3776_s24 + $0x240] sm:$0xff]  ;;  %v377_v60 = vld [vmem:[%s5166_s1 + $0x110] sm:$0xff]  ;;  %v407_v61 = vpack.c.bf16 %v376_v54, %v375_v53 }
  0x1b   : > { %v274_v59 = vld [vmem:[%s3776_s24 + $0x258] sm:$0xff]  ;;  %v209_v0 = vld [vmem:[%s3776_s24 + $0x50] sm:$0xff]  ;;  %v447_v3 = vld [vmem:[%s5167_s2 + $0x100] sm:$0xff]  ;;  %v3865_v4 = vpack.c.bf16 %v202_v56, %v199_v55 }
  0x1c   : > { %v378_v62 = vld [vmem:[%s5166_s1 + $0x118] sm:$0xff]  ;;  %v281_v2 = vld [vmem:[%s3776_s24 + $0x290] sm:$0xff]  ;;  %v3867_v5 = vpack.c.bf16 %v274_v59, %v271_v58  ;;  %v448_v6 = vld [vmem:[%s5167_s2 + $0x108] sm:$0xff] }
  0x1d   : > { %2757 = vmatpush3.bf16.msra.mxu0 %v394_v29  ;;  %3473 = vmatpush3.bf16.msra.mxu1 %v394_v29  ;;  %v206_v63 = vld [vmem:[%s3776_s24 + $0x38] sm:$0xff]  ;;  %v479_v8 = vpack.c.bf16 %v448_v6, %v447_v3  ;;  %v408_v9 = vpack.c.bf16 %v378_v62, %v377_v60  ;;  %v379_v11 = vld [vmem:[%s5166_s1 + $0x120] sm:$0xff]  ;;  %v380_v12 = vld [vmem:[%s5166_s1 + $0x128] sm:$0xff] }
  0x1e   : > { %2758 = vmatprep.subr.bf16.mxu0 %v403_v32  ;;  %3466 = vmatprep.subr.bf16.mxu1 %v403_v32  ;;  %v278_v1 = vld [vmem:[%s3776_s24 + $0x278] sm:$0xff]  ;;  %v3872_v7 = vpack.c.bf16 %v209_v0, %v206_v63  ;;  %v205_v13 = vld [vmem:[%s3776_s24 + $0x30] sm:$0xff]  ;;  %v208_v16 = vld [vmem:[%s3776_s24 + $0x48] sm:$0xff]  ;;  %v409_v20 = vpack.c.bf16 %v380_v12, %v379_v11 }
  0x1f   : > { %v3874_v10 = vpack.c.bf16 %v281_v2, %v278_v1  ;;  %v449_v14 = vld [vmem:[%s5167_s2 + $0x110] sm:$0xff]  ;;  %v450_v15 = vld [vmem:[%s5167_s2 + $0x118] sm:$0xff]  ;;  %v280_v18 = vld [vmem:[%s3776_s24 + $0x288] sm:$0xff]  ;;  %v3906_v27 = vpack.c.bf16 %v208_v16, %v205_v13 }
  0x20   : > { %v277_v17 = vld [vmem:[%s3776_s24 + $0x270] sm:$0xff]  ;;  %v480_v19 = vpack.c.bf16 %v450_v15, %v449_v14  ;;  %v212_v22 = vld [vmem:[%s3776_s24 + $0x68] sm:$0xff]  ;;  %v215_v23 = vld [vmem:[%s3776_s24 + $0x80] sm:$0xff] }
  0x21   : > { %2759 = vmatpush3.bf16.msra.mxu0 %v395_v37  ;;  %3474 = vmatpush3.bf16.msra.mxu1 %v395_v37  ;;  %v381_v21 = vld [vmem:[%s5166_s1 + $0x130] sm:$0xff]  ;;  %v382_v24 = vld [vmem:[%s5166_s1 + $0x138] sm:$0xff]  ;;  %v284_v25 = vld [vmem:[%s3776_s24 + $0x2a8] sm:$0xff]  ;;  %v3908_v28 = vpack.c.bf16 %v280_v18, %v277_v17  ;;  %v3910_v29 = vpack.c.bf16 %v215_v23, %v212_v22 }
  0x22   : > { %2760 = vmatprep.subr.bf16.mxu0 %v404_v38  ;;  %3467 = vmatprep.subr.bf16.mxu1 %v404_v38  ;;  %v287_v26 = vld [vmem:[%s3776_s24 + $0x2c0] sm:$0xff]  ;;  %v410_v32 = vpack.c.bf16 %v382_v24, %v381_v21  ;;  %v384_v35 = vld [vmem:[%s5166_s1 + $0x148] sm:$0xff]  ;;  %v214_v37 = vld [vmem:[%s3776_s24 + $0x78] sm:$0xff] }
  0x23   : > { %v3912_v33 = vpack.c.bf16 %v287_v26, %v284_v25  ;;  %v383_v34 = vld [vmem:[%s5166_s1 + $0x140] sm:$0xff]  ;;  %v286_v39 = vld [vmem:[%s3776_s24 + $0x2b8] sm:$0xff]  ;;  %v452_v41 = vld [vmem:[%s5167_s2 + $0x128] sm:$0xff] }
  0x24   : > { %v211_v36 = vld [vmem:[%s3776_s24 + $0x60] sm:$0xff]  ;;  %v411_v42 = vpack.c.bf16 %v384_v35, %v383_v34  ;;  %v221_v45 = vld [vmem:[%s3776_s24 + $0xb0] sm:$0xff]  ;;  %v386_v47 = vld [vmem:[%s5166_s1 + $0x158] sm:$0xff] }
  0x25   : > { %2761 = vmatpush3.bf16.msra.mxu0 %v396_v43  ;;  %3475 = vmatpush3.bf16.msra.mxu1 %v396_v43  ;;  %v283_v38 = vld [vmem:[%s3776_s24 + $0x2a0] sm:$0xff]  ;;  %v385_v43 = vld [vmem:[%s5166_s1 + $0x150] sm:$0xff]  ;;  %v290_v48 = vld [vmem:[%s3776_s24 + $0x2d8] sm:$0xff] }
  0x26   : > { %2762 = vmatprep.subr.bf16.mxu0 %v405_v44  ;;  %3468 = vmatprep.subr.bf16.mxu1 %v405_v44  ;;  %v451_v40 = vld [vmem:[%s5167_s2 + $0x120] sm:$0xff]  ;;  %v218_v44 = vld [vmem:[%s3776_s24 + $0x98] sm:$0xff]  ;;  %v3946_v51 = vpack.c.bf16 %v286_v39, %v283_v38  ;;  %v453_v53 = vld [vmem:[%s5167_s2 + $0x130] sm:$0xff]  ;;  %v412_v54 = vpack.c.bf16 %v386_v47, %v385_v43 }
  0x27   : > { %v481_v46 = vpack.c.bf16 %v452_v41, %v451_v40  ;;  %v3948_v52 = vpack.c.bf16 %v221_v45, %v218_v44  ;;  %v454_v56 = vld [vmem:[%s5167_s2 + $0x138] sm:$0xff]  ;;  %v388_v58 = vld [vmem:[%s5166_s1 + $0x168] sm:$0xff]  ;;  %v217_v60 = vld [vmem:[%s3776_s24 + $0x90] sm:$0xff] }
  0x28   : > { %v482_v59 = vpack.c.bf16 %v454_v56, %v453_v53  ;;  %v289_v62 = vld [vmem:[%s3776_s24 + $0x2d0] sm:$0xff]  ;;  %v292_v63 = vld [vmem:[%s3776_s24 + $0x2e8] sm:$0xff]  ;;  %v227_v3 = vld [vmem:[%s3776_s24 + $0xe0] sm:$0xff] }
  0x29   : > { %2763 = vmatpush3.bf16.msra.mxu0 %v397_v49  ;;  %3476 = vmatpush3.bf16.msra.mxu1 %v397_v49  ;;  %v293_v49 = vld [vmem:[%s3776_s24 + $0x2f0] sm:$0xff]  ;;  %v224_v2 = vld [vmem:[%s3776_s24 + $0xc8] sm:$0xff]  ;;  %v390_v6 = vld [vmem:[%s5166_s1 + $0x178] sm:$0xff]  ;;  %v3984_v12 = vpack.c.bf16 %v292_v63, %v289_v62 }
  0x2a   : > { %2764 = vmatprep.subr.bf16.mxu0 %v406_v50  ;;  %3469 = vmatprep.subr.bf16.mxu1 %v406_v50  ;;  %v3944_v50 = vpack.c.bf16 %v214_v37, %v211_v36  ;;  %v3953_v55 = vpack.c.bf16 %v293_v49, %v290_v48  ;;  %v389_v1 = vld [vmem:[%s5166_s1 + $0x170] sm:$0xff]  ;;  %v3986_v13 = vpack.c.bf16 %v227_v3, %v224_v2  ;;  %v431_v16 = vld [vmem:[%s5167_s2 + $0x80] sm:$0xff]  ;;  %v456_v18 = vld [vmem:[%s5167_s2 + $0x148] sm:$0xff] }
  0x2b   : > { %v414_v14 = vpack.c.bf16 %v390_v6, %v389_v1  ;;  %v455_v17 = vld [vmem:[%s5167_s2 + $0x140] sm:$0xff]  ;;  %v457_v21 = vld [vmem:[%s5167_s2 + $0x150] sm:$0xff]  ;;  %v458_v22 = vld [vmem:[%s5167_s2 + $0x158] sm:$0xff] }
  0x2c   : > { %v223_v23 = vld [vmem:[%s3776_s24 + $0xc0] sm:$0xff]  ;;  %v226_v24 = vld [vmem:[%s3776_s24 + $0xd8] sm:$0xff]  ;;  %v416_v34 = vld [vmem:[%s5167_s2 + $0x8] sm:$0xff]  ;;  %v484_v35 = vpack.c.bf16 %v458_v22, %v457_v21 }
  0x2d   : > { %2765 = vmatpush3.bf16.msra.mxu0 %v398_v57  ;;  %3477 = vmatpush3.bf16.msra.mxu1 %v398_v57  ;;  %v387_v57 = vld [vmem:[%s5166_s1 + $0x160] sm:$0xff]  ;;  %v210_v26 = vld [vmem:[%s3776_s24 + $0x58] sm:$0xff]  ;;  %v233_v38 = vld [vmem:[%s3776_s24 + $0x110] sm:$0xff]  ;;  %v4032_v43 = vpack.c.bf16 %v226_v24, %v223_v23 }
  0x2e   : > { %3318 = vmatprep.subr.bf16.mxu1 %v407_v61  ;;  %3366 = vmatprep.subr.bf16.mxu0 %v479_v8  ;;  %v413_v0 = vpack.c.bf16 %v388_v58, %v387_v57  ;;  %v207_v25 = vld [vmem:[%s3776_s24 + $0x40] sm:$0xff]  ;;  %v230_v37 = vld [vmem:[%s3776_s24 + $0xf8] sm:$0xff]  ;;  %v213_v39 = vld [vmem:[%s3776_s24 + $0x70] sm:$0xff] }
  0x2f   : > { %v216_v40 = vld [vmem:[%s3776_s24 + $0x88] sm:$0xff]  ;;  %v433_v41 = vld [vmem:[%s5167_s2 + $0x90] sm:$0xff]  ;;  %v4034_v44 = vpack.c.bf16 %v210_v26, %v207_v25  ;;  %v459_v47 = vld [vmem:[%s5167_s2 + $0x160] sm:$0xff] }
  0x30   : > { %592 = vmatmul.mubr.bf16.vlgmr.msra.gmra.mrb[0].mxu0 %v3865_v4  ;;  %688 = vmatmul.mubr.bf16.vlgmr.msra.gmra.mrb[0].mxu1 %v3867_v5  ;;  %v460_v48 = vld [vmem:[%s5167_s2 + $0x168] sm:$0xff]  ;;  %v4044_v49 = vpack.c.bf16 %v216_v40, %v213_v39  ;;  %v418_v56 = vld [vmem:[%s5167_s2 + $0x18] sm:$0xff]  ;;  %v435_v57 = vld [vmem:[%s5167_s2 + $0xa0] sm:$0xff] }
  0x31   : > { %3319 = vmatpush3.bf16.msra.mxu1 %v407_v61  ;;  %599 = vmatprep.mubr.bf16.mxu0 %v3872_v7  ;;  %v220_v61 = vld [vmem:[%s3776_s24 + $0xa8] sm:$0xff]  ;;  %v485_v62 = vpack.c.bf16 %v460_v48, %v459_v47  ;;  %v222_v63 = vld [vmem:[%s3776_s24 + $0xb8] sm:$0xff]  ;;  %v239_v2 = vld [vmem:[%s3776_s24 + $0x140] sm:$0xff] }
  0x32   : > { %3320 = vmatprep.subr.bf16.mxu1 %v408_v9  ;;  %695 = vmatprep.mubr.bf16.mxu1 %v3874_v10  ;;  %v3982_v11 = vpack.c.bf16 %v220_v61, %v217_v60  ;;  %v436_v58 = vld [vmem:[%s5167_s2 + $0xa8] sm:$0xff]  ;;  %v219_v61 = vld [vmem:[%s3776_s24 + $0xa0] sm:$0xff]  ;;  %v225_v3 = vld [vmem:[%s3776_s24 + $0xd0] sm:$0xff] }
  0x33   : > { %3367 = vmatpush3.bf16.msra.mxu0 %v479_v8  ;;  %v201_v8 = vld [vmem:[%s3776_s24 + $0x10] sm:$0xff]  ;;  %v232_v60 = vld [vmem:[%s3776_s24 + $0x108] sm:$0xff]  ;;  %v438_v21 = vld [vmem:[%s5167_s2 + $0xb8] sm:$0xff] }
  0x34   : > { %3368 = vmatprep.subr.bf16.mxu0 %v480_v19  ;;  %v236_v1 = vld [vmem:[%s3776_s24 + $0x128] sm:$0xff]  ;;  %v235_v26 = vld [vmem:[%s3776_s24 + $0x120] sm:$0xff]  ;;  %v234_v40 = vld [vmem:[%s3776_s24 + $0x118] sm:$0xff] }
  0x35   : > { %3321 = vmatpush3.bf16.msra.mxu1 %v408_v9  ;;  %v204_v9 = vld [vmem:[%s3776_s24 + $0x28] sm:$0xff]  ;;  %v4092_v22 = vpack.c.bf16 %v239_v2, %v236_v1  ;;  %v231_v39 = vld [vmem:[%s3776_s24 + $0x100] sm:$0xff]  ;;  %v425_v2 = vld [vmem:[%s5167_s2 + $0x50] sm:$0xff] }
  0x36   : > { %3322 = vmatprep.subr.bf16.mxu1 %v409_v20  ;;  %v3988_v15 = vpack.c.bf16 %v204_v9, %v201_v8  ;;  %v228_v6 = vld [vmem:[%s3776_s24 + $0xe8] sm:$0xff]  ;;  %v473_v8 = vpack.c.bf16 %v436_v58, %v435_v57  ;;  %v419_v9 = vld [vmem:[%s5167_s2 + $0x20] sm:$0xff]  ;;  %v4128_v58 = vpack.c.bf16 %v234_v40, %v231_v39 }
  0x37   : > { %3369 = vmatpush3.bf16.msra.mxu0 %v480_v19  ;;  %v432_v19 = vld [vmem:[%s5167_s2 + $0x88] sm:$0xff]  ;;  %v4094_v23 = vpack.c.bf16 %v228_v6, %v225_v3  ;;  %v426_v3 = vld [vmem:[%s5167_s2 + $0x58] sm:$0xff] }
  0x38   : > { %600 = vmatmul.mubr.bf16.gmra.mrb[4].mxu0 %v3906_v27  ;;  %696 = vmatmul.mubr.bf16.gmra.mrb[4].mxu1 %v3908_v28  ;;  %v471_v36 = vpack.c.bf16 %v432_v19, %v431_v16  ;;  %v461_v16 = vld [vmem:[%s5167_s2 + $0x170] sm:$0xff]  ;;  %v4084_v19 = vpack.c.bf16 %v222_v63, %v219_v61  ;;  %v240_v47 = vld [vmem:[%s3776_s24 + $0x148] sm:$0xff] }
  0x39   : > { %3323 = vmatpush3.bf16.msra.mxu1 %v409_v20  ;;  %607 = vmatprep.mubr.bf16.mxu0 %v3910_v29  ;;  %v483_v20 = vpack.c.bf16 %v456_v18, %v455_v17  ;;  %v462_v17 = vld [vmem:[%s5167_s2 + $0x178] sm:$0xff]  ;;  %v244_v6 = vld [vmem:[%s3776_s24 + $0x168] sm:$0xff] }
  0x3a   : > { %3324 = vmatprep.subr.bf16.mxu1 %v410_v32  ;;  %703 = vmatprep.mubr.bf16.mxu1 %v3912_v33  ;;  %v486_v25 = vpack.c.bf16 %v462_v17, %v461_v16  ;;  %v246_v16 = vld [vmem:[%s3776_s24 + $0x178] sm:$0xff]  ;;  %v248_v17 = vld [vmem:[%s3776_s24 + $0x188] sm:$0xff] }
  0x3b   : > { %3370 = vmatprep.subr.bf16.mxu0 %v481_v46 }
  0x3c   : > { %3371 = vmatpush3.bf16.msra.mxu0 %v481_v46  ;;  %v4036_v46 = vpack.c.bf16 %v233_v38, %v230_v37  ;;  %v439_v37 = vld [vmem:[%s5167_s2 + $0xc0] sm:$0xff]  ;;  %v440_v38 = vld [vmem:[%s5167_s2 + $0xc8] sm:$0xff] }
  0x3d   : > { %3325 = vmatpush3.bf16.msra.mxu1 %v410_v32  ;;  %3372 = vmatprep.subr.bf16.mxu0 %v482_v59  ;;  %v415_v32 = vld [vmem:[%s5167_s2] sm:$0xff] }
  0x3e   : > { %3326 = vmatprep.subr.bf16.mxu1 %v411_v42  ;;  %v463_v45 = vpack.c.bf16 %v416_v34, %v415_v32  ;;  %v421_v34 = vld [vmem:[%s5167_s2 + $0x30] sm:$0xff] }
  0x40   : > { %608 = vmatmul.mubr.bf16.gmra.mrb[8].mxu0 %v3944_v50  ;;  %704 = vmatmul.mubr.bf16.gmra.mrb[8].mxu1 %v3946_v51 }
  0x41   : > { %3327 = vmatpush3.bf16.msra.mxu1 %v411_v42  ;;  %615 = vmatprep.mubr.bf16.mxu0 %v3948_v52  ;;  %v434_v42 = vld [vmem:[%s5167_s2 + $0x98] sm:$0xff] }
  0x42   : > { %3328 = vmatprep.subr.bf16.mxu1 %v412_v54  ;;  %711 = vmatprep.mubr.bf16.mxu1 %v3953_v55  ;;  %v472_v53 = vpack.c.bf16 %v434_v42, %v433_v41  ;;  %v242_v41 = vld [vmem:[%s3776_s24 + $0x158] sm:$0xff]  ;;  %v245_v42 = vld [vmem:[%s3776_s24 + $0x170] sm:$0xff] }
  0x43   : > { %3373 = vmatpush3.bf16.msra.mxu0 %v482_v59  ;;  %v229_v59 = vld [vmem:[%s3776_s24 + $0xf0] sm:$0xff]  ;;  %v4136_v61 = vpack.c.bf16 %v245_v42, %v242_v41 }
  0x44   : > { %3374 = vmatprep.subr.bf16.mxu0 %v483_v20  ;;  %v4082_v18 = vpack.c.bf16 %v232_v60, %v229_v59  ;;  %v441_v59 = vld [vmem:[%s5167_s2 + $0xd0] sm:$0xff]  ;;  %v442_v60 = vld [vmem:[%s5167_s2 + $0xd8] sm:$0xff] }
  0x45   : > { %3329 = vmatpush3.bf16.msra.mxu1 %v412_v54  ;;  %v417_v54 = vld [vmem:[%s5167_s2 + $0x10] sm:$0xff]  ;;  %v476_v1 = vpack.c.bf16 %v442_v60, %v441_v59  ;;  %v254_v59 = vld [vmem:[%s3776_s24 + $0x1b8] sm:$0xff] }
  0x46   : > { %3330 = vmatprep.subr.bf16.mxu1 %v413_v0  ;;  %v257_v60 = vld [vmem:[%s3776_s24 + $0x1d0] sm:$0xff] }
  0x47   : > { %3375 = vmatpush3.bf16.msra.mxu0 %v483_v20  ;;  %v437_v20 = vld [vmem:[%s5167_s2 + $0xb0] sm:$0xff] }
  0x48   : > { %616 = vmatmul.mubr.bf16.gmra.mrb[12].mxu0 %v3982_v11  ;;  %712 = vmatmul.mubr.bf16.gmra.mrb[12].mxu1 %v3984_v12  ;;  %v474_v32 = vpack.c.bf16 %v438_v21, %v437_v20  ;;  %v251_v20 = vld [vmem:[%s3776_s24 + $0x1a0] sm:$0xff]  ;;  %v249_v21 = vld [vmem:[%s3776_s24 + $0x190] sm:$0xff] }
  0x49   : > { %3331 = vmatpush3.bf16.msra.mxu1 %v413_v0  ;;  %623 = vmatprep.mubr.bf16.mxu0 %v3986_v13  ;;  %v464_v0 = vpack.c.bf16 %v418_v56, %v417_v54  ;;  %v423_v54 = vld [vmem:[%s5167_s2 + $0x40] sm:$0xff]  ;;  %v424_v56 = vld [vmem:[%s5167_s2 + $0x48] sm:$0xff]  ;;  %v4180_v39 = vpack.c.bf16 %v251_v20, %v248_v17  ;;  %v253_v17 = vld [vmem:[%s3776_s24 + $0x1b0] sm:$0xff] }
  0x4a   : > { %3332 = vmatprep.subr.bf16.mxu1 %v414_v14  ;;  %3334 = vmatprep.mubr.bf16.mxu1 %v3988_v15  ;;  %v467_v63 = vpack.c.bf16 %v424_v56, %v423_v54  ;;  %v255_v54 = vld [vmem:[%s3776_s24 + $0x1c0] sm:$0xff]  ;;  %v258_v56 = vld [vmem:[%s3776_s24 + $0x1d8] sm:$0xff]  ;;  %v256_v20 = vld [vmem:[%s3776_s24 + $0x1c8] sm:$0xff] }
  0x4b   : > { %3376 = vmatprep.subr.bf16.mxu0 %v484_v35 }
  0x4c   : > { %3377 = vmatpush3.bf16.msra.mxu0 %v484_v35  ;;  %v422_v35 = vld [vmem:[%s5167_s2 + $0x38] sm:$0xff] }
  0x4d   : > { %3333 = vmatpush3.bf16.msra.mxu1 %v414_v14  ;;  %v420_v14 = vld [vmem:[%s5167_s2 + $0x28] sm:$0xff]  ;;  %3378 = vmatprep.subr.bf16.mxu0 %v485_v62  ;;  %v466_v48 = vpack.c.bf16 %v422_v35, %v421_v34 }
  0x4e   : > { %2886 = vmatprep.subr.bf16.mxu1 %v471_v36  ;;  %v465_v24 = vpack.c.bf16 %v420_v14, %v419_v9  ;;  %v238_v36 = vld [vmem:[%s3776_s24 + $0x138] sm:$0xff]  ;;  %v444_v9 = vld [vmem:[%s5167_s2 + $0xe8] sm:$0xff]  ;;  %v243_v14 = vld [vmem:[%s3776_s24 + $0x160] sm:$0xff] }
  0x4f   : > { %v4126_v57 = vpack.c.bf16 %v238_v36, %v235_v26  ;;  %v428_v34 = vld [vmem:[%s5167_s2 + $0x68] sm:$0xff]  ;;  %v4172_v36 = vpack.c.bf16 %v246_v16, %v243_v14 }
  0x50   : > { %624 = vmatmul.mubr.bf16.gmra.mrb[16].mxu0 %v4032_v43  ;;  %3335 = vmatmul.mubr.bf16.vlgmr.msra.gmra.mrb[16].mxu1 %v4034_v44  ;;  %v520_v14 = vld [vmem:[%s5168_s3 + $0x108] sm:$0xff] }
  0x51   : > { %2887 = vmatpush3.bf16.msra.mxu1 %v463_v45  ;;  %631 = vmatprep.mubr.bf16.mxu0 %v4036_v46  ;;  %v237_v45 = vld [vmem:[%s3776_s24 + $0x130] sm:$0xff] }
  0x52   : > { %3338 = vmatprep.mubr.bf16.mxu1 %v4044_v49  ;;  %2888 = vmatprep.subr.bf16.mxu1 %v472_v53  ;;  %v475_v53 = vpack.c.bf16 %v440_v38, %v439_v37  ;;  %v445_v37 = vld [vmem:[%s5167_s2 + $0xf0] sm:$0xff]  ;;  %v446_v38 = vld [vmem:[%s5167_s2 + $0xf8] sm:$0xff] }
  0x53   : > { %3379 = vmatpush3.bf16.msra.mxu0 %v485_v62  ;;  %v4138_v62 = vpack.c.bf16 %v240_v47, %v237_v45  ;;  %v478_v42 = vpack.c.bf16 %v446_v38, %v445_v37  ;;  %v429_v45 = vld [vmem:[%s5167_s2 + $0x70] sm:$0xff]  ;;  %v430_v47 = vld [vmem:[%s5167_s2 + $0x78] sm:$0xff]  ;;  %v4228_v37 = vpack.c.bf16 %v256_v20, %v253_v17  ;;  %v268_v17 = vld [vmem:[%s3776_s24 + $0x228] sm:$0xff] }
  0x54   : > { %3380 = vmatprep.subr.bf16.mxu0 %v486_v25  ;;  %v291_v20 = vld [vmem:[%s3776_s24 + $0x2e0] sm:$0xff] }
  0x55   : > { %2889 = vmatpush3.bf16.msra.mxu1 %v464_v0  ;;  %v241_v0 = vld [vmem:[%s3776_s24 + $0x150] sm:$0xff] }
  0x56   : > { %2890 = vmatprep.subr.bf16.mxu1 %v473_v8  ;;  %v443_v8 = vld [vmem:[%s5167_s2 + $0xe0] sm:$0xff]  ;;  %v4170_v35 = vpack.c.bf16 %v244_v6, %v241_v0  ;;  %v264_v0 = vld [vmem:[%s3776_s24 + $0x208] sm:$0xff]  ;;  %v4206_v6 = vpack.c.bf16 %v257_v60, %v254_v59  ;;  %v285_v59 = vld [vmem:[%s3776_s24 + $0x2b0] sm:$0xff] }
  0x57   : > { %3381 = vmatpush3.bf16.msra.mxu0 %v486_v25  ;;  %v468_v25 = vpack.c.bf16 %v426_v3, %v425_v2  ;;  %v477_v26 = vpack.c.bf16 %v444_v9, %v443_v8  ;;  %v4204_v3 = vpack.c.bf16 %v258_v56, %v255_v54  ;;  %v519_v9 = vld [vmem:[%s5168_s3 + $0x100] sm:$0xff]  ;;  %v266_v54 = vld [vmem:[%s3776_s24 + $0x218] sm:$0xff]  ;;  %v269_v56 = vld [vmem:[%s3776_s24 + $0x230] sm:$0xff] }
  0x58   : > { %632 = vmatmul.mubr.bf16.gmra.mrb[20].mxu0 %v4082_v18  ;;  %3339 = vmatmul.mubr.bf16.gmra.mrb[20].mxu1 %v4084_v19  ;;  %v551_v16 = vpack.c.bf16 %v520_v14, %v519_v9  ;;  %v288_v60 = vld [vmem:[%s3776_s24 + $0x2c8] sm:$0xff]  ;;  %v265_v14 = vld [vmem:[%s3776_s24 + $0x210] sm:$0xff] }
  0x59   : > { %639 = vmatprep.mubr.bf16.mxu0 %v4092_v22  ;;  %3342 = vmatprep.mubr.bf16.mxu1 %v4094_v23  ;;  %v4254_v9 = vpack.c.bf16 %v288_v60, %v285_v59  ;;  %v528_v59 = vld [vmem:[%s5168_s3 + $0x148] sm:$0xff] }
  0x5a   : > { %2891 = vmatpush3.bf16.msra.mxu1 %v465_v24  ;;  %v252_v24 = vld [vmem:[%s3776_s24 + $0x1a8] sm:$0xff] }
  0x5b   : > { %2892 = vmatprep.subr.bf16.mxu1 %v474_v32  ;;  %v427_v32 = vld [vmem:[%s5167_s2 + $0x60] sm:$0xff]  ;;  %v4182_v40 = vpack.c.bf16 %v252_v24, %v249_v21  ;;  %v270_v24 = vld [vmem:[%s3776_s24 + $0x238] sm:$0xff] }
  0x5c   : > { %v469_v41 = vpack.c.bf16 %v428_v34, %v427_v32  ;;  %v267_v21 = vld [vmem:[%s3776_s24 + $0x220] sm:$0xff]  ;;  %v273_v32 = vld [vmem:[%s3776_s24 + $0x250] sm:$0xff]  ;;  %v276_v34 = vld [vmem:[%s3776_s24 + $0x268] sm:$0xff] }
  0x5d   : > { %v4230_v38 = vpack.c.bf16 %v270_v24, %v267_v21  ;;  %v294_v21 = vld [vmem:[%s3776_s24 + $0x2f8] sm:$0xff]  ;;  %v4264_v24 = vpack.c.bf16 %v268_v17, %v265_v14  ;;  %v529_v14 = vld [vmem:[%s5168_s3 + $0x150] sm:$0xff] }
  0x5e   : > { %2893 = vmatpush3.bf16.msra.mxu1 %v466_v48  ;;  %v247_v48 = vld [vmem:[%s3776_s24 + $0x180] sm:$0xff]  ;;  %v530_v17 = vld [vmem:[%s5168_s3 + $0x158] sm:$0xff] }
  0x5f   : > { %2894 = vmatprep.subr.bf16.mxu1 %v475_v53  ;;  %v250_v53 = vld [vmem:[%s3776_s24 + $0x198] sm:$0xff] }
  0x60   : > { %640 = vmatmul.mubr.bf16.gmra.mrb[24].mxu0 %v4126_v57  ;;  %3343 = vmatmul.mubr.bf16.gmra.mrb[24].mxu1 %v4128_v58  ;;  %v4202_v2 = vpack.c.bf16 %v250_v53, %v247_v48  ;;  %v279_v48 = vld [vmem:[%s3776_s24 + $0x280] sm:$0xff]  ;;  %v282_v53 = vld [vmem:[%s3776_s24 + $0x298] sm:$0xff] }
  0x61   : > { %647 = vmatprep.mubr.bf16.mxu0 %v4136_v61  ;;  %3346 = vmatprep.mubr.bf16.mxu1 %v4138_v62 }
  0x62   : > { %2895 = vmatpush3.bf16.msra.mxu1 %v467_v63  ;;  %v261_v63 = vld [vmem:[%s3776_s24 + $0x1f0] sm:$0xff] }
  0x63   : > { %2896 = vmatprep.subr.bf16.mxu1 %v476_v1  ;;  %v470_v1 = vpack.c.bf16 %v430_v47, %v429_v45  ;;  %v4208_v8 = vpack.c.bf16 %v264_v0, %v261_v63  ;;  %v259_v45 = vld [vmem:[%s3776_s24 + $0x1e0] sm:$0xff]  ;;  %v262_v47 = vld [vmem:[%s3776_s24 + $0x1f8] sm:$0xff]  ;;  %v4250_v0 = vpack.c.bf16 %v282_v53, %v279_v48  ;;  %v525_v53 = vld [vmem:[%s5168_s3 + $0x130] sm:$0xff] }
  0x64   : > { %v4248_v63 = vpack.c.bf16 %v262_v47, %v259_v45  ;;  %v523_v45 = vld [vmem:[%s5168_s3 + $0x120] sm:$0xff]  ;;  %v524_v47 = vld [vmem:[%s5168_s3 + $0x128] sm:$0xff] }
  0x65   : > { %v553_v48 = vpack.c.bf16 %v524_v47, %v523_v45  ;;  %v534_v45 = vld [vmem:[%s5168_s3 + $0x178] sm:$0xff]  ;;  %v503_v47 = vld [vmem:[%s5168_s3 + $0x80] sm:$0xff] }
  0x66   : > { %2897 = vmatpush3.bf16.msra.mxu1 %v468_v25  ;;  %v260_v25 = vld [vmem:[%s3776_s24 + $0x1e8] sm:$0xff] }
  0x67   : > { %2898 = vmatprep.subr.bf16.mxu1 %v477_v26  ;;  %v263_v26 = vld [vmem:[%s3776_s24 + $0x200] sm:$0xff] }
  0x68   : > { %648 = vmatmul.mubr.bf16.gmra.mrb[28].mxu0 %v4170_v35  ;;  %3347 = vmatmul.mubr.bf16.gmra.mrb[28].mxu1 %v4172_v36 }
  0x69   : > { %655 = vmatprep.mubr.bf16.mxu0 %v4180_v39  ;;  %3350 = vmatprep.mubr.bf16.mxu1 %v4182_v40 }
  0x6a   : > { %2899 = vmatpush3.bf16.msra.mxu1 %v469_v41  ;;  %v4232_v41 = vpack.c.bf16 %v263_v26, %v260_v25  ;;  %v4266_v25 = vpack.c.bf16 %v294_v21, %v291_v20  ;;  %v521_v26 = vld [vmem:[%s5168_s3 + $0x110] sm:$0xff]  ;;  %v556_v20 = vpack.c.bf16 %v530_v17, %v529_v14  ;;  %v531_v21 = vld [vmem:[%s5168_s3 + $0x160] sm:$0xff]  ;;  %v506_v14 = vld [vmem:[%s5168_s3 + $0x98] sm:$0xff] }
  0x6b   : > { %2900 = vmatprep.subr.bf16.mxu1 %v478_v42  ;;  %v4234_v42 = vpack.c.bf16 %v276_v34, %v273_v32  ;;  %v522_v32 = vld [vmem:[%s5168_s3 + $0x118] sm:$0xff] }
  0x6c   : > { %v552_v34 = vpack.c.bf16 %v522_v32, %v521_v26  ;;  %v532_v26 = vld [vmem:[%s5168_s3 + $0x168] sm:$0xff] }
  0x6d   : > { %v557_v32 = vpack.c.bf16 %v532_v26, %v531_v21  ;;  %v490_v21 = vld [vmem:[%s5168_s3 + $0x18] sm:$0xff] }
  0x6e   : > { %2901 = vmatpush3.bf16.msra.mxu1 %v470_v1  ;;  %v4252_v1 = vpack.c.bf16 %v269_v56, %v266_v54  ;;  %v526_v54 = vld [vmem:[%s5168_s3 + $0x138] sm:$0xff] }
  0x6f   : > { %3414 = vmatprep.subr.bf16.mxu1 %v551_v16  ;;  %v554_v56 = vpack.c.bf16 %v526_v54, %v525_v53  ;;  %v487_v54 = vld [vmem:[%s5168_s3] sm:$0xff] }
  0x70   : > { %656 = vmatmul.mubr.bf16.gmra.mrb[32].mxu0 %v4202_v2  ;;  %3351 = vmatmul.mubr.bf16.gmra.mrb[32].mxu1 %v4204_v3 }
  0x71   : > { %663 = vmatprep.mubr.bf16.mxu0 %v4206_v6  ;;  %3354 = vmatprep.mubr.bf16.mxu1 %v4208_v8 }
  0x78   : > { %664 = vmatmul.mubr.bf16.gmra.mrb[36].mxu0 %v4228_v37  ;;  %3355 = vmatmul.mubr.bf16.gmra.mrb[36].mxu1 %v4230_v38 }
  0x79   : > { %671 = vmatprep.mubr.bf16.mxu0 %v4232_v41  ;;  %3358 = vmatprep.mubr.bf16.mxu1 %v4234_v42 }
  0x80   : > { %672 = vmatmul.mubr.bf16.gmra.mrb[40].mxu0 %v4248_v63  ;;  %3359 = vmatmul.mubr.bf16.gmra.mrb[40].mxu1 %v4250_v0 }
  0x81   : > { %679 = vmatprep.mubr.bf16.mxu0 %v4252_v1  ;;  %3362 = vmatprep.mubr.bf16.mxu1 %v4254_v9 }
  0x88   : > { %680 = vmatmul.mubr.bf16.gmra.mrb[44].mxu0 %v4264_v24  ;;  %3363 = vmatmul.mubr.bf16.gmra.mrb[44].mxu1 %v4266_v25 }
  0x89   : > { %961 = vmatprep.mubr.bf16.mxu1 %v3794_v30  ;;  %3382 = vmatprep.mubr.bf16.mxu0 %v3988_v15 }
  0x90   : > { %962 = vmatmul.mubr.bf16.vlgmr.msra.gmra.mrb[48].mxu1 %v3865_v4  ;;  %3383 = vmatmul.mubr.bf16.vlgmr.msra.gmra.mrb[48].mxu0 %v4034_v44 }
  0x91   : > { %969 = vmatprep.mubr.bf16.mxu1 %v3872_v7  ;;  %3386 = vmatprep.mubr.bf16.mxu0 %v4044_v49 }
  0x92   : > { %3415 = vmatpush3.bf16.msra.mxu1 %v551_v16  ;;  %v527_v16 = vld [vmem:[%s5168_s3 + $0x140] sm:$0xff] }
  0x93   : > { %3416 = vmatprep.subr.bf16.mxu1 %v552_v34  ;;  %v555_v60 = vpack.c.bf16 %v528_v59, %v527_v16 }
  0x96   : > { %3417 = vmatpush3.bf16.msra.mxu1 %v552_v34  ;;  %v533_v34 = vld [vmem:[%s5168_s3 + $0x170] sm:$0xff] }
  0x97   : > { %3418 = vmatprep.subr.bf16.mxu1 %v553_v48  ;;  %v558_v59 = vpack.c.bf16 %v534_v45, %v533_v34  ;;  %v507_v34 = vld [vmem:[%s5168_s3 + $0xa0] sm:$0xff]  ;;  %v508_v45 = vld [vmem:[%s5168_s3 + $0xa8] sm:$0xff] }
  0x98   : > { %970 = vmatmul.mubr.bf16.gmra.mrb[52].mxu1 %v3906_v27  ;;  %3387 = vmatmul.mubr.bf16.gmra.mrb[52].mxu0 %v4084_v19 }
  0x99   : > { %977 = vmatprep.mubr.bf16.mxu1 %v3910_v29  ;;  %3390 = vmatprep.mubr.bf16.mxu0 %v4094_v23 }
  0x9a   : > { %3419 = vmatpush3.bf16.msra.mxu1 %v553_v48  ;;  %v504_v48 = vld [vmem:[%s5168_s3 + $0x88] sm:$0xff] }
  0x9b   : > { %3420 = vmatprep.subr.bf16.mxu1 %v554_v56  ;;  %v543_v53 = vpack.c.bf16 %v504_v48, %v503_v47  ;;  %v545_v47 = vpack.c.bf16 %v508_v45, %v507_v34  ;;  %v491_v48 = vld [vmem:[%s5168_s3 + $0x20] sm:$0xff]  ;;  %v496_v34 = vld [vmem:[%s5168_s3 + $0x48] sm:$0xff] }
  0x9d   : > { %3022 = vmatprep.subr.bf16.mxu0 %v543_v53 }
  0x9e   : > { %3421 = vmatpush3.bf16.msra.mxu1 %v554_v56  ;;  %v488_v56 = vld [vmem:[%s5168_s3 + $0x8] sm:$0xff] }
  0x9f   : > { %3422 = vmatprep.subr.bf16.mxu1 %v555_v60  ;;  %v535_v16 = vpack.c.bf16 %v488_v56, %v487_v54  ;;  %v509_v54 = vld [vmem:[%s5168_s3 + $0xb0] sm:$0xff]  ;;  %v510_v56 = vld [vmem:[%s5168_s3 + $0xb8] sm:$0xff] }
  0xa0   : > { %978 = vmatmul.mubr.bf16.gmra.mrb[56].mxu1 %v3944_v50  ;;  %3391 = vmatmul.mubr.bf16.gmra.mrb[56].mxu0 %v4128_v58 }
  0xa1   : > { %985 = vmatprep.mubr.bf16.mxu1 %v3948_v52  ;;  %3394 = vmatprep.mubr.bf16.mxu0 %v4138_v62 }
  0xa2   : > { %3423 = vmatpush3.bf16.msra.mxu1 %v555_v60  ;;  %v505_v60 = vld [vmem:[%s5168_s3 + $0x90] sm:$0xff]  ;;  %3023 = vmatpush3.bf16.msra.mxu0 %v535_v16  ;;  %v546_v16 = vpack.c.bf16 %v510_v56, %v509_v54  ;;  %v498_v54 = vld [vmem:[%s5168_s3 + $0x58] sm:$0xff] }
  0xa3   : > { %3424 = vmatprep.subr.bf16.mxu1 %v556_v20  ;;  %v544_v17 = vpack.c.bf16 %v506_v14, %v505_v60  ;;  %v494_v60 = vld [vmem:[%s5168_s3 + $0x38] sm:$0xff] }
  0xa5   : > { %3024 = vmatprep.subr.bf16.mxu0 %v544_v17  ;;  %v511_v17 = vld [vmem:[%s5168_s3 + $0xc0] sm:$0xff] }
  0xa6   : > { %3425 = vmatpush3.bf16.msra.mxu1 %v556_v20  ;;  %v489_v20 = vld [vmem:[%s5168_s3 + $0x10] sm:$0xff] }
  0xa7   : > { %3426 = vmatprep.subr.bf16.mxu1 %v557_v32  ;;  %v536_v26 = vpack.c.bf16 %v490_v21, %v489_v20  ;;  %v512_v20 = vld [vmem:[%s5168_s3 + $0xc8] sm:$0xff] }
  0xa8   : > { %986 = vmatmul.mubr.bf16.gmra.mrb[60].mxu1 %v3982_v11  ;;  %3395 = vmatmul.mubr.bf16.gmra.mrb[60].mxu0 %v4172_v36  ;;  %v547_v21 = vpack.c.bf16 %v512_v20, %v511_v17  ;;  %v500_v17 = vld [vmem:[%s5168_s3 + $0x68] sm:$0xff] }
  0xa9   : > { %993 = vmatprep.mubr.bf16.mxu1 %v3986_v13  ;;  %3398 = vmatprep.mubr.bf16.mxu0 %v4182_v40 }
  0xaa   : > { %3427 = vmatpush3.bf16.msra.mxu1 %v557_v32  ;;  %v492_v32 = vld [vmem:[%s5168_s3 + $0x28] sm:$0xff]  ;;  %3025 = vmatpush3.bf16.msra.mxu0 %v536_v26  ;;  %v495_v26 = vld [vmem:[%s5168_s3 + $0x40] sm:$0xff] }
  0xab   : > { %3428 = vmatprep.subr.bf16.mxu1 %v558_v59  ;;  %v537_v53 = vpack.c.bf16 %v492_v32, %v491_v48  ;;  %3026 = vmatprep.subr.bf16.mxu0 %v545_v47  ;;  %v539_v45 = vpack.c.bf16 %v496_v34, %v495_v26  ;;  %v513_v47 = vld [vmem:[%s5168_s3 + $0xd0] sm:$0xff]  ;;  %v514_v48 = vld [vmem:[%s5168_s3 + $0xd8] sm:$0xff] }
  0xac   : > { %v548_v32 = vpack.c.bf16 %v514_v48, %v513_v47  ;;  %v518_v26 = vld [vmem:[%s5168_s3 + $0xf8] sm:$0xff] }
  0xad   : > { %v502_v47 = vld [vmem:[%s5168_s3 + $0x78] sm:$0xff] }
  0xae   : > { %3429 = vmatpush3.bf16.msra.mxu1 %v558_v59  ;;  %v493_v59 = vld [vmem:[%s5168_s3 + $0x30] sm:$0xff]  ;;  %3027 = vmatpush3.bf16.msra.mxu0 %v537_v53 }
  0xaf   : > { %v538_v14 = vpack.c.bf16 %v494_v60, %v493_v59  ;;  %3028 = vmatprep.subr.bf16.mxu0 %v546_v16  ;;  %v497_v53 = vld [vmem:[%s5168_s3 + $0x50] sm:$0xff]  ;;  %v515_v16 = vld [vmem:[%s5168_s3 + $0xe0] sm:$0xff]  ;;  %v516_v59 = vld [vmem:[%s5168_s3 + $0xe8] sm:$0xff] }
  0xb0   : > { %994 = vmatmul.mubr.bf16.gmra.mrb[64].mxu1 %v4032_v43  ;;  %3399 = vmatmul.mubr.bf16.gmra.mrb[64].mxu0 %v4204_v3  ;;  %v540_v56 = vpack.c.bf16 %v498_v54, %v497_v53  ;;  %v549_v60 = vpack.c.bf16 %v516_v59, %v515_v16 }
  0xb1   : > { %1001 = vmatprep.mubr.bf16.mxu1 %v4036_v46  ;;  %3402 = vmatprep.mubr.bf16.mxu0 %v4208_v8 }
  0xb2   : > { %3029 = vmatpush3.bf16.msra.mxu0 %v538_v14  ;;  %v499_v14 = vld [vmem:[%s5168_s3 + $0x60] sm:$0xff] }
  0xb3   : > { %3030 = vmatprep.subr.bf16.mxu0 %v547_v21  ;;  %v541_v20 = vpack.c.bf16 %v500_v17, %v499_v14  ;;  %v517_v21 = vld [vmem:[%s5168_s3 + $0xf0] sm:$0xff] }
  0xb4   : > { %v550_v34 = vpack.c.bf16 %v518_v26, %v517_v21 }
  0xb6   : > { %3031 = vmatpush3.bf16.msra.mxu0 %v539_v45  ;;  %v501_v45 = vld [vmem:[%s5168_s3 + $0x70] sm:$0xff] }
  0xb7   : > { %3032 = vmatprep.subr.bf16.mxu0 %v548_v32  ;;  %v542_v48 = vpack.c.bf16 %v502_v47, %v501_v45 }
  0xb8   : > { %1002 = vmatmul.mubr.bf16.gmra.mrb[68].mxu1 %v4082_v18  ;;  %3403 = vmatmul.mubr.bf16.gmra.mrb[68].mxu0 %v4230_v38 }
  0xb9   : > { %1009 = vmatprep.mubr.bf16.mxu1 %v4092_v22  ;;  %3406 = vmatprep.mubr.bf16.mxu0 %v4234_v42 }
  0xba   : > { %3033 = vmatpush3.bf16.msra.mxu0 %v540_v56 }
  0xbb   : > { %3034 = vmatprep.subr.bf16.mxu0 %v549_v60 }
  0xbe   : > { %3035 = vmatpush3.bf16.msra.mxu0 %v541_v20 }
  0xbf   : > { %3036 = vmatprep.subr.bf16.mxu0 %v550_v34 }
  0xc0   : > { %1010 = vmatmul.mubr.bf16.gmra.mrb[72].mxu1 %v4126_v57  ;;  %3407 = vmatmul.mubr.bf16.gmra.mrb[72].mxu0 %v4250_v0 }
  0xc1   : > { %1017 = vmatprep.mubr.bf16.mxu1 %v4136_v61  ;;  %3410 = vmatprep.mubr.bf16.mxu0 %v4254_v9 }
  0xc2   : > { %3037 = vmatpush3.bf16.msra.mxu0 %v542_v48 }
  0xc8   : > { %1018 = vmatmul.mubr.bf16.gmra.mrb[76].mxu1 %v4170_v35  ;;  %3411 = vmatmul.mubr.bf16.gmra.mrb[76].mxu0 %v4266_v25 }
  0xc9   : > { %1025 = vmatprep.mubr.bf16.mxu1 %v4180_v39  ;;  %1299 = vmatprep.mubr.bf16.mxu0 %v3794_v30 }
  0xd0   : > { %1026 = vmatmul.mubr.bf16.gmra.mrb[80].mxu1 %v4202_v2  ;;  %1300 = vmatmul.mubr.bf16.vlgmr.msra.gmra.mrb[80].mxu0 %v3865_v4 }
  0xd1   : > { %1033 = vmatprep.mubr.bf16.mxu1 %v4206_v6  ;;  %1307 = vmatprep.mubr.bf16.mxu0 %v3872_v7 }
  0xd8   : > { %1034 = vmatmul.mubr.bf16.gmra.mrb[84].mxu1 %v4228_v37  ;;  %1308 = vmatmul.mubr.bf16.gmra.mrb[84].mxu0 %v3906_v27 }
  0xd9   : > { %1041 = vmatprep.mubr.bf16.mxu1 %v4232_v41  ;;  %1315 = vmatprep.mubr.bf16.mxu0 %v3910_v29 }
  0xe0   : > { %1042 = vmatmul.mubr.bf16.gmra.mrb[88].mxu1 %v4248_v63  ;;  %1316 = vmatmul.mubr.bf16.gmra.mrb[88].mxu0 %v3944_v50 }
  0xe1   : > { %1049 = vmatprep.mubr.bf16.mxu1 %v4252_v1  ;;  %1323 = vmatprep.mubr.bf16.mxu0 %v3948_v52 }
  0xe8   : > { %1050 = vmatmul.mubr.bf16.gmra.mrb[92].mxu1 %v4264_v24  ;;  %1324 = vmatmul.mubr.bf16.gmra.mrb[92].mxu0 %v3982_v11 }
  0xe9   : > { %1057 = vmatprep.mubr.bf16.mxu1 %v3796_v31  ;;  %1331 = vmatprep.mubr.bf16.mxu0 %v3986_v13 }
  0xf0   : > { %1058 = vmatmul.mubr.bf16.gmra.mrb[96].mxu1 %v3867_v5  ;;  %1332 = vmatmul.mubr.bf16.gmra.mrb[96].mxu0 %v4032_v43 }
  0xf1   : > { %1065 = vmatprep.mubr.bf16.mxu1 %v3874_v10  ;;  %1339 = vmatprep.mubr.bf16.mxu0 %v4036_v46 }
  0xf8   : > { %1066 = vmatmul.mubr.bf16.gmra.mrb[100].mxu1 %v3908_v28  ;;  %1340 = vmatmul.mubr.bf16.gmra.mrb[100].mxu0 %v4082_v18 }
  0xf9   : > { %1073 = vmatprep.mubr.bf16.mxu1 %v3912_v33  ;;  %1347 = vmatprep.mubr.bf16.mxu0 %v4092_v22 }
 0x100   : > { %1074 = vmatmul.mubr.bf16.gmra.mrb[104].mxu1 %v3946_v51  ;;  %1348 = vmatmul.mubr.bf16.gmra.mrb[104].mxu0 %v4126_v57 }
 0x101   : > { %1081 = vmatprep.mubr.bf16.mxu1 %v3953_v55  ;;  %1355 = vmatprep.mubr.bf16.mxu0 %v4136_v61 }
 0x103   : > { %v2838_v30 = vpop.f32.mrb[0].mxu1  ;;  %v2766_v4 = vpop.f32.mrb[0].mxu0 }
 0x104   : > { %v2839_v7 = vpop.f32.mrb[1].mxu1  ;;  %v2767_v27 = vpop.f32.mrb[1].mxu0 }
 0x105   : > { %v4470_v29 = vadd.f32 %v2839_v7, %v2838_v30  ;;  %v2841_v50 = vpop.f32.mrb[2].mxu1  ;;  %v4472_v52 = vadd.f32 %v2767_v27, %v2766_v4  ;;  %v2769_v11 = vpop.f32.mrb[2].mxu0 }
 0x106   : > { %v2842_v13 = vpop.f32.mrb[3].mxu1  ;;  %v2770_v43 = vpop.f32.mrb[3].mxu0 }
 0x107   : > { %v4474_v46 = vadd.f32 %v2842_v13, %v2841_v50  ;;  %v4476_v18 = vadd.f32 %v2770_v43, %v2769_v11 }
 0x108   : > { %1082 = vmatmul.mubr.bf16.gmra.mrb[108].mxu1 %v3984_v12  ;;  %1356 = vmatmul.mubr.bf16.gmra.mrb[108].mxu0 %v4170_v35 }
 0x109   : > { %3430 = vmatprep.mubr.bf16.mxu1 %v3988_v15  ;;  %1363 = vmatprep.mubr.bf16.mxu0 %v4180_v39 }
 0x10b   : > { %v2844_v22 = vpop.f32.mrb[4].mxu1  ;;  %v2772_v57 = vpop.f32.mrb[4].mxu0 }
 0x10c   : > { %v2845_v61 = vpop.f32.mrb[5].mxu1  ;;  %v2773_v32 = vpop.f32.mrb[5].mxu0 }
 0x10d   : > { %v4482_v53 = vadd.f32 %v2845_v61, %v2844_v22  ;;  %v2847_v54 = vpop.f32.mrb[6].mxu1  ;;  %v2774_v56 = vadd.f32 %v2773_v32, %v2772_v57  ;;  %v2775_v16 = vpop.f32.mrb[6].mxu0 }
 0x10e   : > { %v2848_v59 = vpop.f32.mrb[7].mxu1  ;;  %v2776_v60 = vpop.f32.mrb[7].mxu0 }
 0x10f   : > { %v4484_v14 = vadd.f32 %v2848_v59, %v2847_v54  ;;  %v2777_v17 = vadd.f32 %v2776_v60, %v2775_v16 }
 0x110   : > { %3431 = vmatmul.mubr.bf16.vlgmr.msra.gmra.mrb[112].mxu1 %v4034_v44  ;;  %1364 = vmatmul.mubr.bf16.gmra.mrb[112].mxu0 %v4202_v2 }
 0x111   : > { %3434 = vmatprep.mubr.bf16.mxu1 %v4044_v49  ;;  %1371 = vmatprep.mubr.bf16.mxu0 %v4206_v6 }
 0x113   : > { %v2850_v15 = vpop.f32.mrb[8].mxu1  ;;  %v2778_v35 = vpop.f32.mrb[8].mxu0 }
 0x114   : > { %v2851_v39 = vpop.f32.mrb[9].mxu1  ;;  %v2779_v20 = vpop.f32.mrb[9].mxu0 }
 0x115   : > { %v4490_v21 = vadd.f32 %v2851_v39, %v2850_v15  ;;  %v2853_v26 = vpop.f32.mrb[10].mxu1  ;;  %v2780_v34 = vadd.f32 %v2779_v20, %v2778_v35  ;;  %v2781_v45 = vpop.f32.mrb[10].mxu0 }
 0x116   : > { %v2854_v47 = vpop.f32.mrb[11].mxu1  ;;  %v2782_v48 = vpop.f32.mrb[11].mxu0 }
 0x117   : > { %v4492_v30 = vadd.f32 %v2854_v47, %v2853_v26  ;;  %v2783_v44 = vadd.f32 %v2782_v48, %v2781_v45 }
 0x118   : > { %3435 = vmatmul.mubr.bf16.gmra.mrb[116].mxu1 %v4084_v19  ;;  %1372 = vmatmul.mubr.bf16.gmra.mrb[116].mxu0 %v4228_v37 }
 0x119   : > { %3438 = vmatprep.mubr.bf16.mxu1 %v4094_v23  ;;  %1379 = vmatprep.mubr.bf16.mxu0 %v4232_v41 }
 0x11b   : > { %v2856_v49 = vpop.f32.mrb[12].mxu1  ;;  %v2784_v2 = vpop.f32.mrb[12].mxu0 }
 0x11c   : > { %v2857_v6 = vpop.f32.mrb[13].mxu1  ;;  %v2785_v4 = vpop.f32.mrb[13].mxu0 }
 0x11d   : > { %v4498_v7 = vadd.f32 %v2857_v6, %v2856_v49  ;;  %v2859_v27 = vpop.f32.mrb[14].mxu1  ;;  %v2786_v50 = vadd.f32 %v2785_v4, %v2784_v2  ;;  %v2787_v11 = vpop.f32.mrb[14].mxu0 }
 0x11e   : > { %v2860_v13 = vpop.f32.mrb[15].mxu1  ;;  %v2788_v43 = vpop.f32.mrb[15].mxu0 }
 0x11f   : > { %v4500_v22 = vadd.f32 %v2860_v13, %v2859_v27  ;;  %v2789_v19 = vadd.f32 %v2788_v43, %v2787_v11 }
 0x120   : > { %3439 = vmatmul.mubr.bf16.gmra.mrb[120].mxu1 %v4128_v58  ;;  %1380 = vmatmul.mubr.bf16.gmra.mrb[120].mxu0 %v4248_v63 }
 0x121   : > { %3442 = vmatprep.mubr.bf16.mxu1 %v4138_v62  ;;  %1387 = vmatprep.mubr.bf16.mxu0 %v4252_v1 }
 0x123   : > { %v3336_v23 = vpop.f32.mrb[16].mxu1  ;;  %v2790_v37 = vpop.f32.mrb[16].mxu0 }
 0x124   : > { %v763_v41 = vadd.f32 %v3336_v23, %v2774_v56  ;;  %v754_v57 = vpop.f32.mrb[17].mxu1  ;;  %v2791_v61 = vpop.f32.mrb[17].mxu0 }
 0x125   : > { %v755_v32 = vadd.f32 %v4472_v52, %v754_v57  ;;  %v3337_v54 = vpop.f32.mrb[18].mxu1  ;;  %v2792_v16 = vadd.f32 %v2791_v61, %v2790_v37  ;;  %v2793_v59 = vpop.f32.mrb[18].mxu0 }
 0x126   : > { %v766_v60 = vadd.f32 %v3337_v54, %v2777_v17  ;;  %v757_v15 = vpop.f32.mrb[19].mxu1  ;;  %v2794_v35 = vpop.f32.mrb[19].mxu0  ;;  %v883_v39 = vmul.f32 0.07362223, %v763_v41 }
 0x127   : > { %v758_v58 = vadd.f32 %v4476_v18, %v757_v15  ;;  %v2795_v63 = vadd.f32 %v2794_v35, %v2793_v59  ;;  %v881_v1 = vmul.f32 0.07362223, %v755_v32 }
 0x128   : > { %v884_v62 = vmul.f32 0.07362223, %v766_v60  ;;  %3443 = vmatmul.mubr.bf16.gmra.mrb[124].mxu1 %v4172_v36  ;;  %1388 = vmatmul.mubr.bf16.gmra.mrb[124].mxu0 %v4264_v24 }
 0x129   : > { %v882_v56 = vmul.f32 0.07362223, %v758_v58  ;;  %3446 = vmatprep.mubr.bf16.mxu1 %v4182_v40  ;;  %1395 = vmatprep.mubr.bf16.mxu0 %v3796_v31 }
 0x12a   : > { %v4512_v52 = vpack.c.bf16 %v884_v62, %v883_v39 }
 0x12b   : > { %v4514_v17 = vpack.c.bf16 %v882_v56, %v881_v1  ;;  %v3340_v20 = vpop.f32.mrb[20].mxu1  ;;  %v2796_v26 = vpop.f32.mrb[20].mxu0 }
 0x12c   : > { %v779_v18 = vadd.f32 %v3340_v20, %v2786_v50  ;;  %v770_v45 = vpop.f32.mrb[21].mxu1  ;;  %v2797_v47 = vpop.f32.mrb[21].mxu0 }
 0x12d   : > { %v771_v48 = vadd.f32 %v2780_v34, %v770_v45  ;;  %v3341_v49 = vpop.f32.mrb[22].mxu1  ;;  %v2798_v36 = vadd.f32 %v2797_v47, %v2796_v26  ;;  %v2799_v2 = vpop.f32.mrb[22].mxu0 }
 0x12e   : > { %v782_v24 = vadd.f32 %v3341_v49, %v2789_v19  ;;  %v773_v6 = vpop.f32.mrb[23].mxu1  ;;  %v2800_v4 = vpop.f32.mrb[23].mxu0  ;;  %v887_v11 = vmul.f32 0.07362223, %v779_v18 }
 0x12f   : > { %v774_v27 = vadd.f32 %v2783_v44, %v773_v6  ;;  %v2801_v40 = vadd.f32 %v2800_v4, %v2799_v2  ;;  %v885_v13 = vmul.f32 0.07362223, %v771_v48 }
 0x130   : > { %v888_v31 = vmul.f32 0.07362223, %v782_v24  ;;  %3447 = vmatmul.mubr.bf16.gmra.mrb[128].mxu1 %v4204_v3  ;;  %1396 = vmatmul.mubr.bf16.gmra.mrb[128].mxu0 %v3867_v5 }
 0x131   : > { %v886_v43 = vmul.f32 0.07362223, %v774_v27  ;;  %3450 = vmatprep.mubr.bf16.mxu1 %v4208_v8  ;;  %1403 = vmatprep.mubr.bf16.mxu0 %v3874_v10 }
 0x132   : > { %v4520_v34 = vpack.c.bf16 %v888_v31, %v887_v11 }
 0x133   : > { %v4522_v50 = vpack.c.bf16 %v886_v43, %v885_v13  ;;  %v3344_v19 = vpop.f32.mrb[24].mxu1  ;;  %v2802_v23 = vpop.f32.mrb[24].mxu0 }
 0x134   : > { %v795_v44 = vadd.f32 %v3344_v19, %v2798_v36  ;;  %v786_v37 = vpop.f32.mrb[25].mxu1  ;;  %v2803_v41 = vpop.f32.mrb[25].mxu0 }
 0x135   : > { %v787_v57 = vadd.f32 %v2792_v16, %v786_v37  ;;  %v3345_v61 = vpop.f32.mrb[26].mxu1  ;;  %v2804_v3 = vadd.f32 %v2803_v41, %v2802_v23  ;;  %v2805_v32 = vpop.f32.mrb[26].mxu0 }
 0x136   : > { %v798_v5 = vadd.f32 %v3345_v61, %v2801_v40  ;;  %v789_v54 = vpop.f32.mrb[27].mxu1  ;;  %v2806_v59 = vpop.f32.mrb[27].mxu0  ;;  %v891_v15 = vmul.f32 0.07362223, %v795_v44 }
 0x137   : > { %v790_v60 = vadd.f32 %v2795_v63, %v789_v54  ;;  %v2807_v8 = vadd.f32 %v2806_v59, %v2805_v32  ;;  %v889_v35 = vmul.f32 0.07362223, %v787_v57 }
 0x138   : > { %v892_v10 = vmul.f32 0.07362223, %v798_v5  ;;  %3451 = vmatmul.mubr.bf16.gmra.mrb[132].mxu1 %v4230_v38  ;;  %1404 = vmatmul.mubr.bf16.gmra.mrb[132].mxu0 %v3908_v28 }
 0x139   : > { %v890_v58 = vmul.f32 0.07362223, %v790_v60  ;;  %3454 = vmatprep.mubr.bf16.mxu1 %v4234_v42  ;;  %1411 = vmatprep.mubr.bf16.mxu0 %v3912_v33 }
 0x13a   : > { %v4528_v16 = vpack.c.bf16 %v892_v10, %v891_v15 }
 0x13b   : > { %v4530_v39 = vpack.c.bf16 %v890_v58, %v889_v35  ;;  %v2808_v62 = vpop.f32.mrb[28].mxu0  ;;  %v3348_v1 = vpop.f32.mrb[28].mxu1 }
 0x13c   : > { %v2809_v63 = vpop.f32.mrb[29].mxu0  ;;  %v802_v56 = vpop.f32.mrb[29].mxu1 }
 0x13d   : > { %v2810_v20 = vadd.f32 %v2809_v63, %v2808_v62  ;;  %v803_v26 = vadd.f32 %v2804_v3, %v802_v56  ;;  %v2811_v18 = vpop.f32.mrb[30].mxu0  ;;  %v3349_v38 = vpop.f32.mrb[30].mxu1 }
 0x13e   : > { %v2812_v45 = vpop.f32.mrb[31].mxu0  ;;  %v805_v28 = vpop.f32.mrb[31].mxu1 }
 0x13f   : > { %v811_v47 = vadd.f32 %v3348_v1, %v2810_v20  ;;  %v2813_v48 = vadd.f32 %v2812_v45, %v2811_v18  ;;  %v806_v49 = vadd.f32 %v2807_v8, %v805_v28  ;;  %v893_v33 = vmul.f32 0.07362223, %v803_v26 }
 0x140   : > { %3455 = vmatmul.mubr.bf16.gmra.mrb[136].mxu1 %v4250_v0  ;;  %1412 = vmatmul.mubr.bf16.gmra.mrb[136].mxu0 %v3946_v51 }
 0x141   : > { %v814_v42 = vadd.f32 %v3349_v38, %v2813_v48  ;;  %v894_v36 = vmul.f32 0.07362223, %v806_v49  ;;  %3458 = vmatprep.mubr.bf16.mxu1 %v4254_v9  ;;  %1419 = vmatprep.mubr.bf16.mxu0 %v3953_v55  ;;  %v895_v2 = vmul.f32 0.07362223, %v811_v47 }
 0x143   : > { %v896_v24 = vmul.f32 0.07362223, %v814_v42  ;;  %v4536_v6 = vpack.c.bf16 %v894_v36, %v893_v33  ;;  %v2814_v4 = vpop.f32.mrb[32].mxu0  ;;  %v3352_v27 = vpop.f32.mrb[32].mxu1 }
 0x144   : > { %v2815_v40 = vpop.f32.mrb[33].mxu0  ;;  %v818_v11 = vpop.f32.mrb[33].mxu1 }
 0x145   : > { %v4538_v31 = vpack.c.bf16 %v896_v24, %v895_v2  ;;  %v2816_v0 = vadd.f32 %v2815_v40, %v2814_v4  ;;  %v2817_v13 = vpop.f32.mrb[34].mxu0  ;;  %v3353_v51 = vpop.f32.mrb[34].mxu1 }
 0x146   : > { %v2818_v43 = vpop.f32.mrb[35].mxu0  ;;  %v821_v19 = vpop.f32.mrb[35].mxu1 }
 0x147   : > { %v819_v23 = vadd.f32 %v2816_v0, %v818_v11  ;;  %v2819_v9 = vadd.f32 %v2818_v43, %v2817_v13 }
 0x148   : > { %3459 = vmatmul.mubr.bf16.gmra.mrb[140].mxu1 %v4266_v25  ;;  %1420 = vmatmul.mubr.bf16.gmra.mrb[140].mxu0 %v3984_v12 }
 0x149   : > { %v822_v55 = vadd.f32 %v2819_v9, %v821_v19  ;;  %3174 = vmatprep.mubr.msk.bf16.mxu1 %vm1605_vm0, %v4514_v17  ;;  %v897_v44 = vmul.f32 0.07362223, %v819_v23 }
 0x14b   : > { %v898_v37 = vmul.f32 0.07362223, %v822_v55  ;;  %v2820_v41 = vpop.f32.mrb[36].mxu0  ;;  %v3356_v57 = vpop.f32.mrb[36].mxu1 }
 0x14c   : > { %v2821_v61 = vpop.f32.mrb[37].mxu0  ;;  %v834_v3 = vpop.f32.mrb[37].mxu1 }
 0x14d   : > { %v4544_v32 = vpack.c.bf16 %v898_v37, %v897_v44  ;;  %v2822_v5 = vadd.f32 %v2821_v61, %v2820_v41  ;;  %v2823_v54 = vpop.f32.mrb[38].mxu0  ;;  %v3357_v59 = vpop.f32.mrb[38].mxu1 }
 0x14e   : > { %v2824_v60 = vpop.f32.mrb[39].mxu0  ;;  %v837_v8 = vpop.f32.mrb[39].mxu1 }
 0x14f   : > { %v827_v25 = vadd.f32 %v3352_v27, %v2822_v5  ;;  %v2825_v15 = vadd.f32 %v2824_v60, %v2823_v54 }
 0x151   : > { %v830_v12 = vadd.f32 %v3353_v51, %v2825_v15  ;;  %v899_v10 = vmul.f32 0.07362223, %v827_v25 }
 0x153   : > { %v900_v35 = vmul.f32 0.07362223, %v830_v12  ;;  %v2826_v58 = vpop.f32.mrb[40].mxu0  ;;  %v3360_v62 = vpop.f32.mrb[40].mxu1 }
 0x154   : > { %v859_v1 = vadd.f32 %v3360_v62, %v4482_v53  ;;  %v2827_v63 = vpop.f32.mrb[41].mxu0  ;;  %v850_v56 = vpop.f32.mrb[41].mxu1 }
 0x155   : > { %v4547_v20 = vpack.c.bf16 %v900_v35, %v899_v10  ;;  %v2828_v26 = vadd.f32 %v2827_v63, %v2826_v58  ;;  %v851_v18 = vadd.f32 %v4470_v29, %v850_v56  ;;  %v2829_v38 = vpop.f32.mrb[42].mxu0  ;;  %v3361_v45 = vpop.f32.mrb[42].mxu1 }
 0x156   : > { %v862_v28 = vadd.f32 %v3361_v45, %v4484_v14  ;;  %v2830_v47 = vpop.f32.mrb[43].mxu0  ;;  %v853_v48 = vpop.f32.mrb[43].mxu1  ;;  %v907_v36 = vmul.f32 0.07362223, %v859_v1 }
 0x157   : > { %v835_v49 = vadd.f32 %v2828_v26, %v834_v3  ;;  %v2831_v33 = vadd.f32 %v2830_v47, %v2829_v38  ;;  %v854_v42 = vadd.f32 %v4474_v46, %v853_v48  ;;  %v905_v53 = vmul.f32 0.07362223, %v851_v18 }
 0x158   : > { %v908_v2 = vmul.f32 0.07362223, %v862_v28 }
 0x159   : > { %v838_v24 = vadd.f32 %v2831_v33, %v837_v8  ;;  %v906_v4 = vmul.f32 0.07362223, %v854_v42  ;;  %v901_v40 = vmul.f32 0.07362223, %v835_v49 }
 0x15a   : > { %v4552_v27 = vpack.c.bf16 %v908_v2, %v907_v36 }
 0x15b   : > { %v902_v11 = vmul.f32 0.07362223, %v838_v24  ;;  %v4554_v29 = vpack.c.bf16 %v906_v4, %v905_v53  ;;  %v2832_v0 = vpop.f32.mrb[44].mxu0  ;;  %v3364_v13 = vpop.f32.mrb[44].mxu1 }
 0x15c   : > { %5173 = vst [vmem:[#allocation2_spill] sm:$0xff] %v4552_v27  ;;  %v875_v14 = vadd.f32 %v3364_v13, %v4498_v7  ;;  %v2833_v51 = vpop.f32.mrb[45].mxu0  ;;  %v866_v43 = vpop.f32.mrb[45].mxu1 }
 0x15d   : > { %v4557_v19 = vpack.c.bf16 %v902_v11, %v901_v40  ;;  %v2834_v46 = vadd.f32 %v2833_v51, %v2832_v0  ;;  %v867_v23 = vadd.f32 %v4490_v21, %v866_v43  ;;  %v2835_v9 = vpop.f32.mrb[46].mxu0  ;;  %v3365_v55 = vpop.f32.mrb[46].mxu1 }
 0x15e   : > { %v878_v44 = vadd.f32 %v3365_v55, %v4500_v22  ;;  %v2836_v37 = vpop.f32.mrb[47].mxu0  ;;  %v869_v41 = vpop.f32.mrb[47].mxu1  ;;  %v911_v54 = vmul.f32 0.07362223, %v875_v14 }
 0x15f   : > { %v843_v61 = vadd.f32 %v3356_v57, %v2834_v46  ;;  %v2837_v3 = vadd.f32 %v2836_v37, %v2835_v9  ;;  %v870_v5 = vadd.f32 %v4492_v30, %v869_v41  ;;  %v909_v7 = vmul.f32 0.07362223, %v867_v23 }
 0x160   : > { %v912_v60 = vmul.f32 0.07362223, %v878_v44 }
 0x161   : > { %v846_v8 = vadd.f32 %v3357_v59, %v2837_v3  ;;  %v910_v25 = vmul.f32 0.07362223, %v870_v5  ;;  %v903_v12 = vmul.f32 0.07362223, %v843_v61 }
 0x162   : > { %v4562_v15 = vpack.c.bf16 %v912_v60, %v911_v54 }
 0x163   : > { %v904_v10 = vmul.f32 0.07362223, %v846_v8  ;;  %v4564_v21 = vpack.c.bf16 %v910_v25, %v909_v7  ;;  %v2902_v35 = vpop.f32.mrb[48].mxu1  ;;  %v3384_v58 = vpop.f32.mrb[48].mxu0 }
 0x164   : > { %5174 = vst [vmem:[#allocation3_spill] sm:$0xff] %v4562_v15  ;;  %v2903_v22 = vpop.f32.mrb[49].mxu1  ;;  %v1124_v62 = vpop.f32.mrb[49].mxu0 }
 0x165   : > { %5175 = vst [vmem:[#allocation4_spill] sm:$0xff] %v4564_v21  ;;  %v4566_v1 = vpack.c.bf16 %v904_v10, %v903_v12  ;;  %v2904_v57 = vadd.f32 %v2903_v22, %v2902_v35  ;;  %v2905_v63 = vpop.f32.mrb[50].mxu1  ;;  %v3385_v30 = vpop.f32.mrb[50].mxu0 }
 0x166   : > { %v2906_v56 = vpop.f32.mrb[51].mxu1  ;;  %v1127_v26 = vpop.f32.mrb[51].mxu0 }
 0x167   : > { %v2907_v18 = vadd.f32 %v2906_v56, %v2905_v63  ;;  %v4568_v59 = vadd.f32 %v2904_v57, %v1124_v62 }
 0x169   : > { %v4570_v38 = vadd.f32 %v2907_v18, %v1127_v26 }
 0x16b   : > { %v2908_v28 = vpop.f32.mrb[52].mxu1  ;;  %v3388_v47 = vpop.f32.mrb[52].mxu0 }
 0x16c   : > { %v2909_v48 = vpop.f32.mrb[53].mxu1  ;;  %v1140_v49 = vpop.f32.mrb[53].mxu0 }
 0x16d   : > { %v2910_v33 = vadd.f32 %v2909_v48, %v2908_v28  ;;  %v2911_v42 = vpop.f32.mrb[54].mxu1  ;;  %v3389_v36 = vpop.f32.mrb[54].mxu0 }
 0x16e   : > { %v2912_v2 = vpop.f32.mrb[55].mxu1  ;;  %v1143_v53 = vpop.f32.mrb[55].mxu0 }
 0x16f   : > { %v4574_v24 = vadd.f32 %v3384_v58, %v2910_v33  ;;  %v2913_v4 = vadd.f32 %v2912_v2, %v2911_v42 }
 0x171   : > { %v4576_v40 = vadd.f32 %v3385_v30, %v2913_v4 }
 0x173   : > { %v2914_v0 = vpop.f32.mrb[56].mxu1  ;;  %v3392_v13 = vpop.f32.mrb[56].mxu0 }
 0x174   : > { %v2915_v14 = vpop.f32.mrb[57].mxu1  ;;  %v1156_v51 = vpop.f32.mrb[57].mxu0 }
 0x175   : > { %v2916_v43 = vadd.f32 %v2915_v14, %v2914_v0  ;;  %v2917_v46 = vpop.f32.mrb[58].mxu1  ;;  %v3393_v23 = vpop.f32.mrb[58].mxu0 }
 0x176   : > { %v2918_v9 = vpop.f32.mrb[59].mxu1  ;;  %v1159_v55 = vpop.f32.mrb[59].mxu0 }
 0x177   : > { %v2919_v44 = vadd.f32 %v2918_v9, %v2917_v46  ;;  %v4580_v37 = vadd.f32 %v2916_v43, %v1140_v49 }
 0x179   : > { %v4582_v41 = vadd.f32 %v2919_v44, %v1143_v53 }
 0x17b   : > { %v2920_v3 = vpop.f32.mrb[60].mxu1  ;;  %v3396_v5 = vpop.f32.mrb[60].mxu0 }
 0x17c   : > { %v2921_v54 = vpop.f32.mrb[61].mxu1  ;;  %v1172_v60 = vpop.f32.mrb[61].mxu0 }
 0x17d   : > { %v2922_v7 = vadd.f32 %v2921_v54, %v2920_v3  ;;  %v2923_v8 = vpop.f32.mrb[62].mxu1  ;;  %v3397_v25 = vpop.f32.mrb[62].mxu0 }
 0x17e   : > { %v2924_v12 = vpop.f32.mrb[63].mxu1  ;;  %v1175_v10 = vpop.f32.mrb[63].mxu0 }
 0x17f   : > { %v4586_v35 = vadd.f32 %v3388_v47, %v2922_v7  ;;  %v2925_v58 = vadd.f32 %v2924_v12, %v2923_v8 }
 0x181   : > { %v4588_v22 = vadd.f32 %v3389_v36, %v2925_v58 }
 0x183   : > { %v2926_v57 = vpop.f32.mrb[64].mxu1  ;;  %v4592_v63 = vpop.f32.mrb[64].mxu0 }
 0x184   : > { %v2927_v30 = vpop.f32.mrb[65].mxu1  ;;  %v1188_v56 = vpop.f32.mrb[65].mxu0 }
 0x185   : > { %v2928_v26 = vadd.f32 %v2927_v30, %v2926_v57  ;;  %v2929_v18 = vpop.f32.mrb[66].mxu1  ;;  %v4594_v28 = vpop.f32.mrb[66].mxu0 }
 0x186   : > { %v2930_v48 = vpop.f32.mrb[67].mxu1  ;;  %v1191_v49 = vpop.f32.mrb[67].mxu0 }
 0x187   : > { %v2931_v33 = vadd.f32 %v2930_v48, %v2929_v18  ;;  %v4596_v47 = vadd.f32 %v2928_v26, %v1156_v51 }
 0x189   : > { %v4598_v42 = vadd.f32 %v2931_v33, %v1159_v55 }
 0x18b   : > { %v2932_v2 = vpop.f32.mrb[68].mxu1  ;;  %v4602_v53 = vpop.f32.mrb[68].mxu0 }
 0x18c   : > { %v2933_v4 = vpop.f32.mrb[69].mxu1  ;;  %v4604_v0 = vpop.f32.mrb[69].mxu0 }
 0x18d   : > { %v2934_v14 = vadd.f32 %v2933_v4, %v2932_v2  ;;  %v2935_v43 = vpop.f32.mrb[70].mxu1  ;;  %v4606_v46 = vpop.f32.mrb[70].mxu0 }
 0x18e   : > { %v2936_v9 = vpop.f32.mrb[71].mxu1  ;;  %v1207_v44 = vpop.f32.mrb[71].mxu0 }
 0x18f   : > { %v4608_v3 = vadd.f32 %v3392_v13, %v2934_v14  ;;  %v2937_v51 = vadd.f32 %v2936_v9, %v2935_v43 }
 0x191   : > { %v4610_v55 = vadd.f32 %v3393_v23, %v2937_v51 }
 0x193   : > { %v2938_v7 = vpop.f32.mrb[72].mxu1  ;;  %v4614_v8 = vpop.f32.mrb[72].mxu0 }
 0x194   : > { %v2939_v12 = vpop.f32.mrb[73].mxu1  ;;  %v4616_v58 = vpop.f32.mrb[73].mxu0 }
 0x195   : > { %v2940_v57 = vadd.f32 %v2939_v12, %v2938_v7  ;;  %v2941_v30 = vpop.f32.mrb[74].mxu1  ;;  %v4618_v26 = vpop.f32.mrb[74].mxu0 }
 0x196   : > { %v2942_v18 = vpop.f32.mrb[75].mxu1  ;;  %v4620_v48 = vpop.f32.mrb[75].mxu0 }
 0x197   : > { %v2943_v13 = vadd.f32 %v2942_v18, %v2941_v30  ;;  %v4622_v33 = vadd.f32 %v2940_v57, %v1172_v60 }
 0x199   : > { %v4624_v23 = vadd.f32 %v2943_v13, %v1175_v10 }
 0x19b   : > { %v2944_v4 = vpop.f32.mrb[76].mxu1  ;;  %v4628_v14 = vpop.f32.mrb[76].mxu0 }
 0x19c   : > { %v2945_v43 = vpop.f32.mrb[77].mxu1  ;;  %v4630_v9 = vpop.f32.mrb[77].mxu0 }
 0x19d   : > { %v2946_v51 = vadd.f32 %v2945_v43, %v2944_v4  ;;  %v2947_v7 = vpop.f32.mrb[78].mxu1  ;;  %v4632_v12 = vpop.f32.mrb[78].mxu0 }
 0x19e   : > { %v2948_v54 = vpop.f32.mrb[79].mxu1  ;;  %v4634_v36 = vpop.f32.mrb[79].mxu0 }
 0x19f   : > { %v4636_v60 = vadd.f32 %v3396_v5, %v2946_v51  ;;  %v2949_v10 = vadd.f32 %v2948_v54, %v2947_v7 }
 0x1a1   : > { %v4638_v57 = vadd.f32 %v3397_v25, %v2949_v10  ;;  %v5176_v25 = vpack.c.bf16 %v4570_v38, %v4568_v59 }
 0x1a3   : > { %v1258_v30 = vpack.c.bf16 %v4638_v57, %v4636_v60  ;;  %v2950_v18 = vpop.f32.mrb[80].mxu1  ;;  %v1655_v54 = vsel %vm1605_vm0, %v5176_v25, 0 }
 0x1a4   : > { %v2951_v13 = vpop.f32.mrb[81].mxu1 }
 0x1a5   : > { %v2952_v2 = vadd.f32 %v2951_v13, %v2950_v18  ;;  %v2953_v62 = vpop.f32.mrb[82].mxu1 }
 0x1a6   : > { %v2954_v61 = vpop.f32.mrb[83].mxu1 }
 0x1a7   : > { %v1189_v4 = vadd.f32 %v2952_v2, %v1188_v56  ;;  %v2955_v43 = vadd.f32 %v2954_v61, %v2953_v62 }
 0x1a9   : > { %v1192_v11 = vadd.f32 %v2955_v43, %v1191_v49  ;;  %v5178_v43 = vpack.c.bf16 %v4582_v41, %v4580_v37 }
 0x1ab   : > { %v1259_v45 = vpack.c.bf16 %v1192_v11, %v1189_v4  ;;  %v2956_v15 = vpop.f32.mrb[84].mxu1 }
 0x1ac   : > { %v2957_v21 = vpop.f32.mrb[85].mxu1 }
 0x1ad   : > { %v2958_v27 = vadd.f32 %v2957_v21, %v2956_v15  ;;  %v2959_v5 = vpop.f32.mrb[86].mxu1  ;;  %3478 = vmatprep.subr.msk.bf16.mxu1 %vm1605_vm0, %v1259_v45  ;;  %v5177_v21 = vpack.c.bf16 %v4576_v40, %v4574_v24  ;;  %v1661_v24 = vsel %vm1605_vm0, %v5178_v43, 0 }
 0x1ae   : > { %v2960_v51 = vpop.f32.mrb[87].mxu1  ;;  %3159 = vmatpush3.bf16.xpose.msra.mxu1 %v1655_v54 }
 0x1af   : > { %v1197_v7 = vadd.f32 %v4592_v63, %v2958_v27  ;;  %v2961_v10 = vadd.f32 %v2960_v51, %v2959_v5  ;;  %v1658_v59 = vsel %vm1605_vm0, %v5177_v21, 0 }
 0x1b1   : > { %v1200_v61 = vadd.f32 %v4594_v28, %v2961_v10 }
 0x1b3   : > { %v1260_v62 = vpack.c.bf16 %v1200_v61, %v1197_v7  ;;  %v2962_v11 = vpop.f32.mrb[88].mxu1  ;;  %v5179_v61 = vpack.c.bf16 %v4588_v22, %v4586_v35 }
 0x1b4   : > { %v2963_v56 = vpop.f32.mrb[89].mxu1 }
 0x1b5   : > { %v2964_v49 = vadd.f32 %v2963_v56, %v2962_v11  ;;  %v2965_v15 = vpop.f32.mrb[90].mxu1  ;;  %3479 = vmatprep.subr.msk.bf16.mxu1 %vm1605_vm0, %v1260_v62  ;;  %v1664_v37 = vsel %vm1605_vm0, %v5179_v61, 0 }
 0x1b6   : > { %v2966_v38 = vpop.f32.mrb[91].mxu1  ;;  %3161 = vmatpush3.bf16.xpose.msra.mxu1 %v1658_v59  ;;  %v5180_v59 = vpack.c.bf16 %v4598_v42, %v4596_v47 }
 0x1b7   : > { %v1205_v45 = vadd.f32 %v2964_v49, %v4604_v0  ;;  %v2967_v27 = vadd.f32 %v2966_v38, %v2965_v15 }
 0x1b8   : > { %v1667_v35 = vsel %vm1605_vm0, %v5180_v59, 0 }
 0x1b9   : > { %v1208_v63 = vadd.f32 %v2967_v27, %v1207_v44 }
 0x1bb   : > { %v1261_v2 = vpack.c.bf16 %v1208_v63, %v1205_v45  ;;  %v2968_v28 = vpop.f32.mrb[92].mxu1 }
 0x1bc   : > { %v2969_v18 = vpop.f32.mrb[93].mxu1 }
 0x1bd   : > { %v2970_v13 = vadd.f32 %v2969_v18, %v2968_v28  ;;  %v2971_v4 = vpop.f32.mrb[94].mxu1  ;;  %3480 = vmatprep.subr.msk.bf16.mxu1 %vm1605_vm0, %v1261_v2  ;;  %v5181_v18 = vpack.c.bf16 %v4610_v55, %v4608_v3 }
 0x1be   : > { %v2972_v40 = vpop.f32.mrb[95].mxu1  ;;  %3163 = vmatpush3.bf16.xpose.msra.mxu1 %v1661_v24 }
 0x1bf   : > { %v1213_v5 = vadd.f32 %v4602_v53, %v2970_v13  ;;  %v2973_v25 = vadd.f32 %v2972_v40, %v2971_v4  ;;  %v1670_v47 = vsel %vm1605_vm0, %v5181_v18, 0  ;;  %v3038_v13 = vpop.f32.mrb[80].mxu0 }
 0x1c0   : > { %v3039_v43 = vpop.f32.mrb[81].mxu0 }
 0x1c1   : > { %v1216_v0 = vadd.f32 %v4606_v46, %v2973_v25  ;;  %v3041_v24 = vpop.f32.mrb[82].mxu0 }
 0x1c3   : > { %v1262_v44 = vpack.c.bf16 %v1216_v0, %v1213_v5  ;;  %v2974_v54 = vpop.f32.mrb[96].mxu1  ;;  %v3042_v5 = vpop.f32.mrb[83].mxu0 }
 0x1c4   : > { %v2975_v51 = vpop.f32.mrb[97].mxu1  ;;  %v3043_v25 = vadd.f32 %v3042_v5, %v3041_v24  ;;  %v3044_v0 = vpop.f32.mrb[84].mxu0 }
 0x1c5   : > { %v2976_v7 = vadd.f32 %v2975_v51, %v2974_v54  ;;  %v2977_v10 = vpop.f32.mrb[98].mxu1  ;;  %3481 = vmatprep.subr.msk.bf16.mxu1 %vm1605_vm0, %v1262_v44  ;;  %v3045_v51 = vpop.f32.mrb[85].mxu0 }
 0x1c6   : > { %v2978_v41 = vpop.f32.mrb[99].mxu1  ;;  %3165 = vmatpush3.bf16.xpose.msra.mxu1 %v1664_v37  ;;  %v3046_v55 = vadd.f32 %v3045_v51, %v3044_v0 }
 0x1c7   : > { %v1221_v62 = vadd.f32 %v2976_v7, %v4616_v58  ;;  %v2979_v53 = vadd.f32 %v2978_v41, %v2977_v10  ;;  %v3047_v7 = vpop.f32.mrb[86].mxu0 }
 0x1c8   : > { %v3048_v41 = vpop.f32.mrb[87].mxu0 }
 0x1c9   : > { %v1224_v11 = vadd.f32 %v2979_v53, %v4620_v48  ;;  %v3050_v53 = vpop.f32.mrb[88].mxu0 }
 0x1cb   : > { %v1263_v46 = vpack.c.bf16 %v1224_v11, %v1221_v62  ;;  %v2980_v56 = vpop.f32.mrb[100].mxu1  ;;  %v3049_v62 = vadd.f32 %v3048_v41, %v3047_v7 }
 0x1cc   : > { %v2981_v49 = vpop.f32.mrb[101].mxu1 }
 0x1cd   : > { %v2982_v15 = vadd.f32 %v2981_v49, %v2980_v56  ;;  %v2983_v21 = vpop.f32.mrb[102].mxu1  ;;  %3482 = vmatprep.subr.msk.bf16.mxu1 %vm1605_vm0, %v1263_v46  ;;  %v3051_v56 = vpop.f32.mrb[89].mxu0 }
 0x1ce   : > { %v2984_v22 = vpop.f32.mrb[103].mxu1  ;;  %3167 = vmatpush3.bf16.xpose.msra.mxu1 %v1667_v35  ;;  %v3052_v49 = vadd.f32 %v3051_v56, %v3050_v53 }
 0x1cf   : > { %v1229_v38 = vadd.f32 %v4614_v8, %v2982_v15  ;;  %v2985_v58 = vadd.f32 %v2984_v22, %v2983_v21  ;;  %v3053_v15 = vpop.f32.mrb[90].mxu0 }
 0x1d0   : > { %v3054_v59 = vpop.f32.mrb[91].mxu0 }
 0x1d1   : > { %v1232_v45 = vadd.f32 %v4618_v26, %v2985_v58  ;;  %v3040_v26 = vadd.f32 %v3039_v43, %v3038_v13  ;;  %v3055_v35 = vadd.f32 %v3054_v59, %v3053_v15  ;;  %v3056_v22 = vpop.f32.mrb[92].mxu0 }
 0x1d3   : > { %v1264_v48 = vpack.c.bf16 %v1232_v45, %v1229_v38  ;;  %v2986_v27 = vpop.f32.mrb[104].mxu1 }
 0x1d4   : > { %v2987_v63 = vpop.f32.mrb[105].mxu1 }
 0x1d5   : > { %v2988_v2 = vadd.f32 %v2987_v63, %v2986_v27  ;;  %v2989_v28 = vpop.f32.mrb[106].mxu1  ;;  %3483 = vmatprep.subr.msk.bf16.mxu1 %vm1605_vm0, %v1264_v48 }
 0x1d6   : > { %v2990_v42 = vpop.f32.mrb[107].mxu1  ;;  %3169 = vmatpush3.bf16.xpose.msra.mxu1 %v1670_v47 }
 0x1d7   : > { %v1237_v8 = vadd.f32 %v2988_v2, %v4630_v9  ;;  %v2991_v4 = vadd.f32 %v2990_v42, %v2989_v28  ;;  %v5182_v9 = vpack.c.bf16 %v4624_v23, %v4622_v33  ;;  %v3057_v33 = vpop.f32.mrb[93].mxu0 }
 0x1d8   : > { %v3058_v23 = vadd.f32 %v3057_v33, %v3056_v22  ;;  %v3059_v58 = vpop.f32.mrb[94].mxu0 }
 0x1d9   : > { %v1240_v40 = vadd.f32 %v2991_v4, %v4634_v36  ;;  %v1673_v37 = vsel %vm1605_vm0, %v5182_v9, 0  ;;  %v3060_v45 = vpop.f32.mrb[95].mxu0 }
 0x1da   : > { %v3061_v27 = vadd.f32 %v3060_v45, %v3059_v58  ;;  %v3062_v63 = vpop.f32.mrb[96].mxu0 }
 0x1db   : > { %v1265_v44 = vpack.c.bf16 %v1240_v40, %v1237_v8  ;;  %v2992_v54 = vpop.f32.mrb[108].mxu1  ;;  %v3063_v28 = vpop.f32.mrb[97].mxu0 }
 0x1dc   : > { %v2993_v3 = vpop.f32.mrb[109].mxu1  ;;  %v3064_v42 = vadd.f32 %v3063_v28, %v3062_v63  ;;  %v3065_v13 = vpop.f32.mrb[98].mxu0 }
 0x1dd   : > { %v2994_v10 = vadd.f32 %v2993_v3, %v2992_v54  ;;  %v2995_v61 = vpop.f32.mrb[110].mxu1  ;;  %3484 = vmatprep.subr.msk.bf16.mxu1 %vm1605_vm0, %v1265_v44  ;;  %v3066_v60 = vpop.f32.mrb[99].mxu0 }
 0x1de   : > { %v2996_v36 = vpop.f32.mrb[111].mxu1  ;;  %3171 = vmatpush3.bf16.xpose.msra.mxu1 %v1673_v37  ;;  %v3068_v43 = vpop.f32.mrb[100].mxu0 }
 0x1df   : > { %v1245_v11 = vadd.f32 %v4628_v14, %v2994_v10  ;;  %v2997_v46 = vadd.f32 %v2996_v36, %v2995_v61  ;;  %v1676_v14 = vsel %vm1605_vm0, %v1258_v30, 0  ;;  %v3067_v30 = vadd.f32 %v3066_v60, %v3065_v13  ;;  %v3069_v40 = vpop.f32.mrb[101].mxu0 }
 0x1e0   : > { %v3070_v0 = vadd.f32 %v3069_v40, %v3068_v43  ;;  %v3071_v44 = vpop.f32.mrb[102].mxu0 }
 0x1e1   : > { %v1248_v21 = vadd.f32 %v4632_v12, %v2997_v46 }
 0x1e3   : > { %v1266_v38 = vpack.c.bf16 %v1248_v21, %v1245_v11  ;;  %v3432_v48 = vpop.f32.mrb[112].mxu1 }
 0x1e4   : > { %v4695_v12 = vadd.f32 %v3432_v48, %v3046_v55  ;;  %v1462_v2 = vpop.f32.mrb[113].mxu1 }
 0x1e5   : > { %3485 = vmatprep.subr.msk.bf16.mxu1 %vm1605_vm0, %v1266_v38  ;;  %v4697_v18 = vadd.f32 %v3040_v26, %v1462_v2  ;;  %v3433_v47 = vpop.f32.mrb[114].mxu1 }
 0x1e6   : > { %3173 = vmatpush3.bf16.xpose.msra.mxu1 %v1676_v14  ;;  %v4699_v8 = vadd.f32 %v3433_v47, %v3049_v62  ;;  %v1465_v4 = vpop.f32.mrb[115].mxu1 }
 0x1e7   : > { %v4701_v57 = vadd.f32 %v3043_v25, %v1465_v4  ;;  %v3072_v25 = vpop.f32.mrb[103].mxu0 }
 0x1e8   : > { %v1590_v24 = vpack.c.bf16 %v4699_v8, %v4695_v12  ;;  %v3073_v7 = vadd.f32 %v3072_v25, %v3071_v44  ;;  %v3074_v10 = vpop.f32.mrb[104].mxu0 }
 0x1e9   : > { %v1589_v5 = vpack.c.bf16 %v4701_v57, %v4697_v18  ;;  %v3075_v37 = vpop.f32.mrb[105].mxu0 }
 0x1ea   : > { %v3076_v62 = vadd.f32 %v3075_v37, %v3074_v10 }
 0x1eb   : > { %v3436_v26 = vpop.f32.mrb[116].mxu1 }
 0x1ec   : > { %v4707_v54 = vadd.f32 %v3436_v26, %v3058_v23  ;;  %v1478_v51 = vpop.f32.mrb[117].mxu1 }
 0x1ed   : > { %3175 = vmatmul.mubr.msk.bf16.vlgmr.msra.gmra.mrb[144].mxu1 %vm1605_vm0, %v4514_v17  ;;  %v4711_v3 = vadd.f32 %v3052_v49, %v1478_v51  ;;  %v3437_v55 = vpop.f32.mrb[118].mxu1  ;;  %v3077_v17 = vpop.f32.mrb[106].mxu0 }
 0x1ee   : > { %3176 = vmatprep.mubr.msk.bf16.mxu1 %vm1605_vm0, %v4512_v52  ;;  %v4715_v61 = vadd.f32 %v3437_v55, %v3061_v27  ;;  %v1481_v9 = vpop.f32.mrb[119].mxu1  ;;  %v3078_v11 = vpop.f32.mrb[107].mxu0 }
 0x1ef   : > { %v4717_v41 = vadd.f32 %v3055_v35, %v1481_v9  ;;  %v3079_v46 = vadd.f32 %v3078_v11, %v3077_v17  ;;  %v3080_v56 = vpop.f32.mrb[108].mxu0 }
 0x1f0   : > { %v1592_v36 = vpack.c.bf16 %v4715_v61, %v4707_v54  ;;  %v3081_v15 = vpop.f32.mrb[109].mxu0 }
 0x1f1   : > { %v1591_v53 = vpack.c.bf16 %v4717_v41, %v4711_v3  ;;  %v3082_v22 = vadd.f32 %v3081_v15, %v3080_v56  ;;  %v3083_v38 = vpop.f32.mrb[110].mxu0 }
 0x1f2   : > { %v3084_v23 = vpop.f32.mrb[111].mxu0 }
 0x1f3   : > { %v3440_v49 = vpop.f32.mrb[120].mxu1  ;;  %v3085_v45 = vadd.f32 %v3084_v23, %v3083_v38  ;;  %v3086_v48 = vpop.f32.mrb[112].mxu0 }
 0x1f4   : > { %v4723_v21 = vadd.f32 %v3440_v49, %v3070_v0  ;;  %v1494_v59 = vpop.f32.mrb[121].mxu1  ;;  %v3087_v63 = vpop.f32.mrb[113].mxu0 }
 0x1f5   : > { %3177 = vmatmul.mubr.msk.bf16.gmra.mrb[148].mxu1 %vm1605_vm0, %v4512_v52  ;;  %v4727_v35 = vadd.f32 %v3064_v42, %v1494_v59  ;;  %v3441_v33 = vpop.f32.mrb[122].mxu1  ;;  %v3088_v28 = vadd.f32 %v3087_v63, %v3086_v48  ;;  %v3089_v52 = vpop.f32.mrb[114].mxu0 }
 0x1f6   : > { %3178 = vmatprep.mubr.msk.bf16.mxu1 %vm1605_vm0, %v4522_v50  ;;  %v4731_v58 = vadd.f32 %v3441_v33, %v3073_v7  ;;  %v1497_v14 = vpop.f32.mrb[123].mxu1  ;;  %v3090_v42 = vpop.f32.mrb[115].mxu0 }
 0x1f7   : > { %v4733_v27 = vadd.f32 %v3067_v30, %v1497_v14  ;;  %v3091_v13 = vadd.f32 %v3090_v42, %v3089_v52  ;;  %v3092_v4 = vpop.f32.mrb[116].mxu0 }
 0x1f8   : > { %v1594_v2 = vpack.c.bf16 %v4731_v58, %v4723_v21  ;;  %v3093_v43 = vpop.f32.mrb[117].mxu0 }
 0x1f9   : > { %v1593_v47 = vpack.c.bf16 %v4733_v27, %v4727_v35  ;;  %v3094_v0 = vadd.f32 %v3093_v43, %v3092_v4  ;;  %v3095_v30 = vpop.f32.mrb[118].mxu0 }
 0x1fa   : > { %v3096_v25 = vpop.f32.mrb[119].mxu0 }
 0x1fb   : > { %v3444_v60 = vpop.f32.mrb[124].mxu1  ;;  %v3097_v10 = vadd.f32 %v3096_v25, %v3095_v30  ;;  %v3098_v9 = vpop.f32.mrb[120].mxu0 }
 0x1fc   : > { %v4739_v40 = vadd.f32 %v3444_v60, %v3082_v22  ;;  %v1510_v26 = vpop.f32.mrb[125].mxu1  ;;  %v3099_v17 = vpop.f32.mrb[121].mxu0 }
 0x1fd   : > { %3179 = vmatmul.mubr.msk.bf16.gmra.mrb[152].mxu1 %vm1605_vm0, %v4522_v50  ;;  %v4743_v44 = vadd.f32 %v3076_v62, %v1510_v26  ;;  %v3445_v51 = vpop.f32.mrb[126].mxu1  ;;  %v3100_v56 = vadd.f32 %v3099_v17, %v3098_v9  ;;  %v3101_v50 = vpop.f32.mrb[122].mxu0 }
 0x1fe   : > { %3180 = vmatprep.mubr.msk.bf16.mxu1 %vm1605_vm0, %v4520_v34  ;;  %v4747_v55 = vadd.f32 %v3445_v51, %v3085_v45  ;;  %v1513_v7 = vpop.f32.mrb[127].mxu1  ;;  %v3102_v49 = vpop.f32.mrb[123].mxu0 }
 0x1ff   : > { %v4749_v37 = vadd.f32 %v3079_v46, %v1513_v7  ;;  %v3103_v15 = vadd.f32 %v3102_v49, %v3101_v50  ;;  %v3104_v59 = vpop.f32.mrb[124].mxu0 }
 0x200   : > { %v1596_v11 = vpack.c.bf16 %v4747_v55, %v4739_v40  ;;  %v3105_v38 = vpop.f32.mrb[125].mxu0 }
 0x201   : > { %v1595_v62 = vpack.c.bf16 %v4749_v37, %v4743_v44  ;;  %v3106_v14 = vadd.f32 %v3105_v38, %v3104_v59  ;;  %v3107_v45 = vpop.f32.mrb[126].mxu0 }
 0x202   : > { %v3108_v63 = vpop.f32.mrb[127].mxu0 }
 0x203   : > { %v3448_v22 = vpop.f32.mrb[128].mxu1  ;;  %v3109_v4 = vadd.f32 %v3108_v63, %v3107_v45  ;;  %v3110_v60 = vpop.f32.mrb[128].mxu0 }
 0x204   : > { %v1526_v33 = vpop.f32.mrb[129].mxu1  ;;  %v1535_v23 = vadd.f32 %v3448_v22, %v3094_v0  ;;  %v3111_v26 = vpop.f32.mrb[129].mxu0 }
 0x205   : > { %3181 = vmatmul.mubr.msk.bf16.gmra.mrb[156].mxu1 %vm1605_vm0, %v4520_v34  ;;  %v1527_v46 = vadd.f32 %v3088_v28, %v1526_v33  ;;  %v3449_v48 = vpop.f32.mrb[130].mxu1  ;;  %v3112_v51 = vadd.f32 %v3111_v26, %v3110_v60  ;;  %v3113_v0 = vpop.f32.mrb[130].mxu0 }
 0x206   : > { %3182 = vmatprep.mubr.msk.bf16.mxu1 %vm1605_vm0, %v4530_v39  ;;  %v1529_v52 = vpop.f32.mrb[131].mxu1  ;;  %v1538_v42 = vadd.f32 %v3449_v48, %v3097_v10  ;;  %v3114_v7 = vpop.f32.mrb[131].mxu0 }
 0x207   : > { %v1530_v43 = vadd.f32 %v3091_v13, %v1529_v52  ;;  %v3115_v9 = vadd.f32 %v3114_v7, %v3113_v0 }
 0x208   : > { %v1598_v30 = vpack.c.bf16 %v1538_v42, %v1535_v23 }
 0x209   : > { %v1597_v25 = vpack.c.bf16 %v1530_v43, %v1527_v46 }
 0x20b   : > { %v3452_v17 = vpop.f32.mrb[132].mxu1  ;;  %3206 = vmatprep.subr.bf16.mxu0 %v1597_v25  ;;  %v3116_v34 = vpop.f32.mrb[132].mxu0 }
 0x20c   : > { %v1542_v28 = vpop.f32.mrb[133].mxu1  ;;  %3207 = vmatpush3.bf16.msra.mxu0 %v1589_v5  ;;  %v1551_v50 = vadd.f32 %v3452_v17, %v3106_v14  ;;  %v3117_v10 = vpop.f32.mrb[133].mxu0 }
 0x20d   : > { %3183 = vmatmul.mubr.msk.bf16.gmra.mrb[160].mxu1 %vm1605_vm0, %v4530_v39  ;;  %v1543_v13 = vadd.f32 %v3100_v56, %v1542_v28  ;;  %v3453_v49 = vpop.f32.mrb[134].mxu1  ;;  %3208 = vmatprep.subr.bf16.mxu0 %v1598_v30  ;;  %v3118_v59 = vadd.f32 %v3117_v10, %v3116_v34  ;;  %v3119_v22 = vpop.f32.mrb[134].mxu0 }
 0x20e   : > { %3184 = vmatprep.mubr.msk.bf16.mxu1 %vm1605_vm0, %v4528_v16  ;;  %v1545_v38 = vpop.f32.mrb[135].mxu1  ;;  %v1554_v33 = vadd.f32 %v3453_v49, %v3109_v4  ;;  %v3120_v23 = vpop.f32.mrb[135].mxu0 }
 0x20f   : > { %v1546_v45 = vadd.f32 %v3103_v15, %v1545_v38  ;;  %v3121_v46 = vadd.f32 %v3120_v23, %v3119_v22 }
 0x210   : > { %3209 = vmatpush3.bf16.msra.mxu0 %v1590_v24  ;;  %v1600_v18 = vpack.c.bf16 %v1554_v33, %v1551_v50 }
 0x211   : > { %v1599_v57 = vpack.c.bf16 %v1546_v45, %v1543_v13 }
 0x213   : > { %v3456_v39 = vpop.f32.mrb[136].mxu1  ;;  %3210 = vmatprep.subr.bf16.mxu0 %v1599_v57  ;;  %v3122_v5 = vpop.f32.mrb[136].mxu0 }
 0x214   : > { %v1558_v56 = vpop.f32.mrb[137].mxu1  ;;  %3211 = vmatpush3.bf16.msra.mxu0 %v1591_v53  ;;  %v1567_v14 = vadd.f32 %v3456_v39, %v3118_v59  ;;  %v3123_v48 = vpop.f32.mrb[137].mxu0 }
 0x215   : > { %3185 = vmatmul.mubr.msk.bf16.gmra.mrb[164].mxu1 %vm1605_vm0, %v4528_v16  ;;  %v1559_v15 = vadd.f32 %v3112_v51, %v1558_v56  ;;  %v3457_v63 = vpop.f32.mrb[138].mxu1  ;;  %3212 = vmatprep.subr.bf16.mxu0 %v1600_v18  ;;  %v3124_v12 = vadd.f32 %v3123_v48, %v3122_v5  ;;  %v3125_v8 = vpop.f32.mrb[138].mxu0 }
 0x216   : > { %3186 = vmatprep.mubr.msk.bf16.mxu1 %vm1605_vm0, %v4536_v6  ;;  %v1561_v24 = vpop.f32.mrb[139].mxu1  ;;  %v1570_v52 = vadd.f32 %v3457_v63, %v3121_v46  ;;  %v3126_v42 = vpop.f32.mrb[139].mxu0 }
 0x217   : > { %v1562_v4 = vadd.f32 %v3115_v9, %v1561_v24  ;;  %v3127_v60 = vadd.f32 %v3126_v42, %v3125_v8 }
 0x218   : > { %3213 = vmatpush3.bf16.msra.mxu0 %v1592_v36  ;;  %v1602_v3 = vpack.c.bf16 %v1570_v52, %v1567_v14 }
 0x219   : > { %v1601_v41 = vpack.c.bf16 %v1562_v4, %v1559_v15 }
 0x21b   : > { %v3460_v16 = vpop.f32.mrb[140].mxu1  ;;  %3214 = vmatprep.subr.bf16.mxu0 %v1601_v41  ;;  %v3128_v53 = vpop.f32.mrb[140].mxu0 }
 0x21c   : > { %v1574_v43 = vpop.f32.mrb[141].mxu1  ;;  %3215 = vmatpush3.bf16.msra.mxu0 %v1593_v47  ;;  %v3129_v26 = vpop.f32.mrb[141].mxu0 }
 0x21d   : > { %3187 = vmatmul.mubr.msk.bf16.gmra.mrb[168].mxu1 %vm1605_vm0, %v4536_v6  ;;  %v1575_v30 = vadd.f32 %v3124_v12, %v1574_v43  ;;  %v3461_v51 = vpop.f32.mrb[142].mxu1  ;;  %v3130_v0 = vadd.f32 %v3129_v26, %v3128_v53  ;;  %v3131_v25 = vpop.f32.mrb[142].mxu0  ;;  %3216 = vmatprep.subr.bf16.mxu0 %v1602_v3 }
 0x21e   : > { %3188 = vmatprep.mubr.msk.bf16.mxu1 %vm1605_vm0, %v4538_v31  ;;  %v1577_v54 = vpop.f32.mrb[143].mxu1  ;;  %v3132_v61 = vpop.f32.mrb[143].mxu0 }
 0x21f   : > { %v1583_v36 = vadd.f32 %v3460_v16, %v3130_v0  ;;  %v1578_v7 = vadd.f32 %v3127_v60, %v1577_v54  ;;  %v3133_v9 = vadd.f32 %v3132_v61, %v3131_v25 }
 0x220   : > { %3217 = vmatpush3.bf16.msra.mxu0 %v1594_v2 }
 0x221   : > { %v1603_v35 = vpack.c.bf16 %v1578_v7, %v1575_v30  ;;  %v1586_v27 = vadd.f32 %v3461_v51, %v3133_v9 }
 0x223   : > { %3218 = vmatprep.subr.bf16.mxu0 %v1603_v35  ;;  %v1604_v6 = vpack.c.bf16 %v1586_v27, %v1583_v36 }
 0x224   : > { %3219 = vmatpush3.bf16.msra.mxu0 %v1595_v62 }
 0x225   : > { %3189 = vmatmul.mubr.msk.bf16.gmra.mrb[172].mxu1 %vm1605_vm0, %v4538_v31  ;;  %3220 = vmatprep.subr.bf16.mxu0 %v1604_v6  ;;  %v5183_v31 = vld [vmem:[#allocation2_spill] sm:$0xff] }
 0x226   : > { %3190 = vmatprep.mubr.msk.bf16.mxu1 %vm1605_vm0, %v4544_v32 }
 0x228   : > { %3221 = vmatpush3.bf16.msra.mxu0 %v1596_v11 }
 0x22d   : > { %3191 = vmatmul.mubr.msk.bf16.gmra.mrb[176].mxu1 %vm1605_vm0, %v4544_v32  ;;  %v5184_v32 = vld [vmem:[#allocation4_spill] sm:$0xff] }
 0x22e   : > { %3192 = vmatprep.mubr.msk.bf16.mxu1 %vm1605_vm0, %v4547_v20 }
 0x235   : > { %3193 = vmatmul.mubr.msk.bf16.gmra.mrb[180].mxu1 %vm1605_vm0, %v4547_v20  ;;  %v5185_v20 = vld [vmem:[#allocation3_spill] sm:$0xff] }
 0x236   : > { %3194 = vmatprep.mubr.msk.bf16.mxu1 %vm1605_vm0, %v4557_v19 }
 0x23d   : > { %3195 = vmatmul.mubr.msk.bf16.gmra.mrb[184].mxu1 %vm1605_vm0, %v4557_v19  ;;  %v1895_v19 = vlaneseq }
 0x23e   : > { %3196 = vmatprep.mubr.msk.bf16.mxu1 %vm1605_vm0, %v4566_v1 }
 0x245   : > { %3197 = vmatmul.mubr.msk.bf16.gmra.mrb[188].mxu1 %vm1605_vm0, %v4566_v1  ;;  %v4831_v1 = vand.u32 127, %v1895_v19 }
 0x246   : > { %3198 = vmatprep.mubr.msk.bf16.mxu1 %vm1605_vm0, %v4554_v29 }
 0x24d   : > { %3199 = vmatmul.mubr.msk.bf16.gmra.mrb[192].mxu1 %vm1605_vm0, %v4554_v29  ;;  %v4829_v29 = vshrl.u32 %v1895_v19, 7 }
 0x24e   : > { %3200 = vmatprep.mubr.msk.bf16.mxu1 %vm1605_vm0, %v5183_v31 }
 0x24f   : > { %v1897_v21 = vadd.s32 8, %v4829_v29  ;;  %vm1931_vm1 = vcmp.ge.s32.totalorder %v4829_v29, %v4831_v1  ;;  %v1898_v55 = vadd.s32 16, %v4829_v29  ;;  %v1899_v62 = vadd.s32 24, %v4829_v29 }
 0x250   : > { %v1900_v49 = vadd.s32 32, %v4829_v29  ;;  %v1901_v38 = vadd.s32 40, %v4829_v29  ;;  %v1902_v39 = vadd.s32 48, %v4829_v29  ;;  %v1903_v48 = vadd.s32 56, %v4829_v29 }
 0x251   : > { %vm1933_vm2 = vcmp.ge.s32.totalorder %v1897_v21, %v4831_v1  ;;  %vm1935_vm3 = vcmp.ge.s32.totalorder %v1898_v55, %v4831_v1  ;;  %vm1937_vm4 = vcmp.ge.s32.totalorder %v1899_v62, %v4831_v1  ;;  %v1904_v52 = vadd.s32 64, %v4829_v29 }
 0x252   : > { %vm1939_vm5 = vcmp.ge.s32.totalorder %v1900_v49, %v4831_v1  ;;  %vm1941_vm6 = vcmp.ge.s32.totalorder %v1901_v38, %v4831_v1  ;;  %vm1943_vm7 = vcmp.ge.s32.totalorder %v1902_v39, %v4831_v1  ;;  %vm1945_vm8 = vcmp.ge.s32.totalorder %v1903_v48, %v4831_v1 }
 0x253   : > { %v1905_v3 = vadd.s32 72, %v4829_v29  ;;  %vm1947_vm9 = vcmp.ge.s32.totalorder %v1904_v52, %v4831_v1  ;;  %v1906_v30 = vadd.s32 80, %v4829_v29  ;;  %v1907_v54 = vadd.s32 88, %v4829_v29 }
 0x254   : > { %v1908_v27 = vadd.s32 96, %v4829_v29 }
 0x255   : > { %3201 = vmatmul.mubr.msk.bf16.gmra.mrb[196].mxu1 %vm1605_vm0, %v5183_v31  ;;  %vm1949_vm10 = vcmp.ge.s32.totalorder %v1905_v3, %v4831_v1  ;;  %vm1951_vm11 = vcmp.ge.s32.totalorder %v1906_v30, %v4831_v1  ;;  %vm1953_vm12 = vcmp.ge.s32.totalorder %v1907_v54, %v4831_v1 }
 0x256   : > { %3202 = vmatprep.mubr.msk.bf16.mxu1 %vm1605_vm0, %v5184_v32  ;;  %vm1955_vm13 = vcmp.ge.s32.totalorder %v1908_v27, %v4831_v1  ;;  %v1918_v27 = vadd.s32 176, %v4829_v29 }
 0x25d   : > { %3203 = vmatmul.mubr.msk.bf16.gmra.mrb[200].mxu1 %vm1605_vm0, %v5184_v32 }
 0x25e   : > { %3204 = vmatprep.mubr.msk.bf16.mxu1 %vm1605_vm0, %v5185_v20 }
 0x265   : > { %3205 = vmatmul.mubr.msk.bf16.gmra.mrb[204].mxu1 %vm1605_vm0, %v5185_v20  ;;  %v1909_v20 = vadd.s32 104, %v4829_v29 }
 0x267   : > { %vm1957_vm14 = vcmp.ge.s32.totalorder %v1909_v20, %v4831_v1  ;;  %v1919_v20 = vadd.s32 184, %v4829_v29 }
 0x2c0   : > { %v1736_v58 = vpop.f32.mrb[144].mxu1 }
 0x2c1   : > { %v4837_v2 = vsel %vm1931_vm1, %v1736_v58, -1e+30  ;;  %v1738_v47 = vpop.f32.mrb[145].mxu1 }
 0x2c2   : > { %v1740_v40 = vpop.f32.mrb[146].mxu1  ;;  %v2059_v44 = vmax.f32 %v4837_v2, -1e+30 }
 0x2c3   : > { %v4841_v37 = vsel %vm1933_vm2, %v1740_v40, -1e+30  ;;  %v1742_v11 = vpop.f32.mrb[147].mxu1 }
 0x2c4   : > { %2060 = vmax.xlane.f32.xlu0 %v2059_v44  ;;  %v2062_v17 = vmax.f32 %v4841_v37, -1e+30  ;;  %v1910_v44 = vadd.s32 112, %v4829_v29 }
 0x2c6   : > { %vm1959_vm15 = vcmp.ge.s32.totalorder %v1910_v44, %v4831_v1 }
 0x2c8   : > { %2063 = vmax.xlane.f32.xlu0 %v2062_v17  ;;  %v1746_v34 = vpop.f32.mrb[148].mxu1  ;;  %v1911_v17 = vadd.s32 120, %v4829_v29 }
 0x2c9   : > { %v4847_v28 = vsel %vm1935_vm3, %v1746_v34, -1e+30  ;;  %v1748_v50 = vpop.f32.mrb[149].mxu1 }
 0x2ca   : > { %v1750_v10 = vpop.f32.mrb[150].mxu1  ;;  %v2065_v13 = vmax.f32 %v4847_v28, -1e+30  ;;  %vm1961_vm1 = vcmp.ge.s32.totalorder %v1911_v17, %v4831_v1 }
 0x2cb   : > { %v4851_v59 = vsel %vm1937_vm4, %v1750_v10, -1e+30  ;;  %v1752_v22 = vpop.f32.mrb[151].mxu1 }
 0x2cc   : > { %2066 = vmax.xlane.f32.xlu1 %v2065_v13  ;;  %v2068_v33 = vmax.f32 %v4851_v59, -1e+30 }
 0x2d0   : > { %2069 = vmax.xlane.f32.xlu1 %v2068_v33  ;;  %v1756_v23 = vpop.f32.mrb[152].mxu1  ;;  %v1912_v33 = vadd.s32 128, %v4829_v29 }
 0x2d1   : > { %v4857_v45 = vsel %vm1939_vm5, %v1756_v23, -1e+30  ;;  %v1758_v46 = vpop.f32.mrb[153].mxu1  ;;  %v4914_v23 = vadd.s32 128, %v4831_v1 }
 0x2d2   : > { %v1760_v18 = vpop.f32.mrb[154].mxu1  ;;  %v2071_v57 = vmax.f32 %v4857_v45, -1e+30 }
 0x2d3   : > { %v4861_v5 = vsel %vm1941_vm6, %v1760_v18, -1e+30  ;;  %v1762_v56 = vpop.f32.mrb[155].mxu1  ;;  %v1913_v18 = vadd.s32 136, %v4829_v29  ;;  %vm1964_vm2 = vcmp.ge.s32.totalorder %v1912_v33, %v4914_v23 }
 0x2d4   : > { %2072 = vmax.xlane.f32.xlu0 %v2071_v57  ;;  %v2074_v14 = vmax.f32 %v4861_v5, -1e+30 }
 0x2d5   : > { %vm1966_vm3 = vcmp.ge.s32.totalorder %v1913_v18, %v4914_v23 }
 0x2d6   : > { %2075 = vmax.xlane.f32.xlu1 %v2074_v14 }
 0x2d8   : > { %v1766_v15 = vpop.f32.mrb[156].mxu1 }
 0x2d9   : > { %v4867_v63 = vsel %vm1943_vm7, %v1766_v15, -1e+30  ;;  %v1768_v12 = vpop.f32.mrb[157].mxu1  ;;  %v1914_v15 = vadd.s32 144, %v4829_v29 }
 0x2da   : > { %v1770_v8 = vpop.f32.mrb[158].mxu1  ;;  %v2077_v24 = vmax.f32 %v4867_v63, -1e+30 }
 0x2db   : > { %v4871_v42 = vsel %vm1945_vm8, %v1770_v8, -1e+30  ;;  %v1772_v4 = vpop.f32.mrb[159].mxu1  ;;  %vm1968_vm4 = vcmp.ge.s32.totalorder %v1914_v15, %v4914_v23  ;;  %vm1976_vm8 = vcmp.ge.s32.totalorder %v1918_v27, %v4914_v23  ;;  %v1923_v15 = vadd.s32 216, %v4829_v29 }
 0x2dc   : > { %2078 = vmax.xlane.f32.xlu0 %v2077_v24  ;;  %v2080_v60 = vmax.f32 %v4871_v42, -1e+30  ;;  %v1915_v24 = vadd.s32 152, %v4829_v29 }
 0x2de   : > { %2081 = vmax.xlane.f32.xlu1 %v2080_v60  ;;  %vm1970_vm5 = vcmp.ge.s32.totalorder %v1915_v24, %v4914_v23 }
 0x2e0   : > { %v1776_v41 = vpop.f32.mrb[160].mxu1 }
 0x2e1   : > { %v4877_v16 = vsel %vm1947_vm9, %v1776_v41, -1e+30  ;;  %v1778_v53 = vpop.f32.mrb[161].mxu1  ;;  %vm1978_vm9 = vcmp.ge.s32.totalorder %v1919_v20, %v4914_v23 }
 0x2e2   : > { %v1780_v43 = vpop.f32.mrb[162].mxu1  ;;  %v2083_v26 = vmax.f32 %v4877_v16, -1e+30 }
 0x2e3   : > { %v4881_v51 = vsel %vm1949_vm10, %v1780_v43, -1e+30  ;;  %v1782_v0 = vpop.f32.mrb[163].mxu1  ;;  %v1916_v43 = vadd.s32 160, %v4829_v29 }
 0x2e4   : > { %2084 = vmax.xlane.f32.xlu0 %v2083_v26  ;;  %v2086_v25 = vmax.f32 %v4881_v51, -1e+30  ;;  %v1917_v0 = vadd.s32 168, %v4829_v29 }
 0x2e5   : > { %vm1972_vm6 = vcmp.ge.s32.totalorder %v1916_v43, %v4914_v23 }
 0x2e6   : > { %2087 = vmax.xlane.f32.xlu1 %v2086_v25  ;;  %vm1974_vm7 = vcmp.ge.s32.totalorder %v1917_v0, %v4914_v23 }
 0x2e8   : > { %v1786_v61 = vpop.f32.mrb[164].mxu1 }
 0x2e9   : > { %v4887_v36 = vsel %vm1951_vm11, %v1786_v61, -1e+30  ;;  %v1788_v7 = vpop.f32.mrb[165].mxu1 }
 0x2ea   : > { %v1790_v9 = vpop.f32.mrb[166].mxu1  ;;  %v2089_v35 = vmax.f32 %v4887_v36, -1e+30 }
 0x2eb   : > { %v4891_v6 = vsel %vm1953_vm12, %v1790_v9, -1e+30  ;;  %v1792_v31 = vpop.f32.mrb[167].mxu1 }
 0x2ec   : > { %2090 = vmax.xlane.f32.xlu0 %v2089_v35  ;;  %v2092_v32 = vmax.f32 %v4891_v6, -1e+30 }
 0x2ee   : > { %2093 = vmax.xlane.f32.xlu1 %v2092_v32 }
 0x2f0   : > { %v1796_v19 = vpop.f32.mrb[168].mxu1 }
 0x2f1   : > { %v4897_v21 = vsel %vm1955_vm13, %v1796_v19, -1e+30  ;;  %v1798_v58 = vpop.f32.mrb[169].mxu1  ;;  %vm1986_vm13 = vcmp.ge.s32.totalorder %v1923_v15, %v4914_v23 }
 0x2f2   : > { %v1800_v47 = vpop.f32.mrb[170].mxu1  ;;  %v2095_v40 = vmax.f32 %v4897_v21, -1e+30 }
 0x2f3   : > { %v4901_v55 = vsel %vm1957_vm14, %v1800_v47, -1e+30  ;;  %v1802_v11 = vpop.f32.mrb[171].mxu1 }
 0x2f4   : > { %2096 = vmax.xlane.f32.xlu0 %v2095_v40  ;;  %v2098_v62 = vmax.f32 %v4901_v55, -1e+30 }
 0x2f6   : > { %2099 = vmax.xlane.f32.xlu1 %v2098_v62  ;;  %v1920_v62 = vadd.s32 192, %v4829_v29 }
 0x2f8   : > { %v1806_v34 = vpop.f32.mrb[172].mxu1  ;;  %vm1980_vm10 = vcmp.ge.s32.totalorder %v1920_v62, %v4914_v23 }
 0x2f9   : > { %v4907_v50 = vsel %vm1959_vm15, %v1806_v34, -1e+30  ;;  %v1808_v10 = vpop.f32.mrb[173].mxu1 }
 0x2fa   : > { %v1810_v13 = vpop.f32.mrb[174].mxu1  ;;  %v2101_v49 = vmax.f32 %v4907_v50, -1e+30  ;;  %v1921_v10 = vadd.s32 200, %v4829_v29 }
 0x2fb   : > { %v4910_v22 = vsel %vm1961_vm1, %v1810_v13, -1e+30  ;;  %v1812_v38 = vpop.f32.mrb[175].mxu1 }
 0x2fc   : > { %2102 = vmax.xlane.f32.xlu0 %v2101_v49  ;;  %v2104_v46 = vmax.f32 %v4910_v22, -1e+30  ;;  %vm1982_vm11 = vcmp.ge.s32.totalorder %v1921_v10, %v4914_v23  ;;  %v1927_v10 = vadd.s32 248, %v4829_v29 }
 0x2fe   : > { %2105 = vmax.xlane.f32.xlu1 %v2104_v46 }
 0x300   : > { %v4919_v57 = vpop.f32.mrb[176].mxu1 }
 0x301   : > { %v1818_v39 = vpop.f32.mrb[177].mxu1 }
 0x302   : > { %v4922_v56 = vsel %vm1964_vm2, %v1818_v39, -1e+30  ;;  %v4924_v14 = vpop.f32.mrb[178].mxu1  ;;  %v1922_v39 = vadd.s32 208, %v4829_v29  ;;  %vm1994_vm2 = vcmp.ge.s32.totalorder %v1927_v10, %v4914_v23 }
 0x303   : > { %v1822_v48 = vpop.f32.mrb[179].mxu1  ;;  %v2107_v1 = vmax.f32 %v4919_v57, %v4922_v56 }
 0x304   : > { %v4929_v12 = vsel %vm1966_vm3, %v1822_v48, -1e+30  ;;  %vm1984_vm12 = vcmp.ge.s32.totalorder %v1922_v39, %v4914_v23 }
 0x305   : > { %2108 = vmax.xlane.f32.xlu0 %v2107_v1  ;;  %v2110_v8 = vmax.f32 %v4924_v14, %v4929_v12 }
 0x307   : > { %2111 = vmax.xlane.f32.xlu1 %v2110_v8 }
 0x308   : > { %v4935_v52 = vpop.f32.mrb[180].mxu1 }
 0x309   : > { %v1828_v4 = vpop.f32.mrb[181].mxu1 }
 0x30a   : > { %v4938_v60 = vsel %vm1968_vm4, %v1828_v4, -1e+30  ;;  %v4940_v3 = vpop.f32.mrb[182].mxu1 }
 0x30b   : > { %v1832_v41 = vpop.f32.mrb[183].mxu1  ;;  %v2113_v53 = vmax.f32 %v4935_v52, %v4938_v60 }
 0x30c   : > { %v4945_v26 = vsel %vm1970_vm5, %v1832_v41, -1e+30 }
 0x30d   : > { %2114 = vmax.xlane.f32.xlu0 %v2113_v53  ;;  %v2116_v30 = vmax.f32 %v4940_v3, %v4945_v26 }
 0x30f   : > { %2117 = vmax.xlane.f32.xlu1 %v2116_v30  ;;  %v1924_v30 = vadd.s32 224, %v4829_v29 }
 0x310   : > { %v4951_v25 = vpop.f32.mrb[184].mxu1 }
 0x311   : > { %v1838_v54 = vpop.f32.mrb[185].mxu1  ;;  %vm1988_vm14 = vcmp.ge.s32.totalorder %v1924_v30, %v4914_v23 }
 0x312   : > { %v4954_v61 = vsel %vm1972_vm6, %v1838_v54, -1e+30  ;;  %v4956_v7 = vpop.f32.mrb[186].mxu1 }
 0x313   : > { %v1842_v9 = vpop.f32.mrb[187].mxu1  ;;  %v2119_v35 = vmax.f32 %v4951_v25, %v4954_v61 }
 0x314   : > { %v4961_v31 = vsel %vm1974_vm7, %v1842_v9, -1e+30  ;;  %v1925_v9 = vadd.s32 232, %v4829_v29 }
 0x315   : > { %2120 = vmax.xlane.f32.xlu0 %v2119_v35  ;;  %v2122_v32 = vmax.f32 %v4956_v7, %v4961_v31 }
 0x316   : > { %vm1990_vm15 = vcmp.ge.s32.totalorder %v1925_v9, %v4914_v23 }
 0x317   : > { %2123 = vmax.xlane.f32.xlu1 %v2122_v32 }
 0x318   : > { %v4967_v19 = vpop.f32.mrb[188].mxu1 }
 0x319   : > { %v1848_v58 = vpop.f32.mrb[189].mxu1 }
 0x31a   : > { %v4970_v47 = vsel %vm1976_vm8, %v1848_v58, -1e+30  ;;  %v4972_v40 = vpop.f32.mrb[190].mxu1 }
 0x31b   : > { %v1852_v44 = vpop.f32.mrb[191].mxu1  ;;  %v2125_v11 = vmax.f32 %v4967_v19, %v4970_v47 }
 0x31c   : > { %v4977_v17 = vsel %vm1978_vm9, %v1852_v44, -1e+30 }
 0x31d   : > { %2126 = vmax.xlane.f32.xlu0 %v2125_v11  ;;  %v2128_v34 = vmax.f32 %v4972_v40, %v4977_v17  ;;  %v1926_v11 = vadd.s32 240, %v4829_v29 }
 0x31f   : > { %2129 = vmax.xlane.f32.xlu1 %v2128_v34  ;;  %vm1992_vm1 = vcmp.ge.s32.totalorder %v1926_v11, %v4914_v23 }
 0x320   : > { %v4983_v13 = vpop.f32.mrb[192].mxu1 }
 0x321   : > { %v1858_v49 = vpop.f32.mrb[193].mxu1 }
 0x322   : > { %v4986_v38 = vsel %vm1980_vm10, %v1858_v49, -1e+30  ;;  %v4988_v33 = vpop.f32.mrb[194].mxu1 }
 0x323   : > { %v1862_v46 = vpop.f32.mrb[195].mxu1  ;;  %v2131_v18 = vmax.f32 %v4983_v13, %v4986_v38 }
 0x324   : > { %v4993_v48 = vsel %vm1982_vm11, %v1862_v46, -1e+30 }
 0x325   : > { %2132 = vmax.xlane.f32.xlu0 %v2131_v18  ;;  %v2134_v1 = vmax.f32 %v4988_v33, %v4993_v48 }
 0x327   : > { %2135 = vmax.xlane.f32.xlu1 %v2134_v1 }
 0x328   : > { %v4999_v8 = vpop.f32.mrb[196].mxu1 }
 0x329   : > { %v1868_v24 = vpop.f32.mrb[197].mxu1 }
 0x32a   : > { %v5002_v4 = vsel %vm1984_vm12, %v1868_v24, -1e+30  ;;  %v5004_v41 = vpop.f32.mrb[198].mxu1 }
 0x32b   : > { %v1872_v53 = vpop.f32.mrb[199].mxu1  ;;  %v2137_v43 = vmax.f32 %v4999_v8, %v5002_v4 }
 0x32c   : > { %v5009_v0 = vsel %vm1986_vm13, %v1872_v53, -1e+30 }
 0x32d   : > { %2138 = vmax.xlane.f32.xlu0 %v2137_v43  ;;  %v2140_v54 = vmax.f32 %v5004_v41, %v5009_v0 }
 0x32f   : > { %2141 = vmax.xlane.f32.xlu1 %v2140_v54 }
 0x330   : > { %v5015_v35 = vpop.f32.mrb[200].mxu1 }
 0x331   : > { %v1878_v27 = vpop.f32.mrb[201].mxu1 }
 0x332   : > { %v5018_v32 = vsel %vm1988_vm14, %v1878_v27, -1e+30  ;;  %v5020_v20 = vpop.f32.mrb[202].mxu1 }
 0x333   : > { %v1882_v58 = vpop.f32.mrb[203].mxu1  ;;  %v2143_v44 = vmax.f32 %v5015_v35, %v5018_v32 }
 0x334   : > { %v5025_v62 = vsel %vm1990_vm15, %v1882_v58, -1e+30 }
 0x335   : > { %2144 = vmax.xlane.f32.xlu0 %v2143_v44  ;;  %v2146_v34 = vmax.f32 %v5020_v20, %v5025_v62 }
 0x337   : > { %2147 = vmax.xlane.f32.xlu1 %v2146_v34 }
 0x338   : > { %v5031_v49 = vpop.f32.mrb[204].mxu1 }
 0x339   : > { %v1888_v46 = vpop.f32.mrb[205].mxu1 }
 0x33a   : > { %v5034_v18 = vsel %vm1992_vm1, %v1888_v46, -1e+30  ;;  %v5036_v39 = vpop.f32.mrb[206].mxu1 }
 0x33b   : > { %v1892_v1 = vpop.f32.mrb[207].mxu1  ;;  %v2149_v15 = vmax.f32 %v5031_v49, %v5034_v18 }
 0x33c   : > { %v5040_v24 = vsel %vm1994_vm2, %v1892_v1, -1e+30 }
 0x33d   : > { %2150 = vmax.xlane.f32.xlu0 %v2149_v15  ;;  %v2152_v29 = vmax.f32 %v5036_v39, %v5040_v24 }
 0x33f   : > { %2153 = vmax.xlane.f32.xlu1 %v2152_v29 }
 0x351   : > { %v2061_v53 = vpop.xlane.xlu0 %2060 }
 0x352   : > { %v2155_v43 = vsub.f32 %v4837_v2, %v2061_v53  ;;  %v2156_v30 = vsub.f32 -1e+30, %v2061_v53 }
 0x354   : > { %3495 = vpow2.f32 %v2155_v43 }
 0x355   : > { %3497 = vpow2.f32 %v2156_v30  ;;  %v2064_v23 = vpop.xlane.xlu0 %2063 }
 0x356   : > { %v2157_v54 = vsub.f32 %v4841_v37, %v2064_v23  ;;  %v2158_v9 = vsub.f32 -1e+30, %v2064_v23 }
 0x358   : > { %3499 = vpow2.f32 %v2157_v54 }
 0x359   : > { %3501 = vpow2.f32 %v2158_v9  ;;  %v2067_v27 = vpop.xlane.xlu1 %2066 }
 0x35a   : > { %v2159_v58 = vsub.f32 %v4847_v28, %v2067_v27  ;;  %v2160_v44 = vsub.f32 -1e+30, %v2067_v27 }
 0x35c   : > { %3503 = vpow2.f32 %v2159_v58 }
 0x35d   : > { %3505 = vpow2.f32 %v2160_v44  ;;  %v2070_v11 = vpop.xlane.xlu1 %2069 }
 0x35e   : > { %v3496_v34 = vpop.eup %3495  ;;  %v2161_v10 = vsub.f32 %v4851_v59, %v2070_v11  ;;  %v2162_v2 = vsub.f32 -1e+30, %v2070_v11 }
 0x35f   : > { %v3498_v46 = vpop.eup %3497 }
 0x360   : > { %3507 = vpow2.f32 %v2161_v10  ;;  %v2283_v1 = vadd.f32 %v3498_v46, %v3496_v34 }
 0x361   : > { %3509 = vpow2.f32 %v2162_v2  ;;  %v2073_v15 = vpop.xlane.xlu0 %2072 }
 0x362   : > { %v3500_v37 = vpop.eup %3499  ;;  %v2163_v29 = vsub.f32 %v4857_v45, %v2073_v15  ;;  %v2164_v53 = vsub.f32 -1e+30, %v2073_v15  ;;  %2284 = vadd.xlane.f32.xlu0 %v2283_v1 }
 0x363   : > { %v3502_v43 = vpop.eup %3501  ;;  %v2076_v28 = vpop.xlane.xlu1 %2075  ;;  %v2379_v30 = vpack.c.bf16 %v3500_v37, %v3496_v34 }
 0x364   : > { %3511 = vpow2.f32 %v2163_v29  ;;  %v2165_v23 = vsub.f32 %v4861_v5, %v2076_v28  ;;  %v2166_v54 = vsub.f32 -1e+30, %v2076_v28  ;;  %v2380_v9 = vpack.c.bf16 %v3502_v43, %v3498_v46 }
 0x365   : > { %3513 = vpow2.f32 %v2164_v53  ;;  %v2286_v59 = vadd.f32 %v3502_v43, %v3500_v37 }
 0x366   : > { %v3504_v27 = vpop.eup %3503  ;;  %3515 = vpow2.f32 %v2165_v23  ;;  %2443 = vmatprep.mubr.bf16.mxu0 %v2380_v9 }
 0x367   : > { %v3506_v58 = vpop.eup %3505  ;;  %3517 = vpow2.f32 %v2166_v54  ;;  %2287 = vadd.xlane.f32.xlu1 %v2286_v59  ;;  %2444 = vmatmul.mubr.bf16.vlgmr.msra.gmra.mrb[144].mxu0 %v2379_v30 }
 0x368   : > { %v2289_v45 = vadd.f32 %v3506_v58, %v3504_v27 }
 0x369   : > { %v2079_v44 = vpop.xlane.xlu0 %2078 }
 0x36a   : > { %v3508_v11 = vpop.eup %3507  ;;  %v2167_v10 = vsub.f32 %v4867_v63, %v2079_v44  ;;  %v2168_v34 = vsub.f32 -1e+30, %v2079_v44  ;;  %2290 = vadd.xlane.f32.xlu0 %v2289_v45 }
 0x36b   : > { %v3510_v2 = vpop.eup %3509  ;;  %v2082_v5 = vpop.xlane.xlu1 %2081  ;;  %v2381_v1 = vpack.c.bf16 %v3508_v11, %v3504_v27 }
 0x36c   : > { %3519 = vpow2.f32 %v2167_v10  ;;  %v2169_v46 = vsub.f32 %v4871_v42, %v2082_v5  ;;  %v2170_v15 = vsub.f32 -1e+30, %v2082_v5  ;;  %v2382_v37 = vpack.c.bf16 %v3510_v2, %v3506_v58 }
 0x36d   : > { %3521 = vpow2.f32 %v2168_v34  ;;  %v2292_v29 = vadd.f32 %v3510_v2, %v3508_v11 }
 0x36e   : > { %v3512_v53 = vpop.eup %3511  ;;  %3523 = vpow2.f32 %v2169_v46  ;;  %2451 = vmatprep.mubr.bf16.mxu0 %v2382_v37 }
 0x36f   : > { %v3514_v43 = vpop.eup %3513  ;;  %3525 = vpow2.f32 %v2170_v15  ;;  %2293 = vadd.xlane.f32.xlu1 %v2292_v29  ;;  %2452 = vmatmul.mubr.bf16.gmra.mrb[148].mxu0 %v2381_v1 }
 0x370   : > { %v3516_v63 = vpop.eup %3515  ;;  %v2295_v28 = vadd.f32 %v3514_v43, %v3512_v53 }
 0x371   : > { %v3518_v30 = vpop.eup %3517  ;;  %v2085_v23 = vpop.xlane.xlu0 %2084  ;;  %v2383_v44 = vpack.c.bf16 %v3516_v63, %v3512_v53 }
 0x372   : > { %v2171_v54 = vsub.f32 %v4877_v16, %v2085_v23  ;;  %v2172_v9 = vsub.f32 -1e+30, %v2085_v23  ;;  %2296 = vadd.xlane.f32.xlu0 %v2295_v28  ;;  %v2384_v42 = vpack.c.bf16 %v3518_v30, %v3514_v43  ;;  %v2298_v59 = vadd.f32 %v3518_v30, %v3516_v63 }
 0x373   : > { %v2088_v27 = vpop.xlane.xlu1 %2087 }
 0x374   : > { %3527 = vpow2.f32 %v2171_v54  ;;  %2459 = vmatprep.mubr.bf16.mxu0 %v2384_v42  ;;  %v2173_v58 = vsub.f32 %v4881_v51, %v2088_v27  ;;  %v2174_v45 = vsub.f32 -1e+30, %v2088_v27  ;;  %2299 = vadd.xlane.f32.xlu1 %v2298_v59 }
 0x375   : > { %3529 = vpow2.f32 %v2172_v9 }
 0x376   : > { %v3520_v11 = vpop.eup %3519  ;;  %3531 = vpow2.f32 %v2173_v58 }
 0x377   : > { %v3522_v10 = vpop.eup %3521  ;;  %3533 = vpow2.f32 %v2174_v45  ;;  %2460 = vmatmul.mubr.bf16.gmra.mrb[152].mxu0 %v2383_v44 }
 0x378   : > { %v3524_v34 = vpop.eup %3523  ;;  %v2301_v16 = vadd.f32 %v3522_v10, %v3520_v11 }
 0x379   : > { %v3526_v2 = vpop.eup %3525  ;;  %v2091_v5 = vpop.xlane.xlu0 %2090  ;;  %v2385_v43 = vpack.c.bf16 %v3524_v34, %v3520_v11 }
 0x37a   : > { %v2175_v1 = vsub.f32 %v4887_v36, %v2091_v5  ;;  %v2176_v46 = vsub.f32 -1e+30, %v2091_v5  ;;  %2302 = vadd.xlane.f32.xlu0 %v2301_v16  ;;  %v2386_v15 = vpack.c.bf16 %v3526_v2, %v3522_v10  ;;  %v2304_v37 = vadd.f32 %v3526_v2, %v3524_v34 }
 0x37b   : > { %v2094_v51 = vpop.xlane.xlu1 %2093 }
 0x37c   : > { %3535 = vpow2.f32 %v2175_v1  ;;  %2467 = vmatprep.mubr.bf16.mxu0 %v2386_v15  ;;  %v2177_v29 = vsub.f32 %v4891_v6, %v2094_v51  ;;  %v2178_v53 = vsub.f32 -1e+30, %v2094_v51  ;;  %2305 = vadd.xlane.f32.xlu1 %v2304_v37 }
 0x37d   : > { %3537 = vpow2.f32 %v2176_v46 }
 0x37e   : > { %v3528_v63 = vpop.eup %3527  ;;  %3539 = vpow2.f32 %v2177_v29 }
 0x37f   : > { %v3530_v28 = vpop.eup %3529  ;;  %3541 = vpow2.f32 %v2178_v53  ;;  %2468 = vmatmul.mubr.bf16.gmra.mrb[156].mxu0 %v2385_v43 }
 0x380   : > { %v3532_v30 = vpop.eup %3531  ;;  %v2307_v36 = vadd.f32 %v3530_v28, %v3528_v63 }
 0x381   : > { %v3534_v23 = vpop.eup %3533  ;;  %v2097_v54 = vpop.xlane.xlu0 %2096  ;;  %v2387_v44 = vpack.c.bf16 %v3532_v30, %v3528_v63 }
 0x382   : > { %v2179_v9 = vsub.f32 %v4897_v21, %v2097_v54  ;;  %v2180_v42 = vsub.f32 -1e+30, %v2097_v54  ;;  %2308 = vadd.xlane.f32.xlu0 %v2307_v36  ;;  %v2388_v59 = vpack.c.bf16 %v3534_v23, %v3530_v28  ;;  %v2310_v27 = vadd.f32 %v3534_v23, %v3532_v30 }
 0x383   : > { %v2100_v6 = vpop.xlane.xlu1 %2099 }
 0x384   : > { %3543 = vpow2.f32 %v2179_v9  ;;  %2475 = vmatprep.mubr.bf16.mxu0 %v2388_v59  ;;  %v2181_v58 = vsub.f32 %v4901_v55, %v2100_v6  ;;  %v2182_v45 = vsub.f32 -1e+30, %v2100_v6  ;;  %2311 = vadd.xlane.f32.xlu1 %v2310_v27 }
 0x385   : > { %3545 = vpow2.f32 %v2180_v42 }
 0x386   : > { %v3536_v11 = vpop.eup %3535  ;;  %3547 = vpow2.f32 %v2181_v58 }
 0x387   : > { %v3538_v10 = vpop.eup %3537  ;;  %3549 = vpow2.f32 %v2182_v45  ;;  %2476 = vmatmul.mubr.bf16.gmra.mrb[160].mxu0 %v2387_v44 }
 0x388   : > { %v3540_v34 = vpop.eup %3539  ;;  %v2313_v21 = vadd.f32 %v3538_v10, %v3536_v11 }
 0x389   : > { %v3542_v16 = vpop.eup %3541  ;;  %v2103_v2 = vpop.xlane.xlu0 %2102  ;;  %v2389_v29 = vpack.c.bf16 %v3540_v34, %v3536_v11 }
 0x38a   : > { %v2183_v5 = vsub.f32 %v4907_v50, %v2103_v2  ;;  %v2184_v1 = vsub.f32 -1e+30, %v2103_v2  ;;  %2314 = vadd.xlane.f32.xlu0 %v2313_v21  ;;  %v2390_v46 = vpack.c.bf16 %v3542_v16, %v3538_v10  ;;  %v2316_v15 = vadd.f32 %v3542_v16, %v3540_v34 }
 0x38b   : > { %v2106_v55 = vpop.xlane.xlu1 %2105 }
 0x38c   : > { %3551 = vpow2.f32 %v2183_v5  ;;  %2483 = vmatprep.mubr.bf16.mxu0 %v2390_v46  ;;  %v2185_v37 = vsub.f32 %v4910_v22, %v2106_v55  ;;  %v2186_v51 = vsub.f32 -1e+30, %v2106_v55  ;;  %2317 = vadd.xlane.f32.xlu1 %v2316_v15 }
 0x38d   : > { %3553 = vpow2.f32 %v2184_v1 }
 0x38e   : > { %v3544_v53 = vpop.eup %3543  ;;  %3555 = vpow2.f32 %v2185_v37 }
 0x38f   : > { %v3546_v43 = vpop.eup %3545  ;;  %3557 = vpow2.f32 %v2186_v51  ;;  %2484 = vmatmul.mubr.bf16.gmra.mrb[164].mxu0 %v2389_v29 }
 0x390   : > { %v3548_v63 = vpop.eup %3547  ;;  %v2319_v50 = vadd.f32 %v3546_v43, %v3544_v53 }
 0x391   : > { %v3550_v28 = vpop.eup %3549  ;;  %v2391_v27 = vpack.c.bf16 %v3548_v63, %v3544_v53 }
 0x392   : > { %2320 = vadd.xlane.f32.xlu0 %v2319_v50  ;;  %v2109_v30 = vpop.xlane.xlu0 %2108  ;;  %v2392_v36 = vpack.c.bf16 %v3550_v28, %v3546_v43  ;;  %v2322_v23 = vadd.f32 %v3550_v28, %v3548_v63 }
 0x393   : > { %v2187_v54 = vsub.f32 %v4919_v57, %v2109_v30  ;;  %v2188_v22 = vsub.f32 %v4922_v56, %v2109_v30 }
 0x394   : > { %2491 = vmatprep.mubr.bf16.mxu0 %v2392_v36  ;;  %2323 = vadd.xlane.f32.xlu1 %v2322_v23  ;;  %v2112_v9 = vpop.xlane.xlu1 %2111 }
 0x395   : > { %3559 = vpow2.f32 %v2187_v54  ;;  %v2189_v42 = vsub.f32 %v4924_v14, %v2112_v9  ;;  %v2190_v59 = vsub.f32 %v4929_v12, %v2112_v9 }
 0x396   : > { %v3552_v6 = vpop.eup %3551  ;;  %3561 = vpow2.f32 %v2188_v22 }
 0x397   : > { %v3554_v58 = vpop.eup %3553  ;;  %3563 = vpow2.f32 %v2189_v42  ;;  %2492 = vmatmul.mubr.bf16.gmra.mrb[168].mxu0 %v2391_v27 }
 0x398   : > { %v3556_v45 = vpop.eup %3555  ;;  %3565 = vpow2.f32 %v2190_v59  ;;  %v2325_v44 = vadd.f32 %v3554_v58, %v3552_v6 }
 0x399   : > { %v3558_v57 = vpop.eup %3557  ;;  %v2393_v2 = vpack.c.bf16 %v3556_v45, %v3552_v6 }
 0x39a   : > { %2326 = vadd.xlane.f32.xlu0 %v2325_v44  ;;  %v2115_v56 = vpop.xlane.xlu0 %2114  ;;  %v2394_v11 = vpack.c.bf16 %v3558_v57, %v3554_v58  ;;  %v2328_v10 = vadd.f32 %v3558_v57, %v3556_v45 }
 0x39b   : > { %v2191_v34 = vsub.f32 %v4935_v52, %v2115_v56  ;;  %v2192_v14 = vsub.f32 %v4938_v60, %v2115_v56 }
 0x39c   : > { %2499 = vmatprep.mubr.bf16.mxu0 %v2394_v11  ;;  %2329 = vadd.xlane.f32.xlu1 %v2328_v10  ;;  %v2118_v12 = vpop.xlane.xlu1 %2117 }
 0x39d   : > { %3567 = vpow2.f32 %v2191_v34  ;;  %v2193_v21 = vsub.f32 %v4940_v3, %v2118_v12  ;;  %v2194_v16 = vsub.f32 %v4945_v26, %v2118_v12 }
 0x39e   : > { %3569 = vpow2.f32 %v2192_v14 }
 0x39f   : > { %v3560_v5 = vpop.eup %3559  ;;  %3571 = vpow2.f32 %v2193_v21  ;;  %2500 = vmatmul.mubr.bf16.gmra.mrb[172].mxu0 %v2393_v2 }
 0x3a0   : > { %v3562_v1 = vpop.eup %3561  ;;  %3573 = vpow2.f32 %v2194_v16 }
 0x3a1   : > { %v3564_v46 = vpop.eup %3563  ;;  %v2331_v15 = vadd.f32 %v3562_v1, %v3560_v5 }
 0x3a2   : > { %v3566_v52 = vpop.eup %3565  ;;  %v2121_v55 = vpop.xlane.xlu0 %2120  ;;  %v2395_v60 = vpack.c.bf16 %v3564_v46, %v3560_v5 }
 0x3a3   : > { %v2195_v37 = vsub.f32 %v4951_v25, %v2121_v55  ;;  %v2196_v51 = vsub.f32 %v4954_v61, %v2121_v55  ;;  %2332 = vadd.xlane.f32.xlu0 %v2331_v15  ;;  %v2396_v3 = vpack.c.bf16 %v3566_v52, %v3562_v1  ;;  %v2334_v29 = vadd.f32 %v3566_v52, %v3564_v46 }
 0x3a4   : > { %v2124_v26 = vpop.xlane.xlu1 %2123 }
 0x3a5   : > { %3575 = vpow2.f32 %v2195_v37  ;;  %2507 = vmatprep.mubr.bf16.mxu0 %v2396_v3  ;;  %v2197_v53 = vsub.f32 %v4956_v7, %v2124_v26  ;;  %v2198_v43 = vsub.f32 %v4961_v31, %v2124_v26  ;;  %2335 = vadd.xlane.f32.xlu1 %v2334_v29 }
 0x3a6   : > { %3577 = vpow2.f32 %v2196_v51 }
 0x3a7   : > { %v3568_v63 = vpop.eup %3567  ;;  %3579 = vpow2.f32 %v2197_v53  ;;  %2508 = vmatmul.mubr.bf16.gmra.mrb[176].mxu0 %v2395_v60 }
 0x3a8   : > { %v3570_v50 = vpop.eup %3569  ;;  %3581 = vpow2.f32 %v2198_v43 }
 0x3a9   : > { %v3572_v25 = vpop.eup %3571  ;;  %v2337_v28 = vadd.f32 %v3570_v50, %v3568_v63 }
 0x3aa   : > { %v3574_v61 = vpop.eup %3573  ;;  %v2127_v30 = vpop.xlane.xlu0 %2126  ;;  %v2397_v36 = vpack.c.bf16 %v3572_v25, %v3568_v63 }
 0x3ab   : > { %v2199_v23 = vsub.f32 %v4967_v19, %v2127_v30  ;;  %v2200_v54 = vsub.f32 %v4970_v47, %v2127_v30  ;;  %2338 = vadd.xlane.f32.xlu0 %v2337_v28  ;;  %v2398_v7 = vpack.c.bf16 %v3574_v61, %v3570_v50  ;;  %v2340_v22 = vadd.f32 %v3574_v61, %v3572_v25 }
 0x3ac   : > { %v2130_v31 = vpop.xlane.xlu1 %2129 }
 0x3ad   : > { %3583 = vpow2.f32 %v2199_v23  ;;  %2515 = vmatprep.mubr.bf16.mxu0 %v2398_v7  ;;  %v2201_v9 = vsub.f32 %v4972_v40, %v2130_v31  ;;  %v2202_v42 = vsub.f32 %v4977_v17, %v2130_v31  ;;  %2341 = vadd.xlane.f32.xlu1 %v2340_v22 }
 0x3ae   : > { %3585 = vpow2.f32 %v2200_v54 }
 0x3af   : > { %v3576_v59 = vpop.eup %3575  ;;  %3587 = vpow2.f32 %v2201_v9  ;;  %2516 = vmatmul.mubr.bf16.gmra.mrb[180].mxu0 %v2397_v36 }
 0x3b0   : > { %v3578_v27 = vpop.eup %3577  ;;  %3589 = vpow2.f32 %v2202_v42 }
 0x3b1   : > { %v3580_v19 = vpop.eup %3579  ;;  %v2343_v6 = vadd.f32 %v3578_v27, %v3576_v59 }
 0x3b2   : > { %v3582_v47 = vpop.eup %3581  ;;  %v2133_v58 = vpop.xlane.xlu0 %2132  ;;  %v2399_v45 = vpack.c.bf16 %v3580_v19, %v3576_v59 }
 0x3b3   : > { %v2203_v44 = vsub.f32 %v4983_v13, %v2133_v58  ;;  %v2204_v57 = vsub.f32 %v4986_v38, %v2133_v58  ;;  %2344 = vadd.xlane.f32.xlu0 %v2343_v6  ;;  %v2400_v40 = vpack.c.bf16 %v3582_v47, %v3578_v27  ;;  %v2346_v56 = vadd.f32 %v3582_v47, %v3580_v19 }
 0x3b4   : > { %v2136_v17 = vpop.xlane.xlu1 %2135 }
 0x3b5   : > { %3591 = vpow2.f32 %v2203_v44  ;;  %2523 = vmatprep.mubr.bf16.mxu0 %v2400_v40  ;;  %v2205_v11 = vsub.f32 %v4988_v33, %v2136_v17  ;;  %v2206_v10 = vsub.f32 %v4993_v48, %v2136_v17  ;;  %2347 = vadd.xlane.f32.xlu1 %v2346_v56 }
 0x3b6   : > { %3593 = vpow2.f32 %v2204_v57 }
 0x3b7   : > { %v3584_v34 = vpop.eup %3583  ;;  %3595 = vpow2.f32 %v2205_v11  ;;  %2524 = vmatmul.mubr.bf16.gmra.mrb[184].mxu0 %v2399_v45 }
 0x3b8   : > { %v3586_v14 = vpop.eup %3585  ;;  %3597 = vpow2.f32 %v2206_v10 }
 0x3b9   : > { %v3588_v13 = vpop.eup %3587  ;;  %v2349_v12 = vadd.f32 %v3586_v14, %v3584_v34 }
 0x3ba   : > { %v3590_v38 = vpop.eup %3589  ;;  %v2139_v21 = vpop.xlane.xlu0 %2138  ;;  %v2401_v16 = vpack.c.bf16 %v3588_v13, %v3584_v34 }
 0x3bb   : > { %v2207_v2 = vsub.f32 %v4999_v8, %v2139_v21  ;;  %v2208_v5 = vsub.f32 %v5002_v4, %v2139_v21  ;;  %2350 = vadd.xlane.f32.xlu0 %v2349_v12  ;;  %v2402_v33 = vpack.c.bf16 %v3590_v38, %v3586_v14  ;;  %v2352_v1 = vadd.f32 %v3590_v38, %v3588_v13 }
 0x3bc   : > { %v2142_v48 = vpop.xlane.xlu1 %2141 }
 0x3bd   : > { %3599 = vpow2.f32 %v2207_v2  ;;  %2531 = vmatprep.mubr.bf16.mxu0 %v2402_v33  ;;  %v2209_v46 = vsub.f32 %v5004_v41, %v2142_v48  ;;  %v2210_v15 = vsub.f32 %v5009_v0, %v2142_v48  ;;  %2353 = vadd.xlane.f32.xlu1 %v2352_v1 }
 0x3be   : > { %3601 = vpow2.f32 %v2208_v5 }
 0x3bf   : > { %v3592_v52 = vpop.eup %3591  ;;  %3603 = vpow2.f32 %v2209_v46  ;;  %2532 = vmatmul.mubr.bf16.gmra.mrb[188].mxu0 %v2401_v16 }
 0x3c0   : > { %v3594_v55 = vpop.eup %3593  ;;  %3605 = vpow2.f32 %v2210_v15 }
 0x3c1   : > { %v3596_v8 = vpop.eup %3595  ;;  %v2355_v60 = vadd.f32 %v3594_v55, %v3592_v52 }
 0x3c2   : > { %v3598_v4 = vpop.eup %3597  ;;  %v2145_v37 = vpop.xlane.xlu0 %2144  ;;  %v2403_v51 = vpack.c.bf16 %v3596_v8, %v3592_v52 }
 0x3c3   : > { %v2211_v3 = vsub.f32 %v5015_v35, %v2145_v37  ;;  %v2212_v29 = vsub.f32 %v5018_v32, %v2145_v37  ;;  %2356 = vadd.xlane.f32.xlu0 %v2355_v60  ;;  %v2404_v41 = vpack.c.bf16 %v3598_v4, %v3594_v55  ;;  %v2358_v26 = vadd.f32 %v3598_v4, %v3596_v8 }
 0x3c4   : > { %v2148_v0 = vpop.xlane.xlu1 %2147 }
 0x3c5   : > { %3607 = vpow2.f32 %v2211_v3  ;;  %2539 = vmatprep.mubr.bf16.mxu0 %v2404_v41  ;;  %v2213_v53 = vsub.f32 %v5020_v20, %v2148_v0  ;;  %v2214_v43 = vsub.f32 %v5025_v62, %v2148_v0  ;;  %2359 = vadd.xlane.f32.xlu1 %v2358_v26 }
 0x3c6   : > { %3609 = vpow2.f32 %v2212_v29 }
 0x3c7   : > { %v3600_v63 = vpop.eup %3599  ;;  %3611 = vpow2.f32 %v2213_v53  ;;  %2540 = vmatmul.mubr.bf16.gmra.mrb[192].mxu0 %v2403_v51 }
 0x3c8   : > { %v3602_v50 = vpop.eup %3601  ;;  %3613 = vpow2.f32 %v2214_v43 }
 0x3c9   : > { %v3604_v35 = vpop.eup %3603  ;;  %v2361_v25 = vadd.f32 %v3602_v50, %v3600_v63 }
 0x3ca   : > { %v3606_v32 = vpop.eup %3605  ;;  %v2151_v28 = vpop.xlane.xlu0 %2150  ;;  %v2405_v61 = vpack.c.bf16 %v3604_v35, %v3600_v63 }
 0x3cb   : > { %2362 = vadd.xlane.f32.xlu0 %v2361_v25  ;;  %v2215_v30 = vsub.f32 %v5031_v49, %v2151_v28  ;;  %v2216_v36 = vsub.f32 %v5034_v18, %v2151_v28  ;;  %v2406_v20 = vpack.c.bf16 %v3606_v32, %v3602_v50  ;;  %v2364_v23 = vadd.f32 %v3606_v32, %v3604_v35 }
 0x3cc   : > { %v2154_v62 = vpop.xlane.xlu1 %2153 }
 0x3cd   : > { %3615 = vpow2.f32 %v2215_v30  ;;  %2547 = vmatprep.mubr.bf16.mxu0 %v2406_v20  ;;  %2365 = vadd.xlane.f32.xlu1 %v2364_v23  ;;  %v2217_v54 = vsub.f32 %v5036_v39, %v2154_v62  ;;  %v2218_v7 = vsub.f32 %v5040_v24, %v2154_v62 }
 0x3ce   : > { %3617 = vpow2.f32 %v2216_v36 }
 0x3cf   : > { %v3608_v22 = vpop.eup %3607  ;;  %3619 = vpow2.f32 %v2217_v54  ;;  %2548 = vmatmul.mubr.bf16.gmra.mrb[196].mxu0 %v2405_v61 }
 0x3d0   : > { %v3610_v31 = vpop.eup %3609  ;;  %3621 = vpow2.f32 %v2218_v7 }
 0x3d1   : > { %v3612_v9 = vpop.eup %3611  ;;  %v2367_v49 = vadd.f32 %v3610_v31, %v3608_v22 }
 0x3d2   : > { %v3614_v42 = vpop.eup %3613  ;;  %v2407_v18 = vpack.c.bf16 %v3612_v9, %v3608_v22 }
 0x3d3   : > { %2368 = vadd.xlane.f32.xlu0 %v2367_v49  ;;  %v2408_v59 = vpack.c.bf16 %v3614_v42, %v3610_v31  ;;  %v2370_v27 = vadd.f32 %v3614_v42, %v3612_v9 }
 0x3d5   : > { %2555 = vmatprep.mubr.bf16.mxu0 %v2408_v59  ;;  %2371 = vadd.xlane.f32.xlu1 %v2370_v27 }
 0x3d7   : > { %v3616_v19 = vpop.eup %3615  ;;  %2556 = vmatmul.mubr.bf16.gmra.mrb[200].mxu0 %v2407_v18 }
 0x3d8   : > { %v3618_v39 = vpop.eup %3617 }
 0x3d9   : > { %v3620_v6 = vpop.eup %3619  ;;  %v2373_v24 = vadd.f32 %v3618_v39, %v3616_v19 }
 0x3da   : > { %v3622_v47 = vpop.eup %3621  ;;  %v2409_v58 = vpack.c.bf16 %v3620_v6, %v3616_v19 }
 0x3db   : > { %2374 = vadd.xlane.f32.xlu0 %v2373_v24  ;;  %v2410_v45 = vpack.c.bf16 %v3622_v47, %v3618_v39  ;;  %v2376_v44 = vadd.f32 %v3622_v47, %v3620_v6 }
 0x3dd   : > { %2563 = vmatprep.mubr.bf16.mxu0 %v2410_v45  ;;  %2377 = vadd.xlane.f32.xlu1 %v2376_v44 }
 0x3df   : > { %2564 = vmatmul.mubr.bf16.gmra.mrb[204].mxu0 %v2409_v58 }
 0x3ef   : > { %v2285_v57 = vpop.xlane.xlu0 %2284 }
 0x3f0   : > { %3623 = vrcp.f32 %v2285_v57 }
 0x3f4   : > { %v2288_v40 = vpop.xlane.xlu1 %2287 }
 0x3f5   : > { %3625 = vrcp.f32 %v2288_v40 }
 0x3f7   : > { %v2291_v56 = vpop.xlane.xlu0 %2290 }
 0x3f8   : > { %3627 = vrcp.f32 %v2291_v56 }
 0x3fa   : > { %v3624_v13 = vpop.eup %3623 }
 0x3fc   : > { %v2294_v17 = vpop.xlane.xlu1 %2293 }
 0x3fd   : > { %3629 = vrcp.f32 %v2294_v17 }
 0x3ff   : > { %v3626_v16 = vpop.eup %3625  ;;  %v2297_v2 = vpop.xlane.xlu0 %2296 }
 0x400   : > { %3631 = vrcp.f32 %v2297_v2 }
 0x401   : > { %v2300_v33 = vpop.xlane.xlu1 %2299 }
 0x402   : > { %v3628_v52 = vpop.eup %3627  ;;  %3633 = vrcp.f32 %v2300_v33 }
 0x407   : > { %v3630_v4 = vpop.eup %3629  ;;  %v2303_v37 = vpop.xlane.xlu0 %2302 }
 0x408   : > { %3635 = vrcp.f32 %v2303_v37 }
 0x409   : > { %v2306_v3 = vpop.xlane.xlu1 %2305 }
 0x40a   : > { %v3632_v53 = vpop.eup %3631  ;;  %3637 = vrcp.f32 %v2306_v3 }
 0x40c   : > { %v3634_v35 = vpop.eup %3633 }
 0x40f   : > { %v2309_v25 = vpop.xlane.xlu0 %2308 }
 0x410   : > { %3639 = vrcp.f32 %v2309_v25 }
 0x411   : > { %v2312_v28 = vpop.xlane.xlu1 %2311 }
 0x412   : > { %v3636_v23 = vpop.eup %3635  ;;  %3641 = vrcp.f32 %v2312_v28 }
 0x414   : > { %v3638_v22 = vpop.eup %3637 }
 0x417   : > { %v2315_v31 = vpop.xlane.xlu0 %2314 }
 0x418   : > { %3643 = vrcp.f32 %v2315_v31 }
 0x419   : > { %v2318_v49 = vpop.xlane.xlu1 %2317 }
 0x41a   : > { %v3640_v19 = vpop.eup %3639  ;;  %3645 = vrcp.f32 %v2318_v49 }
 0x41c   : > { %v3642_v47 = vpop.eup %3641 }
 0x41f   : > { %v2321_v58 = vpop.xlane.xlu0 %2320 }
 0x420   : > { %3647 = vrcp.f32 %v2321_v58 }
 0x421   : > { %v2324_v44 = vpop.xlane.xlu1 %2323 }
 0x422   : > { %3649 = vrcp.f32 %v2324_v44 }
 0x43a   : > { %v3222_v11 = vpop.f32.mrb[144].mxu0 }
 0x43b   : > { %v3223_v10 = vpop.f32.mrb[145].mxu0 }
 0x43c   : > { %v3224_v34 = vadd.f32 %v3223_v10, %v3222_v11  ;;  %v3225_v14 = vpop.f32.mrb[146].mxu0  ;;  %v3644_v11 = vpop.eup %3643 }
 0x43d   : > { %v3226_v12 = vpop.f32.mrb[147].mxu0 }
 0x43e   : > { %v2604_v38 = vmul.f32 %v3624_v13, %v3224_v34  ;;  %v3227_v21 = vadd.f32 %v3226_v12, %v3225_v14  ;;  %v3646_v13 = vpop.eup %3645  ;;  %v2327_v12 = vpop.xlane.xlu0 %2326 }
 0x43f   : > { %3651 = vrcp.f32 %v2327_v12 }
 0x440   : > { %2636 = vst.msk [vmem:[%s5096_s5] sm:$0xff] %vm1605_vm0, %v2604_v38  ;;  %v2605_v5 = vmul.f32 %v3626_v16, %v3227_v21  ;;  %v2330_v21 = vpop.xlane.xlu1 %2329 }
 0x441   : > { %3653 = vrcp.f32 %v2330_v21 }
 0x442   : > { %2637 = vst.msk [vmem:[%s5096_s5 + $0x8] sm:$0xff] %vm1605_vm0, %v2605_v5  ;;  %v3228_v1 = vpop.f32.mrb[148].mxu0 }
 0x443   : > { %v3229_v48 = vpop.f32.mrb[149].mxu0 }
 0x444   : > { %v3230_v46 = vadd.f32 %v3229_v48, %v3228_v1  ;;  %v3231_v15 = vpop.f32.mrb[150].mxu0  ;;  %v3648_v1 = vpop.eup %3647 }
 0x445   : > { %v3232_v55 = vpop.f32.mrb[151].mxu0 }
 0x446   : > { %v2606_v8 = vmul.f32 %v3628_v52, %v3230_v46  ;;  %v3233_v60 = vadd.f32 %v3232_v55, %v3231_v15  ;;  %v3650_v52 = vpop.eup %3649  ;;  %v2333_v55 = vpop.xlane.xlu0 %2332 }
 0x447   : > { %3655 = vrcp.f32 %v2333_v55 }
 0x448   : > { %2638 = vst.msk [vmem:[%s5096_s5 + $0x10] sm:$0xff] %vm1605_vm0, %v2606_v8  ;;  %v2607_v51 = vmul.f32 %v3630_v4, %v3233_v60  ;;  %v2336_v60 = vpop.xlane.xlu1 %2335 }
 0x449   : > { %3657 = vrcp.f32 %v2336_v60 }
 0x44a   : > { %2639 = vst.msk [vmem:[%s5096_s5 + $0x18] sm:$0xff] %vm1605_vm0, %v2607_v51  ;;  %v3234_v29 = vpop.f32.mrb[152].mxu0 }
 0x44b   : > { %v3235_v41 = vpop.f32.mrb[153].mxu0 }
 0x44c   : > { %v3236_v26 = vadd.f32 %v3235_v41, %v3234_v29  ;;  %v3237_v0 = vpop.f32.mrb[154].mxu0  ;;  %v3652_v29 = vpop.eup %3651 }
 0x44d   : > { %v3238_v43 = vpop.f32.mrb[155].mxu0 }
 0x44e   : > { %v2608_v63 = vmul.f32 %v3632_v53, %v3236_v26  ;;  %v3239_v50 = vadd.f32 %v3238_v43, %v3237_v0  ;;  %v3654_v53 = vpop.eup %3653  ;;  %v2339_v43 = vpop.xlane.xlu0 %2338 }
 0x44f   : > { %3659 = vrcp.f32 %v2339_v43 }
 0x450   : > { %2640 = vst.msk [vmem:[%s5096_s5 + $0x20] sm:$0xff] %vm1605_vm0, %v2608_v63  ;;  %v2609_v32 = vmul.f32 %v3634_v35, %v3239_v50  ;;  %v2342_v50 = vpop.xlane.xlu1 %2341 }
 0x451   : > { %3661 = vrcp.f32 %v2342_v50 }
 0x452   : > { %2641 = vst.msk [vmem:[%s5096_s5 + $0x28] sm:$0xff] %vm1605_vm0, %v2609_v32  ;;  %v3240_v61 = vpop.f32.mrb[156].mxu0 }
 0x453   : > { %v3241_v30 = vpop.f32.mrb[157].mxu0 }
 0x454   : > { %v3242_v36 = vadd.f32 %v3241_v30, %v3240_v61  ;;  %v3243_v20 = vpop.f32.mrb[158].mxu0  ;;  %v3656_v61 = vpop.eup %3655 }
 0x455   : > { %v3244_v62 = vpop.f32.mrb[159].mxu0 }
 0x456   : > { %v2610_v54 = vmul.f32 %v3636_v23, %v3242_v36  ;;  %v3245_v7 = vadd.f32 %v3244_v62, %v3243_v20  ;;  %v3658_v23 = vpop.eup %3657  ;;  %v2345_v62 = vpop.xlane.xlu0 %2344 }
 0x457   : > { %3663 = vrcp.f32 %v2345_v62 }
 0x458   : > { %2642 = vst.msk [vmem:[%s5096_s5 + $0x30] sm:$0xff] %vm1605_vm0, %v2610_v54  ;;  %v2611_v9 = vmul.f32 %v3638_v22, %v3245_v7  ;;  %v2348_v7 = vpop.xlane.xlu1 %2347 }
 0x459   : > { %3665 = vrcp.f32 %v2348_v7 }
 0x45a   : > { %2643 = vst.msk [vmem:[%s5096_s5 + $0x38] sm:$0xff] %vm1605_vm0, %v2611_v9  ;;  %v3246_v42 = vpop.f32.mrb[160].mxu0 }
 0x45b   : > { %v3247_v18 = vpop.f32.mrb[161].mxu0 }
 0x45c   : > { %v3248_v59 = vadd.f32 %v3247_v18, %v3246_v42  ;;  %v3249_v27 = vpop.f32.mrb[162].mxu0  ;;  %v3660_v42 = vpop.eup %3659 }
 0x45d   : > { %v3250_v39 = vpop.f32.mrb[163].mxu0 }
 0x45e   : > { %v2612_v6 = vmul.f32 %v3640_v19, %v3248_v59  ;;  %v3251_v24 = vadd.f32 %v3250_v39, %v3249_v27  ;;  %v3662_v19 = vpop.eup %3661  ;;  %v2351_v39 = vpop.xlane.xlu0 %2350 }
 0x45f   : > { %3667 = vrcp.f32 %v2351_v39 }
 0x460   : > { %2644 = vst.msk [vmem:[%s5096_s5 + $0x40] sm:$0xff] %vm1605_vm0, %v2612_v6  ;;  %v2613_v45 = vmul.f32 %v3642_v47, %v3251_v24  ;;  %v2354_v24 = vpop.xlane.xlu1 %2353 }
 0x461   : > { %3669 = vrcp.f32 %v2354_v24 }
 0x462   : > { %2645 = vst.msk [vmem:[%s5096_s5 + $0x48] sm:$0xff] %vm1605_vm0, %v2613_v45  ;;  %v3252_v57 = vpop.f32.mrb[164].mxu0 }
 0x463   : > { %v3253_v40 = vpop.f32.mrb[165].mxu0 }
 0x464   : > { %v3254_v56 = vadd.f32 %v3253_v40, %v3252_v57  ;;  %v3255_v17 = vpop.f32.mrb[166].mxu0  ;;  %v3664_v57 = vpop.eup %3663 }
 0x465   : > { %v3256_v10 = vpop.f32.mrb[167].mxu0 }
 0x466   : > { %v2614_v34 = vmul.f32 %v3644_v11, %v3254_v56  ;;  %v3257_v14 = vadd.f32 %v3256_v10, %v3255_v17  ;;  %v3666_v11 = vpop.eup %3665  ;;  %v2357_v10 = vpop.xlane.xlu0 %2356 }
 0x467   : > { %3671 = vrcp.f32 %v2357_v10 }
 0x468   : > { %2646 = vst.msk [vmem:[%s5096_s5 + $0x50] sm:$0xff] %vm1605_vm0, %v2614_v34  ;;  %v2615_v38 = vmul.f32 %v3646_v13, %v3257_v14  ;;  %v2360_v14 = vpop.xlane.xlu1 %2359 }
 0x469   : > { %3673 = vrcp.f32 %v2360_v14 }
 0x46a   : > { %2647 = vst.msk [vmem:[%s5096_s5 + $0x58] sm:$0xff] %vm1605_vm0, %v2615_v38  ;;  %v3258_v16 = vpop.f32.mrb[168].mxu0 }
 0x46b   : > { %v3259_v2 = vpop.f32.mrb[169].mxu0 }
 0x46c   : > { %v3260_v5 = vadd.f32 %v3259_v2, %v3258_v16  ;;  %v3261_v33 = vpop.f32.mrb[170].mxu0  ;;  %v3668_v16 = vpop.eup %3667 }
 0x46d   : > { %v3262_v48 = vpop.f32.mrb[171].mxu0 }
 0x46e   : > { %v2616_v46 = vmul.f32 %v3648_v1, %v3260_v5  ;;  %v3263_v15 = vadd.f32 %v3262_v48, %v3261_v33  ;;  %v3670_v1 = vpop.eup %3669  ;;  %v2363_v48 = vpop.xlane.xlu0 %2362 }
 0x46f   : > { %3675 = vrcp.f32 %v2363_v48 }
 0x470   : > { %2648 = vst.msk [vmem:[%s5096_s5 + $0x60] sm:$0xff] %vm1605_vm0, %v2616_v46  ;;  %v2617_v8 = vmul.f32 %v3650_v52, %v3263_v15  ;;  %v2366_v15 = vpop.xlane.xlu1 %2365 }
 0x471   : > { %3677 = vrcp.f32 %v2366_v15 }
 0x472   : > { %2649 = vst.msk [vmem:[%s5096_s5 + $0x68] sm:$0xff] %vm1605_vm0, %v2617_v8  ;;  %v3264_v4 = vpop.f32.mrb[172].mxu0 }
 0x473   : > { %v3265_v37 = vpop.f32.mrb[173].mxu0 }
 0x474   : > { %v3266_v51 = vadd.f32 %v3265_v37, %v3264_v4  ;;  %v3267_v3 = vpop.f32.mrb[174].mxu0  ;;  %v3672_v4 = vpop.eup %3671 }
 0x475   : > { %v3268_v41 = vpop.f32.mrb[175].mxu0 }
 0x476   : > { %v2618_v26 = vmul.f32 %v3652_v29, %v3266_v51  ;;  %v3269_v0 = vadd.f32 %v3268_v41, %v3267_v3  ;;  %v3674_v29 = vpop.eup %3673  ;;  %v2369_v41 = vpop.xlane.xlu0 %2368 }
 0x477   : > { %3679 = vrcp.f32 %v2369_v41 }
 0x478   : > { %2650 = vst.msk [vmem:[%s5096_s5 + $0x70] sm:$0xff] %vm1605_vm0, %v2618_v26  ;;  %v2619_v63 = vmul.f32 %v3654_v53, %v3269_v0  ;;  %v2372_v0 = vpop.xlane.xlu1 %2371 }
 0x479   : > { %3681 = vrcp.f32 %v2372_v0 }
 0x47a   : > { %2651 = vst.msk [vmem:[%s5096_s5 + $0x78] sm:$0xff] %vm1605_vm0, %v2619_v63  ;;  %v3270_v35 = vpop.f32.mrb[176].mxu0 }
 0x47b   : > { %v3271_v25 = vpop.f32.mrb[177].mxu0 }
 0x47c   : > { %v3272_v32 = vadd.f32 %v3271_v25, %v3270_v35  ;;  %v3273_v28 = vpop.f32.mrb[178].mxu0  ;;  %v3676_v35 = vpop.eup %3675 }
 0x47d   : > { %v3274_v30 = vpop.f32.mrb[179].mxu0 }
 0x47e   : > { %v2620_v36 = vmul.f32 %v3656_v61, %v3272_v32  ;;  %v3275_v20 = vadd.f32 %v3274_v30, %v3273_v28  ;;  %v3678_v61 = vpop.eup %3677  ;;  %v2375_v30 = vpop.xlane.xlu0 %2374 }
 0x47f   : > { %3683 = vrcp.f32 %v2375_v30 }
 0x480   : > { %2652 = vst.msk [vmem:[%s5096_s5 + $0x80] sm:$0xff] %vm1605_vm0, %v2620_v36  ;;  %v2621_v54 = vmul.f32 %v3658_v23, %v3275_v20  ;;  %v2378_v20 = vpop.xlane.xlu1 %2377 }
 0x481   : > { %3685 = vrcp.f32 %v2378_v20 }
 0x482   : > { %2653 = vst.msk [vmem:[%s5096_s5 + $0x88] sm:$0xff] %vm1605_vm0, %v2621_v54  ;;  %v3276_v22 = vpop.f32.mrb[180].mxu0 }
 0x483   : > { %v3277_v31 = vpop.f32.mrb[181].mxu0 }
 0x484   : > { %v3278_v9 = vadd.f32 %v3277_v31, %v3276_v22  ;;  %v3279_v49 = vpop.f32.mrb[182].mxu0  ;;  %v3680_v22 = vpop.eup %3679 }
 0x485   : > { %v3280_v18 = vpop.f32.mrb[183].mxu0 }
 0x486   : > { %v2622_v59 = vmul.f32 %v3660_v42, %v3278_v9  ;;  %v3281_v27 = vadd.f32 %v3280_v18, %v3279_v49  ;;  %v3682_v42 = vpop.eup %3681 }
 0x488   : > { %2654 = vst.msk [vmem:[%s5096_s5 + $0x90] sm:$0xff] %vm1605_vm0, %v2622_v59  ;;  %v2623_v6 = vmul.f32 %v3662_v19, %v3281_v27 }
 0x48a   : > { %2655 = vst.msk [vmem:[%s5096_s5 + $0x98] sm:$0xff] %vm1605_vm0, %v2623_v6  ;;  %v3282_v47 = vpop.f32.mrb[184].mxu0  ;;  %v3684_v6 = vpop.eup %3683 }
 0x48b   : > { %v3283_v58 = vpop.f32.mrb[185].mxu0 }
 0x48c   : > { %v3284_v45 = vadd.f32 %v3283_v58, %v3282_v47  ;;  %v3285_v44 = vpop.f32.mrb[186].mxu0 }
 0x48d   : > { %v3286_v40 = vpop.f32.mrb[187].mxu0 }
 0x48e   : > { %v2624_v56 = vmul.f32 %v3664_v57, %v3284_v45  ;;  %v3287_v17 = vadd.f32 %v3286_v40, %v3285_v44  ;;  %v3686_v45 = vpop.eup %3685 }
 0x490   : > { %2656 = vst.msk [vmem:[%s5096_s5 + $0xa0] sm:$0xff] %vm1605_vm0, %v2624_v56  ;;  %v2625_v34 = vmul.f32 %v3666_v11, %v3287_v17 }
 0x492   : > { %2657 = vst.msk [vmem:[%s5096_s5 + $0xa8] sm:$0xff] %vm1605_vm0, %v2625_v34  ;;  %v3288_v13 = vpop.f32.mrb[188].mxu0 }
 0x493   : > { %v3289_v12 = vpop.f32.mrb[189].mxu0 }
 0x494   : > { %v3290_v38 = vadd.f32 %v3289_v12, %v3288_v13  ;;  %v3291_v21 = vpop.f32.mrb[190].mxu0 }
 0x495   : > { %v3292_v2 = vpop.f32.mrb[191].mxu0 }
 0x496   : > { %v2626_v5 = vmul.f32 %v3668_v16, %v3290_v38  ;;  %v3293_v33 = vadd.f32 %v3292_v2, %v3291_v21 }
 0x498   : > { %2658 = vst.msk [vmem:[%s5096_s5 + $0xb0] sm:$0xff] %vm1605_vm0, %v2626_v5  ;;  %v2627_v46 = vmul.f32 %v3670_v1, %v3293_v33 }
 0x49a   : > { %2659 = vst.msk [vmem:[%s5096_s5 + $0xb8] sm:$0xff] %vm1605_vm0, %v2627_v46  ;;  %v3294_v52 = vpop.f32.mrb[192].mxu0 }
 0x49b   : > { %v3295_v55 = vpop.f32.mrb[193].mxu0 }
 0x49c   : > { %v3296_v8 = vadd.f32 %v3295_v55, %v3294_v52  ;;  %v3297_v60 = vpop.f32.mrb[194].mxu0 }
 0x49d   : > { %v3298_v37 = vpop.f32.mrb[195].mxu0 }
 0x49e   : > { %v2628_v51 = vmul.f32 %v3672_v4, %v3296_v8  ;;  %v3299_v3 = vadd.f32 %v3298_v37, %v3297_v60 }
 0x4a0   : > { %2660 = vst.msk [vmem:[%s5096_s5 + $0xc0] sm:$0xff] %vm1605_vm0, %v2628_v51  ;;  %v2629_v26 = vmul.f32 %v3674_v29, %v3299_v3 }
 0x4a2   : > { %2661 = vst.msk [vmem:[%s5096_s5 + $0xc8] sm:$0xff] %vm1605_vm0, %v2629_v26  ;;  %v3300_v53 = vpop.f32.mrb[196].mxu0 }
 0x4a3   : > { %v3301_v43 = vpop.f32.mrb[197].mxu0 }
 0x4a4   : > { %v3302_v63 = vadd.f32 %v3301_v43, %v3300_v53  ;;  %v3303_v50 = vpop.f32.mrb[198].mxu0 }
 0x4a5   : > { %v3304_v25 = vpop.f32.mrb[199].mxu0 }
 0x4a6   : > { %v2630_v32 = vmul.f32 %v3676_v35, %v3302_v63  ;;  %v3305_v28 = vadd.f32 %v3304_v25, %v3303_v50 }
 0x4a8   : > { %2662 = vst.msk [vmem:[%s5096_s5 + $0xd0] sm:$0xff] %vm1605_vm0, %v2630_v32  ;;  %v2631_v36 = vmul.f32 %v3678_v61, %v3305_v28 }
 0x4aa   : > { %2663 = vst.msk [vmem:[%s5096_s5 + $0xd8] sm:$0xff] %vm1605_vm0, %v2631_v36  ;;  %v3306_v23 = vpop.f32.mrb[200].mxu0 }
 0x4ab   : > { %v3307_v62 = vpop.f32.mrb[201].mxu0 }
 0x4ac   : > { %v3308_v54 = vadd.f32 %v3307_v62, %v3306_v23  ;;  %v3309_v7 = vpop.f32.mrb[202].mxu0 }
 0x4ad   : > { %v3310_v31 = vpop.f32.mrb[203].mxu0 }
 0x4ae   : > { %v2632_v9 = vmul.f32 %v3680_v22, %v3308_v54  ;;  %v3311_v49 = vadd.f32 %v3310_v31, %v3309_v7 }
 0x4b0   : > { %2664 = vst.msk [vmem:[%s5096_s5 + $0xe0] sm:$0xff] %vm1605_vm0, %v2632_v9  ;;  %v2633_v18 = vmul.f32 %v3682_v42, %v3311_v49 }
 0x4b2   : > { %2665 = vst.msk [vmem:[%s5096_s5 + $0xe8] sm:$0xff] %vm1605_vm0, %v2633_v18  ;;  %v3312_v59 = vpop.f32.mrb[204].mxu0 }
 0x4b3   : > { %v3313_v27 = vpop.f32.mrb[205].mxu0 }
 0x4b4   : > { %v3314_v19 = vadd.f32 %v3313_v27, %v3312_v59  ;;  %v3315_v39 = vpop.f32.mrb[206].mxu0 }
 0x4b5   : > { %v3316_v24 = vpop.f32.mrb[207].mxu0 }
 0x4b6   : > { %v2634_v47 = vmul.f32 %v3684_v6, %v3314_v19  ;;  %v3317_v58 = vadd.f32 %v3316_v24, %v3315_v39 }
 0x4b8   : > { %2666 = vst.msk [vmem:[%s5096_s5 + $0xf0] sm:$0xff] %vm1605_vm0, %v2634_v47  ;;  %v2635_v44 = vmul.f32 %v3686_v45, %v3317_v58 }
 0x4ba   : > { %2667 = vst.msk [vmem:[%s5096_s5 + $0xf8] sm:$0xff] %vm1605_vm0, %v2635_v44 }
 0x4bb PF: > { %s14_s15 = sadd.s32 1, %s3693_s15  }
 0x4bc   : > { %p11_p4 = scmp.ge.s32.totalorder %s14_s15, 4  }
 0x4be   :  { %13 = sbr.rel (!%p11_p4) target bundleno = 1 (0x1), region = 66 }

</bundles_post_ra>
